<compile_context>
chip_gen: v6e
topology: v6e:2x2x1
jax: 0.10.0
libtpu: 0.0.40
codegen_flags: <defaults>
</compile_context>

<pallas_src>
import jax
import jax.numpy as jnp
from jax.experimental import pallas as pl
from jax.experimental.pallas import tpu as pltpu


def se_scale_kernel(s_ref, w_ref, b_ref, x_ref, o_ref):
    # 1x1 conv on a 1x1 spatial input == matvec on the MXU:
    #   [tile_cout, Cin] @ [Cin, 1] -> [tile_cout, 1], f32 accumulate.
    # Inputs may be bf16; widen in-kernel (f32 vreg math required on v5e VPU).
    z = jnp.dot(w_ref[...].astype(jnp.float32),
                s_ref[...].astype(jnp.float32),
                preferred_element_type=jnp.float32)
    z = z + b_ref[...].astype(jnp.float32)
    # Exact sigmoid (exp on EUP + divide). Approximate reciprocal would break
    # the 1e-5 tolerance, and the EUP slot is otherwise idle anyway.
    gate = 1.0 / (1.0 + jnp.exp(-z))
    # Broadcast the per-channel gate over the spatial (lane) axis and store.
    o_ref[...] = (x_ref[...].astype(jnp.float32) * gate).astype(o_ref.dtype)


def se_module_forward(x952, x949, weight, bias):
    """x952: [1, Cin, 1, 1], x949: [1, Cout, H, W],
       weight: [Cout, Cin, 1, 1], bias: [Cout]."""
    N, Cout, H, W = x949.shape
    assert N == 1, "module spec has batch 1"
    Cin = x952.shape[1]
    HW = H * W

    # All of these reshapes are zero-copy views of the NCHW / OIHW tensors.
    s = x952.reshape(Cin, 1)        # [Cin, 1]
    w = weight.reshape(Cout, Cin)   # [Cout, Cin]  (no transpose)
    b = bias.reshape(Cout, 1)       # [Cout, 1]
    x = x949.reshape(Cout, HW)      # [Cout, HW]   (no transpose)

    # Two Cout tiles -> megacore split on v7x; cheap pipelining elsewhere.
    # Require sublane-aligned tiles; otherwise fall back to a single block.
    n_tiles = 2 if (Cout % 16 == 0) else 1
    tc = Cout // n_tiles

    itemsize = x.dtype.itemsize
    cost = pl.CostEstimate(
        flops=2 * Cin * Cout + 3 * Cout * HW,
        transcendentals=Cout,
        bytes_accessed=(s.size + w.size + b.size) * itemsize
                       + 2 * x.size * itemsize,
    )

    out = pl.pallas_call(
        se_scale_kernel,
        out_shape=jax.ShapeDtypeStruct((Cout, HW), x949.dtype),
        grid=(n_tiles,),
        in_specs=[
            pl.BlockSpec((Cin, 1), lambda i: (0, 0)),   # same block both steps
            pl.BlockSpec((tc, Cin), lambda i: (i, 0)),
            pl.BlockSpec((tc, 1), lambda i: (i, 0)),
            pl.BlockSpec((tc, HW), lambda i: (i, 0)),
        ],
        out_specs=pl.BlockSpec((tc, HW), lambda i: (i, 0)),
        compiler_params=pltpu.CompilerParams(
            dimension_semantics=("parallel",)),
        cost_estimate=cost,
    )(s, w, b, x)

    return out.reshape(N, Cout, H, W)


if __name__ == "__main__":
    key = jax.random.PRNGKey(0)
    k1, k2, k3, k4 = jax.random.split(key, 4)

    # Shapes implied by the module: Conv2d(96 -> 2304, 1x1), feature map 7x7.
    Cin, Cout, H, W = 96, 2304, 7, 7

    weight = jax.random.normal(k1, (Cout, Cin, 1, 1), dtype=jnp.float32) * 0.02
    bias = jax.random.normal(k2, (Cout,), dtype=jnp.float32) * 0.02

    x952 = jax.random.normal(k3, (1, Cin, 1, 1), dtype=jnp.float32)
    x949 = jax.random.normal(k4, (1, Cout, H, W), dtype=jnp.float32)

    out = se_module_forward(x952, x949, weight, bias)
    out = jax.block_until_ready(out)

    # Pure-JAX reference for the exact PyTorch semantics:
    # conv2d(1x1) -> sigmoid -> broadcast multiply.
    z = jnp.einsum("oc,c->o", weight.reshape(Cout, Cin), x952.reshape(Cin)) + bias
    ref = jax.nn.sigmoid(z).reshape(1, Cout, 1, 1) * x949

    assert out.shape == (1, Cout, H, W)
    assert jnp.allclose(out, ref, atol=1e-5, rtol=1e-5), "mismatch vs reference"
    print("KERNEL_OK")
</pallas_src>

<mosaic_0001>
module attributes {stable_mosaic.version = 11 : i64} {
  func.func @se_scale_kernel(%arg0: i32, %arg1: memref<96x1xf32, #tpu.memory_space<vmem>>, %arg2: memref<1152x96xf32, #tpu.memory_space<vmem>>, %arg3: memref<1152x1xf32, #tpu.memory_space<vmem>>, %arg4: memref<1152x49xf32, #tpu.memory_space<vmem>>, %arg5: memref<1152x49xf32, #tpu.memory_space<vmem>>) attributes {dimension_semantics = [#tpu.dimension_semantics<parallel>], iteration_bounds = array<i64: 2>, scalar_prefetch = 0 : i64, scratch_operands = 0 : i64, tpu.core_type = #tpu.core_type<tc>, window_params = [{pipeline_mode = #tpu.pipeline_mode<synchronous>, transform_indices = @transform_0, window_bounds = array<i64: 96, 1>}, {transform_indices = @transform_1, window_bounds = array<i64: 1152, 96>}, {transform_indices = @transform_2, window_bounds = array<i64: 1152, 1>}, {transform_indices = @transform_3, window_bounds = array<i64: 1152, 49>}, {transform_indices = @transform_4, window_bounds = array<i64: 1152, 49>}]} {
    %c0 = arith.constant 0 : index
    %c0_0 = arith.constant 0 : index
    %0 = vector.load %arg2[%c0, %c0_0] : memref<1152x96xf32, #tpu.memory_space<vmem>>, vector<1152x96xf32>
    %c0_1 = arith.constant 0 : index
    %c0_2 = arith.constant 0 : index
    %1 = vector.load %arg1[%c0_1, %c0_2] : memref<96x1xf32, #tpu.memory_space<vmem>>, vector<96x1xf32>
    %cst = arith.constant dense<0.000000e+00> : vector<1152x1xf32>
    %2 = tpu.matmul %0, %1, %cst {dimension_numbers = #tpu.dot_dimension_numbers<[1], [0], [0], [1], [0, 0, 1, 1], [], []>} : vector<1152x96xf32>, vector<96x1xf32>, vector<1152x1xf32> -> vector<1152x1xf32>
    %c0_3 = arith.constant 0 : index
    %c0_4 = arith.constant 0 : index
    %3 = vector.load %arg3[%c0_3, %c0_4] : memref<1152x1xf32, #tpu.memory_space<vmem>>, vector<1152x1xf32>
    %4 = arith.addf %2, %3 : vector<1152x1xf32>
    %cst_5 = arith.constant 0.000000e+00 : f32
    %5 = vector.broadcast %cst_5 : f32 to vector<1152x1xf32>
    %6 = arith.subf %5, %4 : vector<1152x1xf32>
    %7 = math.exp %6 : vector<1152x1xf32>
    %cst_6 = arith.constant 1.000000e+00 : f32
    %8 = vector.broadcast %cst_6 : f32 to vector<1152x1xf32>
    %9 = arith.addf %8, %7 : vector<1152x1xf32>
    %cst_7 = arith.constant 1.000000e+00 : f32
    %10 = vector.broadcast %cst_7 : f32 to vector<1152x1xf32>
    %11 = arith.divf %10, %9 : vector<1152x1xf32>
    %c0_8 = arith.constant 0 : index
    %c0_9 = arith.constant 0 : index
    %12 = vector.load %arg4[%c0_8, %c0_9] : memref<1152x49xf32, #tpu.memory_space<vmem>>, vector<1152x49xf32>
    %13 = vector.broadcast %11 : vector<1152x1xf32> to vector<1152x49xf32>
    %14 = arith.mulf %12, %13 : vector<1152x49xf32>
    %c0_10 = arith.constant 0 : index
    %c0_11 = arith.constant 0 : index
    %15 = vector.load %arg5[%c0_10, %c0_11] : memref<1152x49xf32, #tpu.memory_space<vmem>>, vector<1152x49xf32>
    tpu.vector_store %arg5[%c0_10, %c0_11], %14 {strides = array<i32>} : memref<1152x49xf32, #tpu.memory_space<vmem>>, vector<1152x49xf32>,
    return
  }
  func.func @transform_0(%arg0: i32) -> (i32, i32) {
    %c0_i32 = arith.constant 0 : i32
    %c0_i32_0 = arith.constant 0 : i32
    %c0_i32_1 = arith.constant 0 : i32
    return %c0_i32, %c0_i32_0 : i32, i32
  }
  func.func @transform_1(%arg0: i32) -> (i32, i32) {
    %c0_i32 = arith.constant 0 : i32
    %c0_i32_0 = arith.constant 0 : i32
    return %arg0, %c0_i32 : i32, i32
  }
  func.func @transform_2(%arg0: i32) -> (i32, i32) {
    %c0_i32 = arith.constant 0 : i32
    %c0_i32_0 = arith.constant 0 : i32
    return %arg0, %c0_i32 : i32, i32
  }
  func.func @transform_3(%arg0: i32) -> (i32, i32) {
    %c0_i32 = arith.constant 0 : i32
    %c0_i32_0 = arith.constant 0 : i32
    return %arg0, %c0_i32 : i32, i32
  }
  func.func @transform_4(%arg0: i32) -> (i32, i32) {
    %c0_i32 = arith.constant 0 : i32
    %c0_i32_0 = arith.constant 0 : i32
    return %arg0, %c0_i32 : i32, i32
  }
}

</mosaic_0001>

<bundles_post_ra>
// kernel: tpu_custom_call.1
= control target key start
LH: loop header
LB: loop body
LE: loop exit
PB: predicated region body
PF: predicated region fallthrough
CT: control target
= control target key end

     0   :  { %s5056_s15 = smov 0   ;;  %s6164_s0 = inlined_call_operand.vmem [shape: f32[96,1], index: 0, kind: input, shape index: {}]   ;;  %s6165_s1 = inlined_call_operand.vmem [shape: f32[2304,96], index: 1, kind: input, shape index: {}]   ;;  %s6166_s2 = inlined_call_operand.vmem [shape: f32[2304,1], index: 2, kind: input, shape index: {}]   ;;  %s6167_s3 = inlined_call_operand.vmem [shape: f32[2304,49], index: 3, kind: input, shape index: {}]   ;;  %s6168_s4 = inlined_call_operand.vmem [shape: f32[2304,49], index: 4, kind: output, shape index: {}]  }
   0x1 LB: > { %s3860_s16 = sadd.s32 4294967295, %s5028_s15   ;;  %p3864_p0 = scmp.ge.s32.totalorder %s5028_s15, 1  ;;  %s5028_s15 = sphi %s5056_s15, %s14_s15  }
   0x2   : > { %p185_p1 = scmp.lt.s32.totalorder %s5028_s15, 3 }
   0x4   : > { %p186_p2 = pnand %p3864_p0, %p185_p1 }
   0x5   : > { %s221_s25 = smul.u32 (!%p186_p2), 144, %s3860_s16 }
   0x6   : > { %189 = sbr.rel (%p186_p2) target bundleno = 679 (0x2a7), region = 36 }
   0x7   : > { %p222_p3 = scmp.lt.s32.totalorder (!%p186_p2), %s221_s25, 287 }
   0xb   : > { %v400_v0 = vld [vmem:[%s6164_s0 + $0x58] sm:$0xff]  ;;  %v399_v1 = vld [vmem:[%s6164_s0 + $0x50] sm:$0xff]  ;;  %v398_v2 = vld [vmem:[%s6164_s0 + $0x48] sm:$0xff]  ;;  %s6170_s25 = smov (!%p222_p3, %s221_s25), 287  ;;  %vm545_vm0 = vcmask 785408   ;;  %vm3635_vm1 = vcmask 400384  }
   0xc   : > { %4171 = vmatprep.subr.mxu0 %v400_v0  ;;  %4411 = vmatprep.subr.mxu1 %v400_v0  ;;  %v397_v3 = vld [vmem:[%s6164_s0 + $0x40] sm:$0xff]  ;;  %v396_v4 = vld [vmem:[%s6164_s0 + $0x38] sm:$0xff]  ;;  %v395_v5 = vld [vmem:[%s6164_s0 + $0x30] sm:$0xff]  ;;  %s5094_s12 = sshll.u32 %s6170_s25, 3 }
   0xd   : > { %4172 = vmatpush3.msra.mxu0 %v400_v0  ;;  %4423 = vmatpush3.msra.mxu1 %v400_v0  ;;  %v394_v6 = vld [vmem:[%s6164_s0 + $0x28] sm:$0xff]  ;;  %v393_v7 = vld [vmem:[%s6164_s0 + $0x20] sm:$0xff]  ;;  %v392_v8 = vld [vmem:[%s6164_s0 + $0x18] sm:$0xff]  ;;  %s5103_s18 = scalar_lea.vmem %s6165_s1, %s5094_s12  ;;  %s5400_s23 = scalar_lea.vmem %s6166_s2, %s5094_s12 }
   0xe   : > { %4173 = vmatprep.subr.mxu0 %v399_v1  ;;  %4412 = vmatprep.subr.mxu1 %v399_v1  ;;  %v391_v9 = vld [vmem:[%s6164_s0 + $0x10] sm:$0xff]  ;;  %v390_v10 = vld [vmem:[%s6164_s0 + $0x8] sm:$0xff]  ;;  %v389_v11 = vld [vmem:[%s6164_s0] sm:$0xff]  ;;  %s5520_s26 = scalar_lea.vmem %s6167_s3, %s5094_s12  ;;  %s5545_s29 = scalar_lea.vmem %s6168_s4, %s5094_s12 }
   0xf   : > { %4174 = vmatpush3.msra.mxu0 %v399_v1  ;;  %4424 = vmatpush3.msra.mxu1 %v399_v1  ;;  %v245_v12 = vld [vmem:[%s5103_s18] sm:$0xff]  ;;  %v246_v14 = vld [vmem:[%s5103_s18 + $0x8] sm:$0xff]  ;;  %v247_v16 = vld [vmem:[%s5103_s18 + $0x10] sm:$0xff] }
  0x10   : > { %4175 = vmatprep.subr.mxu0 %v398_v2  ;;  %4413 = vmatprep.subr.mxu1 %v398_v2  ;;  %v317_v13 = vld [vmem:[%s5103_s18 + $0x240] sm:$0xff]  ;;  %v318_v15 = vld [vmem:[%s5103_s18 + $0x248] sm:$0xff]  ;;  %v319_v17 = vld [vmem:[%s5103_s18 + $0x250] sm:$0xff] }
  0x11   : > { %4176 = vmatpush3.msra.mxu0 %v398_v2  ;;  %4425 = vmatpush3.msra.mxu1 %v398_v2  ;;  %v248_v18 = vld [vmem:[%s5103_s18 + $0x18] sm:$0xff]  ;;  %v249_v20 = vld [vmem:[%s5103_s18 + $0x20] sm:$0xff]  ;;  %v250_v22 = vld [vmem:[%s5103_s18 + $0x28] sm:$0xff] }
  0x12   : > { %4177 = vmatprep.subr.mxu0 %v397_v3  ;;  %4414 = vmatprep.subr.mxu1 %v397_v3  ;;  %v320_v19 = vld [vmem:[%s5103_s18 + $0x258] sm:$0xff]  ;;  %v321_v21 = vld [vmem:[%s5103_s18 + $0x260] sm:$0xff]  ;;  %v322_v23 = vld [vmem:[%s5103_s18 + $0x268] sm:$0xff] }
  0x13   : > { %4178 = vmatpush3.msra.mxu0 %v397_v3  ;;  %4426 = vmatpush3.msra.mxu1 %v397_v3  ;;  %v251_v24 = vld [vmem:[%s5103_s18 + $0x30] sm:$0xff]  ;;  %v252_v26 = vld [vmem:[%s5103_s18 + $0x38] sm:$0xff]  ;;  %v253_v28 = vld [vmem:[%s5103_s18 + $0x40] sm:$0xff] }
  0x14   : > { %4179 = vmatprep.subr.mxu0 %v396_v4  ;;  %4415 = vmatprep.subr.mxu1 %v396_v4  ;;  %v323_v25 = vld [vmem:[%s5103_s18 + $0x270] sm:$0xff]  ;;  %v324_v27 = vld [vmem:[%s5103_s18 + $0x278] sm:$0xff]  ;;  %v325_v29 = vld [vmem:[%s5103_s18 + $0x280] sm:$0xff] }
  0x15   : > { %4180 = vmatpush3.msra.mxu0 %v396_v4  ;;  %4427 = vmatpush3.msra.mxu1 %v396_v4  ;;  %v254_v30 = vld [vmem:[%s5103_s18 + $0x48] sm:$0xff]  ;;  %v255_v32 = vld [vmem:[%s5103_s18 + $0x50] sm:$0xff]  ;;  %v256_v34 = vld [vmem:[%s5103_s18 + $0x58] sm:$0xff] }
  0x16   : > { %4181 = vmatprep.subr.mxu0 %v395_v5  ;;  %4416 = vmatprep.subr.mxu1 %v395_v5  ;;  %v326_v31 = vld [vmem:[%s5103_s18 + $0x288] sm:$0xff]  ;;  %v327_v33 = vld [vmem:[%s5103_s18 + $0x290] sm:$0xff]  ;;  %v328_v35 = vld [vmem:[%s5103_s18 + $0x298] sm:$0xff] }
  0x17   : > { %4182 = vmatpush3.msra.mxu0 %v395_v5  ;;  %4428 = vmatpush3.msra.mxu1 %v395_v5  ;;  %v257_v36 = vld [vmem:[%s5103_s18 + $0x60] sm:$0xff]  ;;  %v258_v38 = vld [vmem:[%s5103_s18 + $0x68] sm:$0xff]  ;;  %v259_v40 = vld [vmem:[%s5103_s18 + $0x70] sm:$0xff] }
  0x18   : > { %4183 = vmatprep.subr.mxu0 %v394_v6  ;;  %4417 = vmatprep.subr.mxu1 %v394_v6  ;;  %v329_v37 = vld [vmem:[%s5103_s18 + $0x2a0] sm:$0xff]  ;;  %v330_v39 = vld [vmem:[%s5103_s18 + $0x2a8] sm:$0xff]  ;;  %v331_v41 = vld [vmem:[%s5103_s18 + $0x2b0] sm:$0xff] }
  0x19   : > { %4184 = vmatpush3.msra.mxu0 %v394_v6  ;;  %4429 = vmatpush3.msra.mxu1 %v394_v6  ;;  %v260_v42 = vld [vmem:[%s5103_s18 + $0x78] sm:$0xff]  ;;  %v261_v44 = vld [vmem:[%s5103_s18 + $0x80] sm:$0xff]  ;;  %v262_v46 = vld [vmem:[%s5103_s18 + $0x88] sm:$0xff] }
  0x1a   : > { %4185 = vmatprep.subr.mxu0 %v393_v7  ;;  %4418 = vmatprep.subr.mxu1 %v393_v7  ;;  %v332_v43 = vld [vmem:[%s5103_s18 + $0x2b8] sm:$0xff]  ;;  %v333_v45 = vld [vmem:[%s5103_s18 + $0x2c0] sm:$0xff]  ;;  %v334_v47 = vld [vmem:[%s5103_s18 + $0x2c8] sm:$0xff] }
  0x1b   : > { %4186 = vmatpush3.msra.mxu0 %v393_v7  ;;  %4430 = vmatpush3.msra.mxu1 %v393_v7  ;;  %v263_v48 = vld [vmem:[%s5103_s18 + $0x90] sm:$0xff]  ;;  %v264_v50 = vld [vmem:[%s5103_s18 + $0x98] sm:$0xff]  ;;  %v265_v52 = vld [vmem:[%s5103_s18 + $0xa0] sm:$0xff] }
  0x1c   : > { %4187 = vmatprep.subr.mxu0 %v392_v8  ;;  %4419 = vmatprep.subr.mxu1 %v392_v8  ;;  %v335_v49 = vld [vmem:[%s5103_s18 + $0x2d0] sm:$0xff]  ;;  %v336_v51 = vld [vmem:[%s5103_s18 + $0x2d8] sm:$0xff]  ;;  %v337_v53 = vld [vmem:[%s5103_s18 + $0x2e0] sm:$0xff] }
  0x1d   : > { %4188 = vmatpush3.msra.mxu0 %v392_v8  ;;  %4431 = vmatpush3.msra.mxu1 %v392_v8  ;;  %v266_v54 = vld [vmem:[%s5103_s18 + $0xa8] sm:$0xff]  ;;  %v267_v56 = vld [vmem:[%s5103_s18 + $0xb0] sm:$0xff]  ;;  %v268_v58 = vld [vmem:[%s5103_s18 + $0xb8] sm:$0xff] }
  0x1e   : > { %4189 = vmatprep.subr.mxu0 %v391_v9  ;;  %4420 = vmatprep.subr.mxu1 %v391_v9  ;;  %v338_v55 = vld [vmem:[%s5103_s18 + $0x2e8] sm:$0xff]  ;;  %v339_v57 = vld [vmem:[%s5103_s18 + $0x2f0] sm:$0xff]  ;;  %v340_v59 = vld [vmem:[%s5103_s18 + $0x2f8] sm:$0xff] }
  0x1f   : > { %4190 = vmatpush3.msra.mxu0 %v391_v9  ;;  %4432 = vmatpush3.msra.mxu1 %v391_v9  ;;  %v269_v60 = vld [vmem:[%s5103_s18 + $0xc0] sm:$0xff]  ;;  %v270_v62 = vld [vmem:[%s5103_s18 + $0xc8] sm:$0xff]  ;;  %v271_v0 = vld [vmem:[%s5103_s18 + $0xd0] sm:$0xff] }
  0x20   : > { %4191 = vmatprep.subr.mxu0 %v390_v10  ;;  %4421 = vmatprep.subr.mxu1 %v390_v10  ;;  %v341_v61 = vld [vmem:[%s5103_s18 + $0x300] sm:$0xff]  ;;  %v342_v63 = vld [vmem:[%s5103_s18 + $0x308] sm:$0xff]  ;;  %v343_v1 = vld [vmem:[%s5103_s18 + $0x310] sm:$0xff] }
  0x21   : > { %4192 = vmatpush3.msra.mxu0 %v390_v10  ;;  %4433 = vmatpush3.msra.mxu1 %v390_v10  ;;  %v272_v2 = vld [vmem:[%s5103_s18 + $0xd8] sm:$0xff]  ;;  %v273_v4 = vld [vmem:[%s5103_s18 + $0xe0] sm:$0xff]  ;;  %v274_v6 = vld [vmem:[%s5103_s18 + $0xe8] sm:$0xff] }
  0x22   : > { %4193 = vmatprep.subr.mxu0 %v389_v11  ;;  %4422 = vmatprep.subr.mxu1 %v389_v11  ;;  %v344_v3 = vld [vmem:[%s5103_s18 + $0x318] sm:$0xff]  ;;  %v345_v5 = vld [vmem:[%s5103_s18 + $0x320] sm:$0xff]  ;;  %v346_v7 = vld [vmem:[%s5103_s18 + $0x328] sm:$0xff] }
  0x23   : > { %4194 = vmatpush3.msra.mxu0 %v389_v11  ;;  %4434 = vmatpush3.msra.mxu1 %v389_v11  ;;  %v275_v8 = vld [vmem:[%s5103_s18 + $0xf0] sm:$0xff]  ;;  %v276_v10 = vld [vmem:[%s5103_s18 + $0xf8] sm:$0xff] }
  0x24   : > { %4195 = vmatprep.mubr.msk.f32.mxu0 %vm545_vm0, %v245_v12  ;;  %4303 = vmatprep.mubr.msk.f32.mxu1 %vm545_vm0, %v317_v13  ;;  %v347_v9 = vld [vmem:[%s5103_s18 + $0x330] sm:$0xff]  ;;  %v348_v11 = vld [vmem:[%s5103_s18 + $0x338] sm:$0xff]  ;;  %v277_v12 = vld [vmem:[%s5103_s18 + $0x100] sm:$0xff] }
  0x25   : > { %4196 = vmatmul.mubr.msk.f32.vlgmr.msra.gmra.mxu0 %vm545_vm0, %v246_v14  ;;  %4304 = vmatmul.mubr.msk.f32.vlgmr.msra.gmra.mxu1 %vm545_vm0, %v318_v15  ;;  %v349_v13 = vld [vmem:[%s5103_s18 + $0x340] sm:$0xff]  ;;  %v278_v14 = vld [vmem:[%s5103_s18 + $0x108] sm:$0xff] }
  0x26   : > { %4198 = vmatprep.mubr.msk.f32.mxu0 %vm545_vm0, %v247_v16  ;;  %4306 = vmatprep.mubr.msk.f32.mxu1 %vm545_vm0, %v319_v17  ;;  %v350_v15 = vld [vmem:[%s5103_s18 + $0x348] sm:$0xff]  ;;  %v279_v16 = vld [vmem:[%s5103_s18 + $0x110] sm:$0xff] }
  0x27   : > { %v351_v17 = vld [vmem:[%s5103_s18 + $0x350] sm:$0xff] }
  0x29   : > { %4199 = vmatmul.mubr.msk.f32.gmra.mxu0 %vm545_vm0, %v248_v18  ;;  %4307 = vmatmul.mubr.msk.f32.gmra.mxu1 %vm545_vm0, %v320_v19  ;;  %v280_v18 = vld [vmem:[%s5103_s18 + $0x118] sm:$0xff] }
  0x2a   : > { %4201 = vmatprep.mubr.msk.f32.mxu0 %vm545_vm0, %v249_v20  ;;  %4309 = vmatprep.mubr.msk.f32.mxu1 %vm545_vm0, %v321_v21  ;;  %v352_v19 = vld [vmem:[%s5103_s18 + $0x358] sm:$0xff]  ;;  %v281_v20 = vld [vmem:[%s5103_s18 + $0x120] sm:$0xff] }
  0x2b   : > { %v353_v21 = vld [vmem:[%s5103_s18 + $0x360] sm:$0xff] }
  0x2d   : > { %4202 = vmatmul.mubr.msk.f32.gmra.mxu0 %vm545_vm0, %v250_v22  ;;  %4310 = vmatmul.mubr.msk.f32.gmra.mxu1 %vm545_vm0, %v322_v23  ;;  %v282_v22 = vld [vmem:[%s5103_s18 + $0x128] sm:$0xff] }
  0x2e   : > { %4204 = vmatprep.mubr.msk.f32.mxu0 %vm545_vm0, %v251_v24  ;;  %4312 = vmatprep.mubr.msk.f32.mxu1 %vm545_vm0, %v323_v25  ;;  %v354_v23 = vld [vmem:[%s5103_s18 + $0x368] sm:$0xff]  ;;  %v283_v24 = vld [vmem:[%s5103_s18 + $0x130] sm:$0xff] }
  0x2f   : > { %v355_v25 = vld [vmem:[%s5103_s18 + $0x370] sm:$0xff] }
  0x31   : > { %4205 = vmatmul.mubr.msk.f32.gmra.mxu0 %vm545_vm0, %v252_v26  ;;  %4313 = vmatmul.mubr.msk.f32.gmra.mxu1 %vm545_vm0, %v324_v27  ;;  %v284_v26 = vld [vmem:[%s5103_s18 + $0x138] sm:$0xff] }
  0x32   : > { %4207 = vmatprep.mubr.msk.f32.mxu0 %vm545_vm0, %v253_v28  ;;  %4315 = vmatprep.mubr.msk.f32.mxu1 %vm545_vm0, %v325_v29  ;;  %v356_v27 = vld [vmem:[%s5103_s18 + $0x378] sm:$0xff]  ;;  %v285_v28 = vld [vmem:[%s5103_s18 + $0x140] sm:$0xff] }
  0x33   : > { %v357_v29 = vld [vmem:[%s5103_s18 + $0x380] sm:$0xff] }
  0x35   : > { %4208 = vmatmul.mubr.msk.f32.gmra.mxu0 %vm545_vm0, %v254_v30  ;;  %4316 = vmatmul.mubr.msk.f32.gmra.mxu1 %vm545_vm0, %v326_v31  ;;  %v286_v30 = vld [vmem:[%s5103_s18 + $0x148] sm:$0xff] }
  0x36   : > { %4210 = vmatprep.mubr.msk.f32.mxu0 %vm545_vm0, %v255_v32  ;;  %4318 = vmatprep.mubr.msk.f32.mxu1 %vm545_vm0, %v327_v33  ;;  %v358_v31 = vld [vmem:[%s5103_s18 + $0x388] sm:$0xff]  ;;  %v287_v32 = vld [vmem:[%s5103_s18 + $0x150] sm:$0xff] }
  0x37   : > { %v359_v33 = vld [vmem:[%s5103_s18 + $0x390] sm:$0xff] }
  0x39   : > { %4211 = vmatmul.mubr.msk.f32.gmra.mxu0 %vm545_vm0, %v256_v34  ;;  %4319 = vmatmul.mubr.msk.f32.gmra.mxu1 %vm545_vm0, %v328_v35  ;;  %v288_v34 = vld [vmem:[%s5103_s18 + $0x158] sm:$0xff] }
  0x3a   : > { %4213 = vmatprep.mubr.msk.f32.mxu0 %vm545_vm0, %v257_v36  ;;  %4321 = vmatprep.mubr.msk.f32.mxu1 %vm545_vm0, %v329_v37  ;;  %v360_v35 = vld [vmem:[%s5103_s18 + $0x398] sm:$0xff]  ;;  %v289_v36 = vld [vmem:[%s5103_s18 + $0x160] sm:$0xff] }
  0x3b   : > { %v361_v37 = vld [vmem:[%s5103_s18 + $0x3a0] sm:$0xff] }
  0x3d   : > { %4214 = vmatmul.mubr.msk.f32.gmra.mxu0 %vm545_vm0, %v258_v38  ;;  %4322 = vmatmul.mubr.msk.f32.gmra.mxu1 %vm545_vm0, %v330_v39  ;;  %v290_v38 = vld [vmem:[%s5103_s18 + $0x168] sm:$0xff] }
  0x3e   : > { %4216 = vmatprep.mubr.msk.f32.mxu0 %vm545_vm0, %v259_v40  ;;  %4324 = vmatprep.mubr.msk.f32.mxu1 %vm545_vm0, %v331_v41  ;;  %v362_v39 = vld [vmem:[%s5103_s18 + $0x3a8] sm:$0xff]  ;;  %v291_v40 = vld [vmem:[%s5103_s18 + $0x170] sm:$0xff] }
  0x3f   : > { %v363_v41 = vld [vmem:[%s5103_s18 + $0x3b0] sm:$0xff] }
  0x41   : > { %4217 = vmatmul.mubr.msk.f32.gmra.mxu0 %vm545_vm0, %v260_v42  ;;  %4325 = vmatmul.mubr.msk.f32.gmra.mxu1 %vm545_vm0, %v332_v43  ;;  %v292_v42 = vld [vmem:[%s5103_s18 + $0x178] sm:$0xff] }
  0x42   : > { %4219 = vmatprep.mubr.msk.f32.mxu0 %vm545_vm0, %v261_v44  ;;  %4327 = vmatprep.mubr.msk.f32.mxu1 %vm545_vm0, %v333_v45  ;;  %v364_v43 = vld [vmem:[%s5103_s18 + $0x3b8] sm:$0xff]  ;;  %v293_v44 = vld [vmem:[%s5103_s18 + $0x180] sm:$0xff] }
  0x43   : > { %v365_v45 = vld [vmem:[%s5103_s18 + $0x3c0] sm:$0xff] }
  0x45   : > { %4220 = vmatmul.mubr.msk.f32.gmra.mxu0 %vm545_vm0, %v262_v46  ;;  %4328 = vmatmul.mubr.msk.f32.gmra.mxu1 %vm545_vm0, %v334_v47  ;;  %v294_v46 = vld [vmem:[%s5103_s18 + $0x188] sm:$0xff] }
  0x46   : > { %4222 = vmatprep.mubr.msk.f32.mxu0 %vm545_vm0, %v263_v48  ;;  %4330 = vmatprep.mubr.msk.f32.mxu1 %vm545_vm0, %v335_v49  ;;  %v366_v47 = vld [vmem:[%s5103_s18 + $0x3c8] sm:$0xff]  ;;  %v295_v48 = vld [vmem:[%s5103_s18 + $0x190] sm:$0xff] }
  0x47   : > { %v367_v49 = vld [vmem:[%s5103_s18 + $0x3d0] sm:$0xff] }
  0x49   : > { %4223 = vmatmul.mubr.msk.f32.gmra.mxu0 %vm545_vm0, %v264_v50  ;;  %4331 = vmatmul.mubr.msk.f32.gmra.mxu1 %vm545_vm0, %v336_v51  ;;  %v296_v50 = vld [vmem:[%s5103_s18 + $0x198] sm:$0xff] }
  0x4a   : > { %4225 = vmatprep.mubr.msk.f32.mxu0 %vm545_vm0, %v265_v52  ;;  %4333 = vmatprep.mubr.msk.f32.mxu1 %vm545_vm0, %v337_v53  ;;  %v368_v51 = vld [vmem:[%s5103_s18 + $0x3d8] sm:$0xff]  ;;  %v297_v52 = vld [vmem:[%s5103_s18 + $0x1a0] sm:$0xff] }
  0x4b   : > { %v369_v53 = vld [vmem:[%s5103_s18 + $0x3e0] sm:$0xff] }
  0x4d   : > { %4226 = vmatmul.mubr.msk.f32.gmra.mxu0 %vm545_vm0, %v266_v54  ;;  %4334 = vmatmul.mubr.msk.f32.gmra.mxu1 %vm545_vm0, %v338_v55  ;;  %v298_v54 = vld [vmem:[%s5103_s18 + $0x1a8] sm:$0xff] }
  0x4e   : > { %4228 = vmatprep.mubr.msk.f32.mxu0 %vm545_vm0, %v267_v56  ;;  %4336 = vmatprep.mubr.msk.f32.mxu1 %vm545_vm0, %v339_v57  ;;  %v370_v55 = vld [vmem:[%s5103_s18 + $0x3e8] sm:$0xff]  ;;  %v299_v56 = vld [vmem:[%s5103_s18 + $0x1b0] sm:$0xff] }
  0x4f   : > { %v371_v57 = vld [vmem:[%s5103_s18 + $0x3f0] sm:$0xff] }
  0x51   : > { %4229 = vmatmul.mubr.msk.f32.gmra.mxu0 %vm545_vm0, %v268_v58  ;;  %4337 = vmatmul.mubr.msk.f32.gmra.mxu1 %vm545_vm0, %v340_v59  ;;  %v5030_v58 = vmov 0   ;;  %v300_v59 = vld [vmem:[%s5103_s18 + $0x1b8] sm:$0xff] }
  0x52   : > { %4231 = vmatprep.mubr.msk.f32.mxu0 %vm545_vm0, %v269_v60  ;;  %4339 = vmatprep.mubr.msk.f32.mxu1 %vm545_vm0, %v341_v61  ;;  %v372_v60 = vld [vmem:[%s5103_s18 + $0x3f8] sm:$0xff]  ;;  %v301_v61 = vld [vmem:[%s5103_s18 + $0x1c0] sm:$0xff] }
  0x53   : > { %4445 = vset.pattern.permute.xlu1 %v5030_v58  ;;  %4444 = vset.pattern.permute.xlu0 %v5030_v58  ;;  %v478_v58 = vld [vmem:[%s5400_s23 + $0x268] sm:$0xff] }
  0x55   : > { %4232 = vmatmul.mubr.msk.f32.gmra.mxu0 %vm545_vm0, %v270_v62  ;;  %4340 = vmatmul.mubr.msk.f32.gmra.mxu1 %vm545_vm0, %v342_v63  ;;  %v373_v62 = vld [vmem:[%s5103_s18 + $0x400] sm:$0xff]  ;;  %v302_v63 = vld [vmem:[%s5103_s18 + $0x1c8] sm:$0xff] }
  0x56   : > { %4234 = vmatprep.mubr.msk.f32.mxu0 %vm545_vm0, %v271_v0  ;;  %4342 = vmatprep.mubr.msk.f32.mxu1 %vm545_vm0, %v343_v1  ;;  %v374_v0 = vld [vmem:[%s5103_s18 + $0x408] sm:$0xff]  ;;  %v303_v1 = vld [vmem:[%s5103_s18 + $0x1d0] sm:$0xff] }
  0x59   : > { %4235 = vmatmul.mubr.msk.f32.gmra.mxu0 %vm545_vm0, %v272_v2  ;;  %4343 = vmatmul.mubr.msk.f32.gmra.mxu1 %vm545_vm0, %v344_v3  ;;  %v375_v2 = vld [vmem:[%s5103_s18 + $0x410] sm:$0xff]  ;;  %v304_v3 = vld [vmem:[%s5103_s18 + $0x1d8] sm:$0xff] }
  0x5a   : > { %4237 = vmatprep.mubr.msk.f32.mxu0 %vm545_vm0, %v273_v4  ;;  %4345 = vmatprep.mubr.msk.f32.mxu1 %vm545_vm0, %v345_v5  ;;  %v376_v4 = vld [vmem:[%s5103_s18 + $0x418] sm:$0xff]  ;;  %v305_v5 = vld [vmem:[%s5103_s18 + $0x1e0] sm:$0xff] }
  0x5d   : > { %4238 = vmatmul.mubr.msk.f32.gmra.mxu0 %vm545_vm0, %v274_v6  ;;  %4346 = vmatmul.mubr.msk.f32.gmra.mxu1 %vm545_vm0, %v346_v7  ;;  %v377_v6 = vld [vmem:[%s5103_s18 + $0x420] sm:$0xff]  ;;  %v306_v7 = vld [vmem:[%s5103_s18 + $0x1e8] sm:$0xff] }
  0x5e   : > { %4240 = vmatprep.mubr.msk.f32.mxu0 %vm545_vm0, %v275_v8  ;;  %4348 = vmatprep.mubr.msk.f32.mxu1 %vm545_vm0, %v347_v9  ;;  %v378_v8 = vld [vmem:[%s5103_s18 + $0x428] sm:$0xff]  ;;  %v307_v9 = vld [vmem:[%s5103_s18 + $0x1f0] sm:$0xff] }
  0x61   : > { %4241 = vmatmul.mubr.msk.f32.gmra.mxu0 %vm545_vm0, %v276_v10  ;;  %4349 = vmatmul.mubr.msk.f32.gmra.mxu1 %vm545_vm0, %v348_v11  ;;  %v308_v10 = vld [vmem:[%s5103_s18 + $0x1f8] sm:$0xff]  ;;  %v379_v11 = vld [vmem:[%s5103_s18 + $0x430] sm:$0xff] }
  0x62   : > { %4243 = vmatprep.mubr.msk.f32.mxu0 %vm545_vm0, %v277_v12  ;;  %4351 = vmatprep.mubr.msk.f32.mxu1 %vm545_vm0, %v349_v13  ;;  %v380_v12 = vld [vmem:[%s5103_s18 + $0x438] sm:$0xff]  ;;  %v309_v13 = vld [vmem:[%s5103_s18 + $0x200] sm:$0xff] }
  0x65   : > { %4244 = vmatmul.mubr.msk.f32.gmra.mxu0 %vm545_vm0, %v278_v14  ;;  %4352 = vmatmul.mubr.msk.f32.gmra.mxu1 %vm545_vm0, %v350_v15  ;;  %v310_v14 = vld [vmem:[%s5103_s18 + $0x208] sm:$0xff]  ;;  %v381_v15 = vld [vmem:[%s5103_s18 + $0x440] sm:$0xff] }
  0x66   : > { %4246 = vmatprep.mubr.msk.f32.mxu0 %vm545_vm0, %v279_v16  ;;  %4354 = vmatprep.mubr.msk.f32.mxu1 %vm545_vm0, %v351_v17  ;;  %v382_v16 = vld [vmem:[%s5103_s18 + $0x448] sm:$0xff]  ;;  %v311_v17 = vld [vmem:[%s5103_s18 + $0x210] sm:$0xff] }
  0x69   : > { %4247 = vmatmul.mubr.msk.f32.gmra.mxu0 %vm545_vm0, %v280_v18  ;;  %4355 = vmatmul.mubr.msk.f32.gmra.mxu1 %vm545_vm0, %v352_v19  ;;  %v312_v18 = vld [vmem:[%s5103_s18 + $0x218] sm:$0xff]  ;;  %v383_v19 = vld [vmem:[%s5103_s18 + $0x450] sm:$0xff] }
  0x6a   : > { %4249 = vmatprep.mubr.msk.f32.mxu0 %vm545_vm0, %v281_v20  ;;  %4357 = vmatprep.mubr.msk.f32.mxu1 %vm545_vm0, %v353_v21  ;;  %v384_v20 = vld [vmem:[%s5103_s18 + $0x458] sm:$0xff]  ;;  %v313_v21 = vld [vmem:[%s5103_s18 + $0x220] sm:$0xff] }
  0x6d   : > { %4250 = vmatmul.mubr.msk.f32.gmra.mxu0 %vm545_vm0, %v282_v22  ;;  %4358 = vmatmul.mubr.msk.f32.gmra.mxu1 %vm545_vm0, %v354_v23  ;;  %v314_v22 = vld [vmem:[%s5103_s18 + $0x228] sm:$0xff]  ;;  %v385_v23 = vld [vmem:[%s5103_s18 + $0x460] sm:$0xff] }
  0x6e   : > { %4252 = vmatprep.mubr.msk.f32.mxu0 %vm545_vm0, %v283_v24  ;;  %4360 = vmatprep.mubr.msk.f32.mxu1 %vm545_vm0, %v355_v25  ;;  %v386_v24 = vld [vmem:[%s5103_s18 + $0x468] sm:$0xff]  ;;  %v315_v25 = vld [vmem:[%s5103_s18 + $0x230] sm:$0xff] }
  0x71   : > { %4253 = vmatmul.mubr.msk.f32.gmra.mxu0 %vm545_vm0, %v284_v26  ;;  %4361 = vmatmul.mubr.msk.f32.gmra.mxu1 %vm545_vm0, %v356_v27  ;;  %v316_v26 = vld [vmem:[%s5103_s18 + $0x238] sm:$0xff]  ;;  %v387_v27 = vld [vmem:[%s5103_s18 + $0x470] sm:$0xff] }
  0x72   : > { %4255 = vmatprep.mubr.msk.f32.mxu0 %vm545_vm0, %v285_v28  ;;  %4363 = vmatprep.mubr.msk.f32.mxu1 %vm545_vm0, %v357_v29  ;;  %v388_v28 = vld [vmem:[%s5103_s18 + $0x478] sm:$0xff]  ;;  %v402_v29 = vld [vmem:[%s5400_s23 + $0x8] sm:$0xff] }
  0x75   : > { %4256 = vmatmul.mubr.msk.f32.gmra.mxu0 %vm545_vm0, %v286_v30  ;;  %4364 = vmatmul.mubr.msk.f32.gmra.mxu1 %vm545_vm0, %v358_v31  ;;  %v474_v30 = vld [vmem:[%s5400_s23 + $0x248] sm:$0xff] }
  0x76   : > { %4258 = vmatprep.mubr.msk.f32.mxu0 %vm545_vm0, %v287_v32  ;;  %4366 = vmatprep.mubr.msk.f32.mxu1 %vm545_vm0, %v359_v33  ;;  %v401_v33 = vld [vmem:[%s5400_s23] sm:$0xff] }
  0x79   : > { %4259 = vmatmul.mubr.msk.f32.gmra.mxu0 %vm545_vm0, %v288_v34  ;;  %4367 = vmatmul.mubr.msk.f32.gmra.mxu1 %vm545_vm0, %v360_v35  ;;  %v473_v34 = vld [vmem:[%s5400_s23 + $0x240] sm:$0xff] }
  0x7a   : > { %4261 = vmatprep.mubr.msk.f32.mxu0 %vm545_vm0, %v289_v36  ;;  %4369 = vmatprep.mubr.msk.f32.mxu1 %vm545_vm0, %v361_v37 }
  0x7d   : > { %4262 = vmatmul.mubr.msk.f32.gmra.mxu0 %vm545_vm0, %v290_v38  ;;  %4370 = vmatmul.mubr.msk.f32.gmra.mxu1 %vm545_vm0, %v362_v39 }
  0x7e   : > { %4264 = vmatprep.mubr.msk.f32.mxu0 %vm545_vm0, %v291_v40  ;;  %4372 = vmatprep.mubr.msk.f32.mxu1 %vm545_vm0, %v363_v41 }
  0x81   : > { %4265 = vmatmul.mubr.msk.f32.gmra.mxu0 %vm545_vm0, %v292_v42  ;;  %4373 = vmatmul.mubr.msk.f32.gmra.mxu1 %vm545_vm0, %v364_v43  ;;  %v404_v43 = vld [vmem:[%s5400_s23 + $0x18] sm:$0xff] }
  0x82   : > { %4267 = vmatprep.mubr.msk.f32.mxu0 %vm545_vm0, %v293_v44  ;;  %4375 = vmatprep.mubr.msk.f32.mxu1 %vm545_vm0, %v365_v45  ;;  %v476_v44 = vld [vmem:[%s5400_s23 + $0x258] sm:$0xff] }
  0x85   : > { %4268 = vmatmul.mubr.msk.f32.gmra.mxu0 %vm545_vm0, %v294_v46  ;;  %4376 = vmatmul.mubr.msk.f32.gmra.mxu1 %vm545_vm0, %v366_v47  ;;  %v403_v46 = vld [vmem:[%s5400_s23 + $0x10] sm:$0xff] }
  0x86   : > { %4270 = vmatprep.mubr.msk.f32.mxu0 %vm545_vm0, %v295_v48  ;;  %4378 = vmatprep.mubr.msk.f32.mxu1 %vm545_vm0, %v367_v49  ;;  %v475_v48 = vld [vmem:[%s5400_s23 + $0x250] sm:$0xff] }
  0x89   : > { %4271 = vmatmul.mubr.msk.f32.gmra.mxu0 %vm545_vm0, %v296_v50  ;;  %4379 = vmatmul.mubr.msk.f32.gmra.mxu1 %vm545_vm0, %v368_v51 }
  0x8a   : > { %4273 = vmatprep.mubr.msk.f32.mxu0 %vm545_vm0, %v297_v52  ;;  %4381 = vmatprep.mubr.msk.f32.mxu1 %vm545_vm0, %v369_v53 }
  0x8d   : > { %4274 = vmatmul.mubr.msk.f32.gmra.mxu0 %vm545_vm0, %v298_v54  ;;  %4382 = vmatmul.mubr.msk.f32.gmra.mxu1 %vm545_vm0, %v370_v55 }
  0x8e   : > { %4276 = vmatprep.mubr.msk.f32.mxu0 %vm545_vm0, %v299_v56  ;;  %4384 = vmatprep.mubr.msk.f32.mxu1 %vm545_vm0, %v371_v57  ;;  %v406_v57 = vld [vmem:[%s5400_s23 + $0x28] sm:$0xff] }
  0x91   : > { %4277 = vmatmul.mubr.msk.f32.gmra.mxu0 %vm545_vm0, %v300_v59  ;;  %4385 = vmatmul.mubr.msk.f32.gmra.mxu1 %vm545_vm0, %v372_v60 }
  0x92   : > { %4279 = vmatprep.mubr.msk.f32.mxu0 %vm545_vm0, %v301_v61  ;;  %4387 = vmatprep.mubr.msk.f32.mxu1 %vm545_vm0, %v373_v62 }
  0x95   : > { %4280 = vmatmul.mubr.msk.f32.gmra.mxu0 %vm545_vm0, %v302_v63  ;;  %4388 = vmatmul.mubr.msk.f32.gmra.mxu1 %vm545_vm0, %v374_v0 }
  0x96   : > { %4282 = vmatprep.mubr.msk.f32.mxu0 %vm545_vm0, %v303_v1  ;;  %4390 = vmatprep.mubr.msk.f32.mxu1 %vm545_vm0, %v375_v2  ;;  %v405_v2 = vld [vmem:[%s5400_s23 + $0x20] sm:$0xff] }
  0x99   : > { %4283 = vmatmul.mubr.msk.f32.gmra.mxu0 %vm545_vm0, %v304_v3  ;;  %4391 = vmatmul.mubr.msk.f32.gmra.mxu1 %vm545_vm0, %v376_v4 }
  0x9a   : > { %4285 = vmatprep.mubr.msk.f32.mxu0 %vm545_vm0, %v305_v5  ;;  %4393 = vmatprep.mubr.msk.f32.mxu1 %vm545_vm0, %v377_v6 }
  0x9d   : > { %4286 = vmatmul.mubr.msk.f32.gmra.mxu0 %vm545_vm0, %v306_v7  ;;  %4394 = vmatmul.mubr.msk.f32.gmra.mxu1 %vm545_vm0, %v378_v8  ;;  %v477_v7 = vld [vmem:[%s5400_s23 + $0x260] sm:$0xff] }
  0x9e   : > { %4288 = vmatprep.mubr.msk.f32.mxu0 %vm545_vm0, %v307_v9  ;;  %4396 = vmatprep.mubr.msk.f32.mxu1 %vm545_vm0, %v379_v11 }
  0xa1   : > { %4289 = vmatmul.mubr.msk.f32.gmra.mxu0 %vm545_vm0, %v308_v10  ;;  %4397 = vmatmul.mubr.msk.f32.gmra.mxu1 %vm545_vm0, %v380_v12 }
  0xa2   : > { %4291 = vmatprep.mubr.msk.f32.mxu0 %vm545_vm0, %v309_v13  ;;  %4399 = vmatprep.mubr.msk.f32.mxu1 %vm545_vm0, %v381_v15 }
  0xa5   : > { %4292 = vmatmul.mubr.msk.f32.gmra.mxu0 %vm545_vm0, %v310_v14  ;;  %4400 = vmatmul.mubr.msk.f32.gmra.mxu1 %vm545_vm0, %v382_v16 }
  0xa6   : > { %4294 = vmatprep.mubr.msk.f32.mxu0 %vm545_vm0, %v311_v17  ;;  %4402 = vmatprep.mubr.msk.f32.mxu1 %vm545_vm0, %v383_v19  ;;  %v408_v17 = vld [vmem:[%s5400_s23 + $0x38] sm:$0xff] }
  0xa9   : > { %4295 = vmatmul.mubr.msk.f32.gmra.mxu0 %vm545_vm0, %v312_v18  ;;  %4403 = vmatmul.mubr.msk.f32.gmra.mxu1 %vm545_vm0, %v384_v20  ;;  %v480_v18 = vld [vmem:[%s5400_s23 + $0x278] sm:$0xff] }
  0xaa   : > { %4297 = vmatprep.mubr.msk.f32.mxu0 %vm545_vm0, %v313_v21  ;;  %4405 = vmatprep.mubr.msk.f32.mxu1 %vm545_vm0, %v385_v23 }
  0xad   : > { %4298 = vmatmul.mubr.msk.f32.gmra.mxu0 %vm545_vm0, %v314_v22  ;;  %4406 = vmatmul.mubr.msk.f32.gmra.mxu1 %vm545_vm0, %v386_v24  ;;  %v407_v22 = vld [vmem:[%s5400_s23 + $0x30] sm:$0xff] }
  0xae   : > { %4300 = vmatprep.mubr.msk.f32.mxu0 %vm545_vm0, %v315_v25  ;;  %4408 = vmatprep.mubr.msk.f32.mxu1 %vm545_vm0, %v387_v27  ;;  %v479_v24 = vld [vmem:[%s5400_s23 + $0x270] sm:$0xff] }
  0xb1   : > { %4301 = vmatmul.mubr.msk.f32.gmra.mxu0 %vm545_vm0, %v316_v26  ;;  %4409 = vmatmul.mubr.msk.f32.gmra.mxu1 %vm545_vm0, %v388_v28 }
  0xe5   : > { %v4197_v31 = vpop.f32.mrf.mxu0  ;;  %v4305_v32 = vpop.f32.mrf.mxu1 }
  0xe6   : > { %v1050_v35 = vadd.f32 %v4197_v31, %v402_v29  ;;  %v1410_v36 = vadd.f32 %v4305_v32, %v474_v30 }
  0xe7   : > { %v1044_v37 = vpop.f32.mrf.mxu0  ;;  %v1404_v38 = vpop.f32.mrf.mxu1 }
  0xe8   : > { %v1764_v39 = vsub.f32 0.0, %v1050_v35  ;;  %v1836_v40 = vsub.f32 0.0, %v1410_v36  ;;  %v1045_v41 = vadd.f32 %v1044_v37, %v401_v33  ;;  %v1405_v42 = vadd.f32 %v1404_v38, %v473_v34 }
  0xe9   : > { %v4200_v45 = vpop.f32.mrf.mxu0  ;;  %v4308_v47 = vpop.f32.mrf.mxu1 }
  0xea   : > { %v1909_v49 = vmul.f32 1.442695, %v1764_v39  ;;  %v2053_v50 = vmul.f32 1.442695, %v1836_v40  ;;  %v1763_v51 = vsub.f32 0.0, %v1045_v41  ;;  %v1835_v52 = vsub.f32 0.0, %v1405_v42 }
  0xeb   : > { %v1060_v53 = vadd.f32 %v4200_v45, %v404_v43  ;;  %v1054_v54 = vpop.f32.mrf.mxu0  ;;  %v1420_v55 = vadd.f32 %v4308_v47, %v476_v44  ;;  %v1414_v56 = vpop.f32.mrf.mxu1 }
  0xec   : > { %4446 = vpow2.f32 %v1909_v49  ;;  %v1907_v59 = vmul.f32 1.442695, %v1763_v51  ;;  %v2051_v60 = vmul.f32 1.442695, %v1835_v52  ;;  %v1055_v61 = vadd.f32 %v1054_v54, %v403_v46  ;;  %v410_v52 = vld [vmem:[%s5400_s23 + $0x48] sm:$0xff] }
  0xed   : > { %4448 = vpow2.f32 %v2053_v50  ;;  %v1766_v62 = vsub.f32 0.0, %v1060_v53  ;;  %v1838_v63 = vsub.f32 0.0, %v1420_v55  ;;  %v1415_v0 = vadd.f32 %v1414_v56, %v475_v48  ;;  %v4203_v1 = vpop.f32.mrf.mxu0  ;;  %v4311_v3 = vpop.f32.mrf.mxu1 }
  0xee   : > { %4450 = vpow2.f32 %v1907_v59  ;;  %v1765_v4 = vsub.f32 0.0, %v1055_v61  ;;  %v1070_v5 = vadd.f32 %v4203_v1, %v406_v57  ;;  %v1430_v6 = vadd.f32 %v4311_v3, %v478_v58  ;;  %v409_v58 = vld [vmem:[%s5400_s23 + $0x40] sm:$0xff] }
  0xef   : > { %4452 = vpow2.f32 %v2051_v60  ;;  %v1913_v8 = vmul.f32 1.442695, %v1766_v62  ;;  %v2057_v9 = vmul.f32 1.442695, %v1838_v63  ;;  %v1837_v10 = vsub.f32 0.0, %v1415_v0  ;;  %v1064_v11 = vpop.f32.mrf.mxu0  ;;  %v1424_v12 = vpop.f32.mrf.mxu1  ;;  %v482_v62 = vld [vmem:[%s5400_s23 + $0x288] sm:$0xff] }
  0xf0   : > { %v1911_v13 = vmul.f32 1.442695, %v1765_v4  ;;  %v1768_v14 = vsub.f32 0.0, %v1070_v5  ;;  %v1065_v15 = vadd.f32 %v1064_v11, %v405_v2  ;;  %v1840_v16 = vsub.f32 0.0, %v1430_v6  ;;  %v481_v1 = vld [vmem:[%s5400_s23 + $0x280] sm:$0xff] }
  0xf1   : > { %4454 = vpow2.f32 %v1913_v8  ;;  %v2055_v19 = vmul.f32 1.442695, %v1837_v10  ;;  %v1425_v20 = vadd.f32 %v1424_v12, %v477_v7  ;;  %v4206_v21 = vpop.f32.mrf.mxu0  ;;  %v4314_v23 = vpop.f32.mrf.mxu1  ;;  %v412_v7 = vld [vmem:[%s5400_s23 + $0x58] sm:$0xff] }
  0xf2   : > { %4456 = vpow2.f32 %v1911_v13  ;;  %v1917_v25 = vmul.f32 1.442695, %v1768_v14  ;;  %v1767_v26 = vsub.f32 0.0, %v1065_v15  ;;  %v2061_v27 = vmul.f32 1.442695, %v1840_v16  ;;  %v411_v16 = vld [vmem:[%s5400_s23 + $0x50] sm:$0xff] }
  0xf3   : > { %4458 = vpow2.f32 %v2057_v9  ;;  %v1839_v28 = vsub.f32 0.0, %v1425_v20  ;;  %v1080_v29 = vadd.f32 %v4206_v21, %v408_v17  ;;  %v1074_v30 = vpop.f32.mrf.mxu0  ;;  %v1440_v31 = vadd.f32 %v4314_v23, %v480_v18  ;;  %v1434_v32 = vpop.f32.mrf.mxu1 }
  0xf4   : > { %4460 = vpow2.f32 %v2055_v19  ;;  %v1915_v33 = vmul.f32 1.442695, %v1767_v26  ;;  %v1075_v34 = vadd.f32 %v1074_v30, %v407_v22  ;;  %v1435_v35 = vadd.f32 %v1434_v32, %v479_v24  ;;  %v484_v24 = vld [vmem:[%s5400_s23 + $0x298] sm:$0xff] }
  0xf5   : > { %4462 = vpow2.f32 %v1917_v25  ;;  %v2059_v36 = vmul.f32 1.442695, %v1839_v28  ;;  %v1770_v37 = vsub.f32 0.0, %v1080_v29  ;;  %v1842_v38 = vsub.f32 0.0, %v1440_v31  ;;  %v4209_v39 = vpop.f32.mrf.mxu0  ;;  %v4317_v47 = vpop.f32.mrf.mxu1  ;;  %v483_v29 = vld [vmem:[%s5400_s23 + $0x290] sm:$0xff] }
  0xf6   : > { %4464 = vpow2.f32 %v1915_v33  ;;  %v1769_v40 = vsub.f32 0.0, %v1075_v34  ;;  %v1841_v44 = vsub.f32 0.0, %v1435_v35  ;;  %v1090_v61 = vadd.f32 %v4209_v39, %v410_v52 }
  0xf7   : > { %4466 = vpow2.f32 %v2061_v27  ;;  %v1921_v41 = vmul.f32 1.442695, %v1770_v37  ;;  %v2065_v42 = vmul.f32 1.442695, %v1842_v38  ;;  %v1084_v46 = vpop.f32.mrf.mxu0  ;;  %v1444_v59 = vpop.f32.mrf.mxu1  ;;  %v1450_v10 = vadd.f32 %v4317_v47, %v482_v62  ;;  %v486_v47 = vld [vmem:[%s5400_s23 + $0x2a8] sm:$0xff] }
  0xf8   : > { %4468 = vpow2.f32 %v2059_v36  ;;  %v1919_v43 = vmul.f32 1.442695, %v1769_v40  ;;  %v2063_v56 = vmul.f32 1.442695, %v1841_v44  ;;  %v1085_v6 = vadd.f32 %v1084_v46, %v409_v58  ;;  %v414_v36 = vld [vmem:[%s5400_s23 + $0x68] sm:$0xff] }
  0xf9   : > { %v4447_v45 = vpop.eup %4446  ;;  %4470 = vpow2.f32 %v1921_v41  ;;  %v4212_v53 = vpop.f32.mrf.mxu0  ;;  %v1772_v14 = vsub.f32 0.0, %v1090_v61  ;;  %v1445_v15 = vadd.f32 %v1444_v59, %v481_v1  ;;  %v1844_v27 = vsub.f32 0.0, %v1450_v10  ;;  %v413_v41 = vld [vmem:[%s5400_s23 + $0x60] sm:$0xff] }
  0xfa   : > { %v4449_v48 = vpop.eup %4448  ;;  %v2196_v49 = vadd.f32 1.0, %v4447_v45  ;;  %4472 = vpow2.f32 %v1919_v43  ;;  %v4320_v3 = vpop.f32.mrf.mxu1  ;;  %v1100_v19 = vadd.f32 %v4212_v53, %v412_v7  ;;  %v1771_v23 = vsub.f32 0.0, %v1085_v6  ;;  %v485_v53 = vld [vmem:[%s5400_s23 + $0x2a0] sm:$0xff] }
  0xfb   : > { %v4451_v50 = vpop.eup %4450  ;;  %v2268_v51 = vadd.f32 1.0, %v4449_v48  ;;  %4474 = vpow2.f32 %v2065_v42  ;;  %v1094_v2 = vpop.f32.mrf.mxu0  ;;  %v1925_v34 = vmul.f32 1.442695, %v1772_v14  ;;  %v1843_v35 = vsub.f32 0.0, %v1445_v15 }
  0xfc   : > { %v4453_v54 = vpop.eup %4452  ;;  %4476 = vrcp.f32 %v2196_v49  ;;  %v2195_v55 = vadd.f32 1.0, %v4451_v50  ;;  %v1454_v20 = vpop.f32.mrf.mxu1  ;;  %v1095_v28 = vadd.f32 %v1094_v2, %v411_v16  ;;  %v1774_v39 = vsub.f32 0.0, %v1100_v19 }
  0xfd   : > { %4478 = vrcp.f32 %v2268_v51  ;;  %v2267_v57 = vadd.f32 1.0, %v4453_v54  ;;  %v4215_v11 = vpop.f32.mrf.mxu0  ;;  %v1460_v40 = vadd.f32 %v4320_v3, %v484_v24  ;;  %v1923_v45 = vmul.f32 1.442695, %v1771_v23 }
  0xfe   : > { %v4455_v60 = vpop.eup %4454  ;;  %4480 = vrcp.f32 %v2195_v55  ;;  %v4323_v31 = vpop.f32.mrf.mxu1  ;;  %v1455_v46 = vadd.f32 %v1454_v20, %v483_v29  ;;  %v1773_v50 = vsub.f32 0.0, %v1095_v28  ;;  %v1110_v51 = vadd.f32 %v4215_v11, %v414_v36 }
  0xff   : > { %v4457_v63 = vpop.eup %4456  ;;  %4482 = vrcp.f32 %v2267_v57  ;;  %v2198_v0 = vadd.f32 1.0, %v4455_v60  ;;  %v1104_v30 = vpop.f32.mrf.mxu0  ;;  %v2069_v55 = vmul.f32 1.442695, %v1844_v27  ;;  %v416_v57 = vld [vmem:[%s5400_s23 + $0x78] sm:$0xff]  ;;  %v2067_v59 = vmul.f32 1.442695, %v1843_v35 }
 0x100   : > { %v4459_v4 = vpop.eup %4458  ;;  %v2197_v5 = vadd.f32 1.0, %v4457_v63  ;;  %4484 = vpow2.f32 %v2063_v56  ;;  %v1464_v52 = vpop.f32.mrf.mxu1  ;;  %v1105_v56 = vadd.f32 %v1104_v30, %v413_v41  ;;  %v1846_v60 = vsub.f32 0.0, %v1460_v40  ;;  %v415_v63 = vld [vmem:[%s5400_s23 + $0x70] sm:$0xff] }
 0x101   : > { %v4461_v8 = vpop.eup %4460  ;;  %4486 = vrcp.f32 %v2198_v0  ;;  %v2270_v9 = vadd.f32 1.0, %v4459_v4  ;;  %v4218_v42 = vpop.f32.mrf.mxu0  ;;  %v1470_v61 = vadd.f32 %v4323_v31, %v486_v47  ;;  %v1929_v1 = vmul.f32 1.442695, %v1774_v39  ;;  %v488_v4 = vld [vmem:[%s5400_s23 + $0x2b8] sm:$0xff] }
 0x102   : > { %v4463_v12 = vpop.eup %4462  ;;  %4488 = vrcp.f32 %v2197_v5  ;;  %v2269_v13 = vadd.f32 1.0, %v4461_v8  ;;  %v1845_v2 = vsub.f32 0.0, %v1455_v46  ;;  %v1465_v3 = vadd.f32 %v1464_v52, %v485_v53  ;;  %v417_v52 = vld [vmem:[%s5400_s23 + $0x80] sm:$0xff] }
 0x103   : > { %v4465_v17 = vpop.eup %4464  ;;  %4490 = vrcp.f32 %v2270_v9  ;;  %v2200_v18 = vadd.f32 1.0, %v4463_v12  ;;  %v1114_v62 = vpop.f32.mrf.mxu0  ;;  %v1927_v6 = vmul.f32 1.442695, %v1773_v50  ;;  %v1776_v7 = vsub.f32 0.0, %v1110_v51 }
 0x104   : > { %v4467_v21 = vpop.eup %4466  ;;  %4492 = vrcp.f32 %v2269_v13  ;;  %v2199_v22 = vadd.f32 1.0, %v4465_v17  ;;  %v1120_v8 = vadd.f32 %v4218_v42, %v416_v57  ;;  %v4326_v9 = vpop.f32.mrf.mxu1  ;;  %v1775_v12 = vsub.f32 0.0, %v1105_v56 }
 0x105   : > { %v4469_v25 = vpop.eup %4468  ;;  %4494 = vrcp.f32 %v2200_v18  ;;  %v2272_v26 = vadd.f32 1.0, %v4467_v21  ;;  %v1115_v13 = vadd.f32 %v1114_v62, %v415_v63  ;;  %v2073_v15 = vmul.f32 1.442695, %v1846_v60 }
 0x106   : > { %v4471_v32 = vpop.eup %4470  ;;  %4496 = vrcp.f32 %v2199_v22  ;;  %v2271_v33 = vadd.f32 1.0, %v4469_v25  ;;  %v1848_v16 = vsub.f32 0.0, %v1470_v61  ;;  %v1480_v17 = vadd.f32 %v4326_v9, %v488_v4  ;;  %v1474_v24 = vpop.f32.mrf.mxu1  ;;  %v487_v25 = vld [vmem:[%s5400_s23 + $0x2b0] sm:$0xff] }
 0x107   : > { %v4473_v37 = vpop.eup %4472  ;;  %4498 = vrcp.f32 %v2272_v26  ;;  %v2202_v38 = vadd.f32 1.0, %v4471_v32  ;;  %v2071_v19 = vmul.f32 1.442695, %v1845_v2  ;;  %v1847_v20 = vsub.f32 0.0, %v1465_v3 }
 0x108   : > { %v4475_v43 = vpop.eup %4474  ;;  %4500 = vrcp.f32 %v2271_v33  ;;  %v2201_v44 = vadd.f32 1.0, %v4473_v37  ;;  %v1933_v22 = vmul.f32 1.442695, %v1776_v7  ;;  %v1778_v23 = vsub.f32 0.0, %v1120_v8  ;;  %v4221_v37 = vpop.f32.mrf.mxu0 }
 0x109   : > { %v4477_v48 = vpop.eup %4476  ;;  %4502 = vrcp.f32 %v2202_v38  ;;  %v2274_v49 = vadd.f32 1.0, %v4475_v43  ;;  %v1931_v27 = vmul.f32 1.442695, %v1775_v12  ;;  %v1777_v28 = vsub.f32 0.0, %v1115_v13  ;;  %v4329_v46 = vpop.f32.mrf.mxu1 }
 0x10a   : > { %v4479_v54 = vpop.eup %4478  ;;  %4504 = vrcp.f32 %v2201_v44  ;;  %2778 = vperm.xlu0 %4444, %v4477_v48   ;;  %v2077_v30 = vmul.f32 1.442695, %v1848_v16  ;;  %v1850_v31 = vsub.f32 0.0, %v1480_v17  ;;  %v2075_v33 = vmul.f32 1.442695, %v1847_v20  ;;  %v419_v16 = vld [vmem:[%s5400_s23 + $0x90] sm:$0xff] }
 0x10b   : > { %v4481_v58 = vpop.eup %4480  ;;  %4506 = vrcp.f32 %v2274_v49  ;;  %3138 = vperm.xlu1 %4445, %v4479_v54   ;;  %v1937_v36 = vmul.f32 1.442695, %v1778_v23  ;;  %v1935_v39 = vmul.f32 1.442695, %v1777_v28  ;;  %v418_v49 = vld [vmem:[%s5400_s23 + $0x88] sm:$0xff]  ;;  %v1484_v60 = vpop.f32.mrf.mxu1 }
 0x10c   : > { %v4483_v0 = vpop.eup %4482  ;;  %4508 = vpow2.f32 %v1925_v34  ;;  %v1475_v34 = vadd.f32 %v1474_v24, %v487_v25  ;;  %v2081_v41 = vmul.f32 1.442695, %v1850_v31  ;;  %v492_v24 = vld [vmem:[%s5400_s23 + $0x2d8] sm:$0xff] }
 0x10d   : > { %v4485_v5 = vpop.eup %4484  ;;  %4510 = vpow2.f32 %v1923_v45  ;;  %v1124_v45 = vpop.f32.mrf.mxu0 }
 0x10e   : > { %v4487_v10 = vpop.eup %4486  ;;  %v2273_v11 = vadd.f32 1.0, %v4485_v5  ;;  %4512 = vpow2.f32 %v2069_v55  ;;  %2773 = vperm.xlu0 %4444, %v4481_v58   ;;  %v1849_v43 = vsub.f32 0.0, %v1475_v34  ;;  %v1125_v62 = vadd.f32 %v1124_v45, %v417_v52  ;;  %v4332_v3 = vpop.f32.mrf.mxu1 }
 0x10f   : > { %v4489_v14 = vpop.eup %4488  ;;  %4514 = vpow2.f32 %v2067_v59  ;;  %2788 = vperm.xlu1 %4445, %v4487_v10   ;;  %v4224_v53 = vpop.f32.mrf.mxu0  ;;  %v1130_v59 = vadd.f32 %v4221_v37, %v418_v49  ;;  %v420_v10 = vld [vmem:[%s5400_s23 + $0x98] sm:$0xff] }
 0x110   : > { %v4491_v18 = vpop.eup %4490  ;;  %4516 = vrcp.f32 %v2273_v11  ;;  %v2079_v56 = vmul.f32 1.442695, %v1849_v43  ;;  %v1494_v20 = vpop.f32.mrf.mxu1  ;;  %v1140_v23 = vadd.f32 %v4224_v53, %v420_v10 }
 0x111   : > { %v4493_v21 = vpop.eup %4492  ;;  %4518 = vpow2.f32 %v1929_v1  ;;  %v490_v1 = vld [vmem:[%s5400_s23 + $0x2c8] sm:$0xff]  ;;  %v1134_v2 = vpop.f32.mrf.mxu0  ;;  %v1780_v9 = vsub.f32 0.0, %v1130_v59 }
 0x112   : > { %v4495_v26 = vpop.eup %4494  ;;  %4520 = vpow2.f32 %v1927_v6  ;;  %3133 = vperm.xlu0 %4444, %v4483_v0   ;;  %v489_v6 = vld [vmem:[%s5400_s23 + $0x2c0] sm:$0xff]  ;;  %v1135_v28 = vadd.f32 %v1134_v2, %v419_v16  ;;  %v4335_v31 = vpop.f32.mrf.mxu1 }
 0x113   : > { %v4497_v29 = vpop.eup %4496  ;;  %4522 = vpow2.f32 %v2073_v15  ;;  %3148 = vperm.xlu1 %4445, %v4491_v18   ;;  %v4227_v11 = vpop.f32.mrf.mxu0  ;;  %v1490_v15 = vadd.f32 %v4329_v46, %v490_v1  ;;  %v1782_v46 = vsub.f32 0.0, %v1140_v23 }
 0x114   : > { %v4499_v32 = vpop.eup %4498  ;;  %4524 = vpow2.f32 %v2071_v19  ;;  %v1485_v19 = vadd.f32 %v1484_v60, %v489_v6  ;;  %v1504_v53 = vpop.f32.mrf.mxu1 }
 0x115   : > { %v4501_v35 = vpop.eup %4500  ;;  %4526 = vpow2.f32 %v1933_v22  ;;  %v1945_v1 = vmul.f32 1.442695, %v1782_v46 }
 0x116   : > { %v5434_v38 = vpop.eup %4502  ;;  %4528 = vpow2.f32 %v1931_v27  ;;  %3143 = vperm.xlu0 %4444, %v4493_v21   ;;  %v1941_v27 = vmul.f32 1.442695, %v1780_v9  ;;  %v4338_v9 = vpop.f32.mrf.mxu1 }
 0x117   : > { %v4505_v40 = vpop.eup %4504  ;;  %4530 = vpow2.f32 %v2077_v30  ;;  %2783 = vperm.xlu1 %4445, %v4489_v14   ;;  %v1779_v14 = vsub.f32 0.0, %v1125_v62  ;;  %v1144_v30 = vpop.f32.mrf.mxu0 }
 0x118   : > { %v5436_v42 = vpop.eup %4506  ;;  %4532 = vpow2.f32 %v2075_v33 }
 0x119   : > { %v4509_v44 = vpop.eup %4508  ;;  %4534 = vpow2.f32 %v1937_v36  ;;  %v1939_v34 = vmul.f32 1.442695, %v1779_v14  ;;  %v422_v36 = vld [vmem:[%s5400_s23 + $0xa8] sm:$0xff]  ;;  %v4230_v43 = vpop.f32.mrf.mxu0 }
 0x11a   : > { %v4511_v47 = vpop.eup %4510  ;;  %v2204_v48 = vadd.f32 1.0, %v4509_v44  ;;  %2793 = vperm.xlu0 %4444, %v4497_v29   ;;  %4536 = vpow2.f32 %v1935_v39  ;;  %v491_v29 = vld [vmem:[%s5400_s23 + $0x2d0] sm:$0xff]  ;;  %v1851_v39 = vsub.f32 0.0, %v1485_v19  ;;  %v1150_v52 = vadd.f32 %v4227_v11, %v422_v36 }
 0x11b   : > { %v4513_v50 = vpop.eup %4512  ;;  %v2203_v51 = vadd.f32 1.0, %v4511_v47  ;;  %2798 = vperm.xlu1 %4445, %v4495_v26   ;;  %4538 = vpow2.f32 %v2081_v41  ;;  %v421_v41 = vld [vmem:[%s5400_s23 + $0xa0] sm:$0xff]  ;;  %v1495_v47 = vadd.f32 %v1494_v20, %v491_v29  ;;  %v1154_v62 = vpop.f32.mrf.mxu0 }
 0x11c   : > { %v4515_v54 = vpop.eup %4514  ;;  %4540 = vrcp.f32 %v2204_v48  ;;  %v2276_v55 = vadd.f32 1.0, %v4513_v50  ;;  %v494_v48 = vld [vmem:[%s5400_s23 + $0x2e8] sm:$0xff]  ;;  %v2083_v59 = vmul.f32 1.442695, %v1851_v39 }
 0x11d   : > { %v4517_v57 = vpop.eup %4516  ;;  %4542 = vrcp.f32 %v2203_v51  ;;  %v2275_v58 = vadd.f32 1.0, %v4515_v54  ;;  %v1781_v51 = vsub.f32 0.0, %v1135_v28  ;;  %v1853_v2 = vsub.f32 0.0, %v1495_v47 }
 0x11e   : > { %v4519_v61 = vpop.eup %4518  ;;  %4544 = vrcp.f32 %v2276_v55  ;;  %3153 = vperm.xlu0 %4444, %v4501_v35   ;;  %v1852_v35 = vsub.f32 0.0, %v1490_v15 }
 0x11f   : > { %v4521_v63 = vpop.eup %4520  ;;  %4546 = vrcp.f32 %v2275_v58  ;;  %v2206_v0 = vadd.f32 1.0, %v4519_v61  ;;  %3158 = vperm.xlu1 %4445, %v4499_v32   ;;  %v1510_v61 = vadd.f32 %v4335_v31, %v494_v48  ;;  %v1943_v6 = vmul.f32 1.442695, %v1781_v51 }
 0x120   : > { %v4523_v4 = vpop.eup %4522  ;;  %v2205_v5 = vadd.f32 1.0, %v4521_v63  ;;  %4548 = vpow2.f32 %v2079_v56  ;;  %v2085_v55 = vmul.f32 1.442695, %v1852_v35  ;;  %v1145_v56 = vadd.f32 %v1144_v30, %v421_v41  ;;  %v423_v63 = vld [vmem:[%s5400_s23 + $0xb0] sm:$0xff] }
 0x121   : > { %v4525_v7 = vpop.eup %4524  ;;  %4550 = vrcp.f32 %v2206_v0  ;;  %v2278_v8 = vadd.f32 1.0, %v4523_v4  ;;  %v496_v4 = vld [vmem:[%s5400_s23 + $0x2f8] sm:$0xff]  ;;  %v1856_v16 = vsub.f32 0.0, %v1510_v61  ;;  %v2087_v19 = vmul.f32 1.442695, %v1853_v2 }
 0x122   : > { %v4527_v12 = vpop.eup %4526  ;;  %4552 = vrcp.f32 %v2205_v5  ;;  %v2277_v13 = vadd.f32 1.0, %v4525_v7  ;;  %2803 = vperm.xlu0 %4444, %v4505_v40   ;;  %v1500_v40 = vadd.f32 %v4332_v3, %v492_v24  ;;  %v1784_v7 = vsub.f32 0.0, %v1150_v52  ;;  %v1514_v24 = vpop.f32.mrf.mxu1  ;;  %v426_v52 = vld [vmem:[%s5400_s23 + $0xc8] sm:$0xff] }
 0x123   : > { %v4529_v17 = vpop.eup %4528  ;;  %4554 = vrcp.f32 %v2278_v8  ;;  %v2208_v18 = vadd.f32 1.0, %v4527_v12  ;;  %2808 = vperm.xlu1 %4445, %v5434_v38   ;;  %v1783_v12 = vsub.f32 0.0, %v1145_v56  ;;  %v2093_v30 = vmul.f32 1.442695, %v1856_v16  ;;  %v427_v16 = vld [vmem:[%s5400_s23 + $0xd0] sm:$0xff] }
 0x124   : > { %v4531_v21 = vpop.eup %4530  ;;  %4556 = vrcp.f32 %v2277_v13  ;;  %v2207_v22 = vadd.f32 1.0, %v4529_v17  ;;  %v1854_v60 = vsub.f32 0.0, %v1500_v40  ;;  %v1155_v13 = vadd.f32 %v1154_v62, %v423_v63  ;;  %v4341_v47 = vpop.f32.mrf.mxu1  ;;  %v498_v63 = vld [vmem:[%s5400_s23 + $0x308] sm:$0xff] }
 0x125   : > { %v4533_v25 = vpop.eup %4532  ;;  %4558 = vrcp.f32 %v2208_v18  ;;  %v2280_v26 = vadd.f32 1.0, %v4531_v21  ;;  %v1520_v17 = vadd.f32 %v4338_v9, %v496_v4  ;;  %v1530_v9 = vadd.f32 %v4341_v47, %v498_v63  ;;  %v431_v63 = vld [vmem:[%s5400_s23 + $0xf0] sm:$0xff] }
 0x126   : > { %v4535_v32 = vpop.eup %4534  ;;  %4560 = vrcp.f32 %v2207_v22  ;;  %v2279_v33 = vadd.f32 1.0, %v4533_v25  ;;  %3163 = vperm.xlu0 %4444, %v4517_v57   ;;  %v424_v57 = vld [vmem:[%s5400_s23 + $0xb8] sm:$0xff]  ;;  %v2089_v15 = vmul.f32 1.442695, %v1854_v60  ;;  %v1949_v22 = vmul.f32 1.442695, %v1784_v7 }
 0x127   : > { %v4537_v37 = vpop.eup %4536  ;;  %4562 = vrcp.f32 %v2280_v26  ;;  %v2210_v38 = vadd.f32 1.0, %v4535_v32  ;;  %3168 = vperm.xlu1 %4445, %v5436_v42   ;;  %v493_v42 = vld [vmem:[%s5400_s23 + $0x2e0] sm:$0xff]  ;;  %v1160_v8 = vadd.f32 %v4230_v43, %v424_v57  ;;  %v495_v25 = vld [vmem:[%s5400_s23 + $0x2f0] sm:$0xff]  ;;  %v1785_v28 = vsub.f32 0.0, %v1155_v13 }
 0x128   : > { %v4539_v44 = vpop.eup %4538  ;;  %4564 = vrcp.f32 %v2279_v33  ;;  %v2209_v45 = vadd.f32 1.0, %v4537_v37  ;;  %v1505_v3 = vadd.f32 %v1504_v53, %v493_v42  ;;  %v1858_v31 = vsub.f32 0.0, %v1520_v17  ;;  %v4233_v37 = vpop.f32.mrf.mxu0  ;;  %v425_v53 = vld [vmem:[%s5400_s23 + $0xc0] sm:$0xff] }
 0x129   : > { %v4541_v49 = vpop.eup %4540  ;;  %4566 = vrcp.f32 %v2210_v38  ;;  %v2282_v50 = vadd.f32 1.0, %v4539_v44  ;;  %v1786_v23 = vsub.f32 0.0, %v1160_v8  ;;  %v1951_v39 = vmul.f32 1.442695, %v1785_v28 }
 0x12a   : > { %v4543_v54 = vpop.eup %4542  ;;  %4568 = vrcp.f32 %v2209_v45  ;;  %v1855_v20 = vsub.f32 0.0, %v1505_v3  ;;  %v2097_v41 = vmul.f32 1.442695, %v1858_v31  ;;  %v1164_v46 = vpop.f32.mrf.mxu0  ;;  %v1170_v61 = vadd.f32 %v4233_v37, %v426_v52 }
 0x12b   : > { %v4545_v58 = vpop.eup %4544  ;;  %4570 = vrcp.f32 %v2282_v50  ;;  %2818 = vperm.xlu1 %4445, %v4541_v49   ;;  %2813 = vperm.xlu0 %4444, %v4543_v54   ;;  %v1953_v36 = vmul.f32 1.442695, %v1786_v23  ;;  %v1165_v62 = vadd.f32 %v1164_v46, %v425_v53 }
 0x12c   : > { %v4547_v0 = vpop.eup %4546  ;;  %4572 = vpow2.f32 %v1941_v27  ;;  %v1947_v27 = vmul.f32 1.442695, %v1783_v12  ;;  %v2091_v33 = vmul.f32 1.442695, %v1855_v20  ;;  %v4236_v42 = vpop.f32.mrf.mxu0 }
 0x12d   : > { %v4549_v5 = vpop.eup %4548  ;;  %4574 = vpow2.f32 %v1939_v34  ;;  %v1515_v34 = vadd.f32 %v1514_v24, %v495_v25  ;;  %v500_v24 = vld [vmem:[%s5400_s23 + $0x318] sm:$0xff] }
 0x12e   : > { %v4551_v10 = vpop.eup %4550  ;;  %v2281_v11 = vadd.f32 1.0, %v4549_v5  ;;  %4576 = vpow2.f32 %v2085_v55  ;;  %v1174_v2 = vpop.f32.mrf.mxu0 }
 0x12f   : > { %v4553_v14 = vpop.eup %4552  ;;  %4578 = vpow2.f32 %v2083_v59  ;;  %3178 = vperm.xlu1 %4445, %v4545_v58   ;;  %3173 = vperm.xlu0 %4444, %v4547_v0   ;;  %v1857_v44 = vsub.f32 0.0, %v1515_v34  ;;  %v1524_v59 = vpop.f32.mrf.mxu1  ;;  %v1175_v28 = vadd.f32 %v1174_v2, %v427_v16 }
 0x130   : > { %v4555_v18 = vpop.eup %4554  ;;  %4580 = vrcp.f32 %v2281_v11  ;;  %v4239_v11 = vpop.f32.mrf.mxu0 }
 0x131   : > { %v4557_v21 = vpop.eup %4556  ;;  %4582 = vpow2.f32 %v1945_v1  ;;  %v2095_v56 = vmul.f32 1.442695, %v1857_v44  ;;  %v4344_v3 = vpop.f32.mrf.mxu1  ;;  %v1789_v52 = vsub.f32 0.0, %v1175_v28 }
 0x132   : > { %v4559_v26 = vpop.eup %4558  ;;  %4584 = vpow2.f32 %v1943_v6  ;;  %v497_v6 = vld [vmem:[%s5400_s23 + $0x300] sm:$0xff] }
 0x133   : > { %v4561_v29 = vpop.eup %4560  ;;  %4586 = vpow2.f32 %v2089_v15  ;;  %2828 = vperm.xlu1 %4445, %v4551_v10   ;;  %2823 = vperm.xlu0 %4444, %v4553_v14   ;;  %v428_v10 = vld [vmem:[%s5400_s23 + $0xd8] sm:$0xff]  ;;  %v1788_v14 = vsub.f32 0.0, %v1170_v61  ;;  %v1787_v15 = vsub.f32 0.0, %v1165_v62  ;;  %v1534_v20 = vpop.f32.mrf.mxu1 }
 0x134   : > { %v4563_v32 = vpop.eup %4562  ;;  %4588 = vpow2.f32 %v2087_v19  ;;  %v1525_v19 = vadd.f32 %v1524_v59, %v497_v6  ;;  %v1180_v23 = vadd.f32 %v4236_v42, %v428_v10  ;;  %v501_v42 = vld [vmem:[%s5400_s23 + $0x320] sm:$0xff]  ;;  %v1959_v6 = vmul.f32 1.442695, %v1789_v52 }
 0x135   : > { %v4565_v35 = vpop.eup %4564  ;;  %4590 = vpow2.f32 %v1949_v22  ;;  %v4347_v31 = vpop.f32.mrf.mxu1  ;;  %v1957_v34 = vmul.f32 1.442695, %v1788_v14 }
 0x136   : > { %v5456_v38 = vpop.eup %4566  ;;  %4592 = vpow2.f32 %v1947_v27  ;;  %v1860_v27 = vsub.f32 0.0, %v1530_v9  ;;  %v1790_v47 = vsub.f32 0.0, %v1180_v23 }
 0x137   : > { %v4569_v40 = vpop.eup %4568  ;;  %4594 = vpow2.f32 %v2093_v30  ;;  %3188 = vperm.xlu1 %4445, %v4555_v18   ;;  %3183 = vperm.xlu0 %4444, %v4557_v21   ;;  %v1184_v30 = vpop.f32.mrf.mxu0 }
 0x138   : > { %v5458_v43 = vpop.eup %4570  ;;  %4596 = vpow2.f32 %v2091_v33 }
 0x139   : > { %v4573_v45 = vpop.eup %4572  ;;  %4598 = vpow2.f32 %v1953_v36  ;;  %v430_v36 = vld [vmem:[%s5400_s23 + $0xe8] sm:$0xff]  ;;  %v4242_v44 = vpop.f32.mrf.mxu0 }
 0x13a   : > { %v4575_v48 = vpop.eup %4574  ;;  %v2212_v49 = vadd.f32 1.0, %v4573_v45  ;;  %4600 = vpow2.f32 %v1951_v39  ;;  %v1859_v39 = vsub.f32 0.0, %v1525_v19  ;;  %v1190_v53 = vadd.f32 %v4239_v11, %v430_v36 }
 0x13b   : > { %v4577_v50 = vpop.eup %4576  ;;  %v2211_v51 = vadd.f32 1.0, %v4575_v48  ;;  %2838 = vperm.xlu1 %4445, %v4559_v26   ;;  %2833 = vperm.xlu0 %4444, %v4561_v29   ;;  %4602 = vpow2.f32 %v2097_v41  ;;  %v499_v29 = vld [vmem:[%s5400_s23 + $0x310] sm:$0xff]  ;;  %v429_v41 = vld [vmem:[%s5400_s23 + $0xe0] sm:$0xff]  ;;  %v1194_v62 = vpop.f32.mrf.mxu0 }
 0x13c   : > { %v4579_v54 = vpop.eup %4578  ;;  %4604 = vrcp.f32 %v2212_v49  ;;  %v2284_v55 = vadd.f32 1.0, %v4577_v50  ;;  %v1535_v48 = vadd.f32 %v1534_v20, %v499_v29  ;;  %v502_v49 = vld [vmem:[%s5400_s23 + $0x328] sm:$0xff]  ;;  %v2099_v59 = vmul.f32 1.442695, %v1859_v39 }
 0x13d   : > { %v4581_v57 = vpop.eup %4580  ;;  %4606 = vrcp.f32 %v2211_v51  ;;  %v2283_v58 = vadd.f32 1.0, %v4579_v54  ;;  %v1550_v61 = vadd.f32 %v4347_v31, %v502_v49 }
 0x13e   : > { %v4583_v60 = vpop.eup %4582  ;;  %4608 = vrcp.f32 %v2284_v55  ;;  %v2101_v55 = vmul.f32 1.442695, %v1860_v27  ;;  %v1861_v2 = vsub.f32 0.0, %v1535_v48 }
 0x13f   : > { %v4585_v0 = vpop.eup %4584  ;;  %4610 = vrcp.f32 %v2283_v58  ;;  %v2214_v1 = vadd.f32 1.0, %v4583_v60  ;;  %3198 = vperm.xlu1 %4445, %v4563_v32   ;;  %3193 = vperm.xlu0 %4444, %v4565_v35   ;;  %v1955_v35 = vmul.f32 1.442695, %v1787_v15  ;;  %v1864_v16 = vsub.f32 0.0, %v1550_v61 }
 0x140   : > { %v4587_v4 = vpop.eup %4586  ;;  %v2213_v5 = vadd.f32 1.0, %v4585_v0  ;;  %4612 = vpow2.f32 %v2095_v56  ;;  %v1185_v56 = vadd.f32 %v1184_v30, %v429_v41  ;;  %v2103_v19 = vmul.f32 1.442695, %v1861_v2 }
 0x141   : > { %v4589_v7 = vpop.eup %4588  ;;  %4614 = vrcp.f32 %v2214_v1  ;;  %v2286_v8 = vadd.f32 1.0, %v4587_v4  ;;  %v1961_v1 = vmul.f32 1.442695, %v1790_v47  ;;  %v504_v4 = vld [vmem:[%s5400_s23 + $0x338] sm:$0xff]  ;;  %v2109_v30 = vmul.f32 1.442695, %v1864_v16 }
 0x142   : > { %v4591_v12 = vpop.eup %4590  ;;  %4616 = vrcp.f32 %v2213_v5  ;;  %v2285_v13 = vadd.f32 1.0, %v4589_v7  ;;  %v1792_v7 = vsub.f32 0.0, %v1190_v53  ;;  %v434_v53 = vld [vmem:[%s5400_s23 + $0x108] sm:$0xff]  ;;  %v435_v16 = vld [vmem:[%s5400_s23 + $0x110] sm:$0xff] }
 0x143   : > { %v4593_v17 = vpop.eup %4592  ;;  %4618 = vrcp.f32 %v2286_v8  ;;  %v2216_v18 = vadd.f32 1.0, %v4591_v12  ;;  %2848 = vperm.xlu1 %4445, %v5456_v38   ;;  %2843 = vperm.xlu0 %4444, %v4569_v40   ;;  %v1540_v40 = vadd.f32 %v4344_v3, %v500_v24  ;;  %v1791_v12 = vsub.f32 0.0, %v1185_v56 }
 0x144   : > { %v4595_v21 = vpop.eup %4594  ;;  %4620 = vrcp.f32 %v2285_v13  ;;  %v2215_v22 = vadd.f32 1.0, %v4593_v17  ;;  %v1195_v13 = vadd.f32 %v1194_v62, %v431_v63 }
 0x145   : > { %v4597_v25 = vpop.eup %4596  ;;  %4622 = vrcp.f32 %v2216_v18  ;;  %v2288_v26 = vadd.f32 1.0, %v4595_v21  ;;  %v1862_v60 = vsub.f32 0.0, %v1540_v40  ;;  %v1963_v27 = vmul.f32 1.442695, %v1791_v12 }
 0x146   : > { %v4599_v32 = vpop.eup %4598  ;;  %4624 = vrcp.f32 %v2215_v22  ;;  %v2287_v33 = vadd.f32 1.0, %v4597_v25  ;;  %v1965_v22 = vmul.f32 1.442695, %v1792_v7  ;;  %v503_v25 = vld [vmem:[%s5400_s23 + $0x330] sm:$0xff]  ;;  %v1793_v28 = vsub.f32 0.0, %v1195_v13  ;;  %v505_v7 = vld [vmem:[%s5400_s23 + $0x340] sm:$0xff] }
 0x147   : > { %v4601_v37 = vpop.eup %4600  ;;  %4626 = vrcp.f32 %v2288_v26  ;;  %v2218_v38 = vadd.f32 1.0, %v4599_v32  ;;  %3208 = vperm.xlu1 %4445, %v5458_v43   ;;  %3203 = vperm.xlu0 %4444, %v4581_v57   ;;  %v1544_v43 = vpop.f32.mrf.mxu1  ;;  %v432_v57 = vld [vmem:[%s5400_s23 + $0xf8] sm:$0xff]  ;;  %v2105_v15 = vmul.f32 1.442695, %v1862_v60 }
 0x148   : > { %v4603_v45 = vpop.eup %4602  ;;  %4628 = vrcp.f32 %v2287_v33  ;;  %v2217_v46 = vadd.f32 1.0, %v4601_v37  ;;  %v1545_v3 = vadd.f32 %v1544_v43, %v501_v42  ;;  %v1200_v8 = vadd.f32 %v4242_v44, %v432_v57  ;;  %v4245_v37 = vpop.f32.mrf.mxu0  ;;  %v433_v43 = vld [vmem:[%s5400_s23 + $0x100] sm:$0xff] }
 0x149   : > { %v4605_v50 = vpop.eup %4604  ;;  %4630 = vrcp.f32 %v2218_v38  ;;  %v2290_v51 = vadd.f32 1.0, %v4603_v45  ;;  %v4350_v9 = vpop.f32.mrf.mxu1  ;;  %v1967_v39 = vmul.f32 1.442695, %v1793_v28  ;;  %v1210_v62 = vadd.f32 %v4245_v37, %v434_v53 }
 0x14a   : > { %v4607_v54 = vpop.eup %4606  ;;  %4632 = vrcp.f32 %v2217_v46  ;;  %v1560_v17 = vadd.f32 %v4350_v9, %v504_v4  ;;  %v1863_v20 = vsub.f32 0.0, %v1545_v3  ;;  %v1794_v23 = vsub.f32 0.0, %v1200_v8  ;;  %v1204_v47 = vpop.f32.mrf.mxu0 }
 0x14b   : > { %v4609_v58 = vpop.eup %4608  ;;  %4634 = vrcp.f32 %v2290_v51  ;;  %2858 = vperm.xlu1 %4445, %v4605_v50   ;;  %2853 = vperm.xlu0 %4444, %v4607_v54   ;;  %v1554_v24 = vpop.f32.mrf.mxu1  ;;  %v1205_v63 = vadd.f32 %v1204_v47, %v433_v43  ;;  %v1796_v13 = vsub.f32 0.0, %v1210_v62 }
 0x14c   : > { %v4611_v0 = vpop.eup %4610  ;;  %4636 = vpow2.f32 %v1957_v34  ;;  %v1866_v31 = vsub.f32 0.0, %v1560_v17  ;;  %v2107_v33 = vmul.f32 1.442695, %v1863_v20  ;;  %v1555_v34 = vadd.f32 %v1554_v24, %v503_v25  ;;  %v4248_v42 = vpop.f32.mrf.mxu0  ;;  %v508_v24 = vld [vmem:[%s5400_s23 + $0x358] sm:$0xff] }
 0x14d   : > { %v4613_v5 = vpop.eup %4612  ;;  %4638 = vpow2.f32 %v1955_v35  ;;  %v1969_v36 = vmul.f32 1.442695, %v1794_v23  ;;  %v4353_v48 = vpop.f32.mrf.mxu1 }
 0x14e   : > { %v4615_v10 = vpop.eup %4614  ;;  %v2289_v11 = vadd.f32 1.0, %v4613_v5  ;;  %4640 = vpow2.f32 %v2101_v55  ;;  %v2113_v41 = vmul.f32 1.442695, %v1866_v31  ;;  %v1865_v45 = vsub.f32 0.0, %v1555_v34  ;;  %v1214_v2 = vpop.f32.mrf.mxu0 }
 0x14f   : > { %v4617_v14 = vpop.eup %4616  ;;  %4642 = vpow2.f32 %v2099_v59  ;;  %3218 = vperm.xlu1 %4445, %v4609_v58   ;;  %3213 = vperm.xlu0 %4444, %v4611_v0   ;;  %v506_v59 = vld [vmem:[%s5400_s23 + $0x348] sm:$0xff]  ;;  %v1564_v60 = vpop.f32.mrf.mxu1  ;;  %v1215_v28 = vadd.f32 %v1214_v2, %v435_v16 }
 0x150   : > { %v4619_v18 = vpop.eup %4618  ;;  %4644 = vrcp.f32 %v2289_v11  ;;  %v2111_v56 = vmul.f32 1.442695, %v1865_v45 }
 0x151   : > { %v4621_v21 = vpop.eup %4620  ;;  %4646 = vpow2.f32 %v1961_v1  ;;  %v4356_v3 = vpop.f32.mrf.mxu1  ;;  %v1797_v43 = vsub.f32 0.0, %v1215_v28 }
 0x152   : > { %v4623_v26 = vpop.eup %4622  ;;  %4648 = vpow2.f32 %v1959_v6  ;;  %v5485_v6 = vadd.f32 %v4353_v48, %v506_v59 }
 0x153   : > { %v4625_v29 = vpop.eup %4624  ;;  %4650 = vpow2.f32 %v2105_v15  ;;  %2868 = vperm.xlu1 %4445, %v4615_v10   ;;  %2863 = vperm.xlu0 %4444, %v4617_v14   ;;  %v4251_v10 = vpop.f32.mrf.mxu0  ;;  %v1795_v14 = vsub.f32 0.0, %v1205_v63  ;;  %v436_v15 = vld [vmem:[%s5400_s23 + $0x118] sm:$0xff]  ;;  %v439_v63 = vld [vmem:[%s5400_s23 + $0x130] sm:$0xff] }
 0x154   : > { %v4627_v32 = vpop.eup %4626  ;;  %4652 = vpow2.f32 %v2103_v19  ;;  %v1565_v19 = vadd.f32 %v1564_v60, %v505_v7  ;;  %v1574_v20 = vpop.f32.mrf.mxu1  ;;  %v1868_v23 = vsub.f32 0.0, %v5485_v6  ;;  %v1975_v7 = vmul.f32 1.442695, %v1797_v43 }
 0x155   : > { %v4629_v35 = vpop.eup %4628  ;;  %4654 = vpow2.f32 %v1965_v22  ;;  %v1224_v31 = vpop.f32.mrf.mxu0 }
 0x156   : > { %v5478_v38 = vpop.eup %4630  ;;  %4656 = vpow2.f32 %v1963_v27  ;;  %v1220_v27 = vadd.f32 %v4248_v42, %v436_v15  ;;  %v509_v42 = vld [vmem:[%s5400_s23 + $0x360] sm:$0xff] }
 0x157   : > { %v4633_v40 = vpop.eup %4632  ;;  %4658 = vpow2.f32 %v2109_v30  ;;  %3228 = vperm.xlu1 %4445, %v4619_v18   ;;  %3223 = vperm.xlu0 %4444, %v4621_v21   ;;  %v438_v30 = vld [vmem:[%s5400_s23 + $0x128] sm:$0xff]  ;;  %v4254_v45 = vpop.f32.mrf.mxu0 }
 0x158   : > { %v5480_v44 = vpop.eup %4634  ;;  %4660 = vpow2.f32 %v2107_v33  ;;  %v1798_v53 = vsub.f32 0.0, %v1220_v27 }
 0x159   : > { %v4637_v46 = vpop.eup %4636  ;;  %4662 = vpow2.f32 %v1969_v36  ;;  %v1971_v36 = vmul.f32 1.442695, %v1795_v14  ;;  %v1234_v62 = vpop.f32.mrf.mxu0 }
 0x15a   : > { %v4639_v49 = vpop.eup %4638  ;;  %v2220_v50 = vadd.f32 1.0, %v4637_v46  ;;  %4664 = vpow2.f32 %v1967_v39  ;;  %v1867_v39 = vsub.f32 0.0, %v1565_v19  ;;  %v1977_v6 = vmul.f32 1.442695, %v1798_v53 }
 0x15b   : > { %v4641_v51 = vpop.eup %4640  ;;  %v2219_v52 = vadd.f32 1.0, %v4639_v49  ;;  %2878 = vperm.xlu1 %4445, %v4623_v26   ;;  %2873 = vperm.xlu0 %4444, %v4625_v29   ;;  %4666 = vpow2.f32 %v2113_v41  ;;  %v507_v29 = vld [vmem:[%s5400_s23 + $0x350] sm:$0xff]  ;;  %v437_v41 = vld [vmem:[%s5400_s23 + $0x120] sm:$0xff]  ;;  %v1230_v49 = vadd.f32 %v4251_v10, %v438_v30 }
 0x15c   : > { %v4643_v54 = vpop.eup %4642  ;;  %4668 = vrcp.f32 %v2220_v50  ;;  %v2292_v55 = vadd.f32 1.0, %v4641_v51  ;;  %v1575_v48 = vadd.f32 %v1574_v20, %v507_v29  ;;  %v510_v50 = vld [vmem:[%s5400_s23 + $0x368] sm:$0xff]  ;;  %v2115_v59 = vmul.f32 1.442695, %v1867_v39 }
 0x15d   : > { %v4645_v57 = vpop.eup %4644  ;;  %4670 = vrcp.f32 %v2219_v52  ;;  %v2291_v58 = vadd.f32 1.0, %v4643_v54  ;;  %v1800_v2 = vsub.f32 0.0, %v1230_v49  ;;  %v441_v49 = vld [vmem:[%s5400_s23 + $0x140] sm:$0xff] }
 0x15e   : > { %v4647_v61 = vpop.eup %4646  ;;  %4672 = vrcp.f32 %v2292_v55  ;;  %v2117_v55 = vmul.f32 1.442695, %v1868_v23 }
 0x15f   : > { %v4649_v0 = vpop.eup %4648  ;;  %4674 = vrcp.f32 %v2291_v58  ;;  %v2222_v1 = vadd.f32 1.0, %v4647_v61  ;;  %3238 = vperm.xlu1 %4445, %v4627_v32   ;;  %3233 = vperm.xlu0 %4444, %v4629_v35   ;;  %v4359_v32 = vpop.f32.mrf.mxu1  ;;  %v1973_v35 = vmul.f32 1.442695, %v1796_v13  ;;  %v1235_v13 = vadd.f32 %v1234_v62, %v439_v63  ;;  %v514_v62 = vld [vmem:[%s5400_s23 + $0x388] sm:$0xff] }
 0x160   : > { %v4651_v4 = vpop.eup %4650  ;;  %v2221_v5 = vadd.f32 1.0, %v4649_v0  ;;  %4676 = vpow2.f32 %v2111_v56  ;;  %v1225_v56 = vadd.f32 %v1224_v31, %v437_v41  ;;  %v1590_v61 = vadd.f32 %v4359_v32, %v510_v50 }
 0x161   : > { %v4653_v8 = vpop.eup %4652  ;;  %4678 = vrcp.f32 %v2222_v1  ;;  %v2294_v9 = vadd.f32 1.0, %v4651_v4  ;;  %v1869_v1 = vsub.f32 0.0, %v1575_v48  ;;  %v512_v4 = vld [vmem:[%s5400_s23 + $0x378] sm:$0xff]  ;;  %v1801_v28 = vsub.f32 0.0, %v1235_v13 }
 0x162   : > { %v4655_v11 = vpop.eup %4654  ;;  %4680 = vrcp.f32 %v2221_v5  ;;  %v2293_v12 = vadd.f32 1.0, %v4653_v8  ;;  %v1872_v16 = vsub.f32 0.0, %v1590_v61 }
 0x163   : > { %v4657_v17 = vpop.eup %4656  ;;  %4682 = vrcp.f32 %v2294_v9  ;;  %v2224_v18 = vadd.f32 1.0, %v4655_v11  ;;  %2888 = vperm.xlu1 %4445, %v5478_v38   ;;  %2883 = vperm.xlu0 %4444, %v4633_v40   ;;  %v1580_v40 = vadd.f32 %v4356_v3, %v508_v24  ;;  %v2119_v19 = vmul.f32 1.442695, %v1869_v1  ;;  %v513_v1 = vld [vmem:[%s5400_s23 + $0x380] sm:$0xff] }
 0x164   : > { %v4659_v21 = vpop.eup %4658  ;;  %4684 = vrcp.f32 %v2293_v12  ;;  %v2223_v22 = vadd.f32 1.0, %v4657_v17  ;;  %v1799_v12 = vsub.f32 0.0, %v1225_v56  ;;  %v2125_v30 = vmul.f32 1.442695, %v1872_v16  ;;  %v516_v16 = vld [vmem:[%s5400_s23 + $0x398] sm:$0xff] }
 0x165   : > { %v4661_v25 = vpop.eup %4660  ;;  %4686 = vrcp.f32 %v2224_v18  ;;  %v2296_v26 = vadd.f32 1.0, %v4659_v21  ;;  %v1870_v60 = vsub.f32 0.0, %v1580_v40  ;;  %v1983_v39 = vmul.f32 1.442695, %v1801_v28 }
 0x166   : > { %v4663_v33 = vpop.eup %4662  ;;  %4688 = vrcp.f32 %v2223_v22  ;;  %v2295_v34 = vadd.f32 1.0, %v4661_v25  ;;  %v1981_v22 = vmul.f32 1.442695, %v1800_v2  ;;  %v511_v25 = vld [vmem:[%s5400_s23 + $0x370] sm:$0xff]  ;;  %v1979_v27 = vmul.f32 1.442695, %v1799_v12 }
 0x167   : > { %v4665_v37 = vpop.eup %4664  ;;  %4690 = vrcp.f32 %v2296_v26  ;;  %v2226_v38 = vadd.f32 1.0, %v4663_v33  ;;  %3248 = vperm.xlu1 %4445, %v5480_v44   ;;  %3243 = vperm.xlu0 %4444, %v4645_v57   ;;  %v1584_v44 = vpop.f32.mrf.mxu1  ;;  %v440_v57 = vld [vmem:[%s5400_s23 + $0x138] sm:$0xff]  ;;  %v2121_v15 = vmul.f32 1.442695, %v1870_v60 }
 0x168   : > { %v4667_v46 = vpop.eup %4666  ;;  %4692 = vrcp.f32 %v2295_v34  ;;  %v2225_v47 = vadd.f32 1.0, %v4665_v37  ;;  %v1585_v3 = vadd.f32 %v1584_v44, %v509_v42  ;;  %v1240_v8 = vadd.f32 %v4254_v45, %v440_v57  ;;  %v442_v45 = vld [vmem:[%s5400_s23 + $0x148] sm:$0xff]  ;;  %v444_v2 = vld [vmem:[%s5400_s23 + $0x158] sm:$0xff] }
 0x169   : > { %v4669_v51 = vpop.eup %4668  ;;  %4694 = vrcp.f32 %v2226_v38  ;;  %v2298_v52 = vadd.f32 1.0, %v4667_v46  ;;  %v4362_v9 = vpop.f32.mrf.mxu1 }
 0x16a   : > { %v4671_v54 = vpop.eup %4670  ;;  %4696 = vrcp.f32 %v2225_v47  ;;  %v1600_v17 = vadd.f32 %v4362_v9, %v512_v4  ;;  %v1871_v20 = vsub.f32 0.0, %v1585_v3  ;;  %v1802_v23 = vsub.f32 0.0, %v1240_v8 }
 0x16b   : > { %v4673_v58 = vpop.eup %4672  ;;  %4698 = vrcp.f32 %v2298_v52  ;;  %2898 = vperm.xlu1 %4445, %v4669_v51   ;;  %2893 = vperm.xlu0 %4444, %v4671_v54   ;;  %v1594_v24 = vpop.f32.mrf.mxu1 }
 0x16c   : > { %v4675_v0 = vpop.eup %4674  ;;  %4700 = vpow2.f32 %v1973_v35  ;;  %v1874_v31 = vsub.f32 0.0, %v1600_v17  ;;  %v2123_v33 = vmul.f32 1.442695, %v1871_v20  ;;  %v1595_v34 = vadd.f32 %v1594_v24, %v511_v25  ;;  %v4257_v35 = vpop.f32.mrf.mxu0  ;;  %v2628_v25 = vld [vmem:[%s5520_s26 + $0x8] sm:$0xff] }
 0x16d   : > { %v4677_v5 = vpop.eup %4676  ;;  %4702 = vpow2.f32 %v1971_v36  ;;  %v1985_v37 = vmul.f32 1.442695, %v1802_v23  ;;  %v4365_v50 = vpop.f32.mrf.mxu1  ;;  %v1250_v43 = vadd.f32 %v4257_v35, %v442_v45 }
 0x16e   : > { %v4679_v10 = vpop.eup %4678  ;;  %v2297_v11 = vadd.f32 1.0, %v4677_v5  ;;  %4704 = vpow2.f32 %v2117_v55  ;;  %v2129_v41 = vmul.f32 1.442695, %v1874_v31  ;;  %v1873_v47 = vsub.f32 0.0, %v1595_v34  ;;  %v1244_v48 = vpop.f32.mrf.mxu0 }
 0x16f   : > { %v4681_v14 = vpop.eup %4680  ;;  %4706 = vpow2.f32 %v2115_v59  ;;  %3258 = vperm.xlu1 %4445, %v4673_v58   ;;  %3253 = vperm.xlu0 %4444, %v4675_v0   ;;  %v1245_v54 = vadd.f32 %v1244_v48, %v441_v49  ;;  %v1604_v59 = vpop.f32.mrf.mxu1  ;;  %v1804_v0 = vsub.f32 0.0, %v1250_v43  ;;  %v446_v49 = vld [vmem:[%s5400_s23 + $0x168] sm:$0xff]  ;;  %v2627_v43 = vld [vmem:[%s5520_s26] sm:$0xff] }
 0x170   : > { %v4683_v18 = vpop.eup %4682  ;;  %4708 = vrcp.f32 %v2297_v11  ;;  %v4260_v55 = vpop.f32.mrf.mxu0  ;;  %v2127_v58 = vmul.f32 1.442695, %v1873_v47  ;;  %v443_v11 = vld [vmem:[%s5400_s23 + $0x150] sm:$0xff] }
 0x171   : > { %v4685_v21 = vpop.eup %4684  ;;  %4710 = vpow2.f32 %v1977_v6  ;;  %v4368_v3 = vpop.f32.mrf.mxu1  ;;  %v1803_v6 = vsub.f32 0.0, %v1245_v54  ;;  %v5528_v20 = vmul.f32 1.442695, %v1804_v0 }
 0x172   : > { %v4687_v26 = vpop.eup %4686  ;;  %4712 = vpow2.f32 %v1975_v7  ;;  %v1254_v7 = vpop.f32.mrf.mxu0 }
 0x173   : > { %v4689_v29 = vpop.eup %4688  ;;  %4714 = vpow2.f32 %v2121_v15  ;;  %2908 = vperm.xlu1 %4445, %v4679_v10   ;;  %2903 = vperm.xlu0 %4444, %v4681_v14   ;;  %v1610_v10 = vadd.f32 %v4365_v50, %v514_v62  ;;  %v5523_v14 = vadd.f32 %v1604_v59, %v513_v1  ;;  %v5525_v15 = vadd.f32 %v4260_v55, %v444_v2  ;;  %v445_v50 = vld [vmem:[%s5400_s23 + $0x160] sm:$0xff]  ;;  %v518_v59 = vld [vmem:[%s5400_s23 + $0x3a8] sm:$0xff] }
 0x174   : > { %v4691_v32 = vpop.eup %4690  ;;  %4716 = vpow2.f32 %v2119_v19  ;;  %v4263_v17 = vpop.f32.mrf.mxu0  ;;  %v5532_v24 = vmul.f32 1.442695, %v1803_v6  ;;  %v517_v1 = vld [vmem:[%s5400_s23 + $0x3a0] sm:$0xff] }
 0x175   : > { %v4693_v36 = vpop.eup %4692  ;;  %4718 = vpow2.f32 %v1981_v22  ;;  %v1876_v31 = vsub.f32 0.0, %v1610_v10  ;;  %v1270_v62 = vadd.f32 %v4263_v17, %v446_v49  ;;  %v2702_v17 = vld [vmem:[%s5520_s26 + $0x258] sm:$0xff] }
 0x176   : > { %v5503_v38 = vpop.eup %4694  ;;  %4720 = vpow2.f32 %v1979_v27  ;;  %v515_v27 = vld [vmem:[%s5400_s23 + $0x390] sm:$0xff] }
 0x177   : > { %v5505_v40 = vpop.eup %4696  ;;  %4722 = vpow2.f32 %v2125_v30  ;;  %3268 = vperm.xlu1 %4445, %v4683_v18   ;;  %3263 = vperm.xlu0 %4444, %v4685_v21   ;;  %v1614_v21 = vpop.f32.mrf.mxu1  ;;  %v2700_v30 = vld [vmem:[%s5520_s26 + $0x248] sm:$0xff] }
 0x178   : > { %v5508_v46 = vpop.eup %4698  ;;  %4724 = vpow2.f32 %v2123_v33  ;;  %v5549_v48 = vadd.f32 %v1614_v21, %v515_v27  ;;  %v520_v21 = vld [vmem:[%s5400_s23 + $0x3b8] sm:$0xff] }
 0x179   : > { %v4701_v51 = vpop.eup %4700  ;;  %4726 = vpow2.f32 %v1985_v37  ;;  %v4371_v33 = vpop.f32.mrf.mxu1  ;;  %v1875_v37 = vsub.f32 0.0, %v5523_v14  ;;  %v447_v14 = vld [vmem:[%s5400_s23 + $0x170] sm:$0xff] }
 0x17a   : > { %v4703_v52 = vpop.eup %4702  ;;  %v2228_v53 = vadd.f32 1.0, %v4701_v51  ;;  %4728 = vpow2.f32 %v1983_v39  ;;  %v1264_v39 = vpop.f32.mrf.mxu0 }
 0x17b   : > { %v4705_v44 = vpop.eup %4704  ;;  %v2227_v42 = vadd.f32 1.0, %v4703_v52  ;;  %2918 = vperm.xlu1 %4445, %v4687_v26   ;;  %2913 = vperm.xlu0 %4444, %v4689_v29   ;;  %4730 = vpow2.f32 %v2129_v41  ;;  %v5535_v26 = vadd.f32 %v1254_v7, %v443_v11  ;;  %v1624_v0 = vpop.f32.mrf.mxu1  ;;  %v448_v7 = vld [vmem:[%s5400_s23 + $0x178] sm:$0xff]  ;;  %v2699_v11 = vld [vmem:[%s5520_s26 + $0x240] sm:$0xff] }
 0x17c   : > { %v4707_v56 = vpop.eup %4706  ;;  %4732 = vrcp.f32 %v2228_v53  ;;  %v2300_v57 = vadd.f32 1.0, %v4705_v44 }
 0x17d   : > { %v5511_v60 = vpop.eup %4708  ;;  %4734 = vrcp.f32 %v2227_v42  ;;  %v2299_v61 = vadd.f32 1.0, %v4707_v56  ;;  %v1805_v44 = vsub.f32 0.0, %v5535_v26  ;;  %v4266_v42 = vpop.f32.mrf.mxu0  ;;  %v2133_v56 = vmul.f32 1.442695, %v1876_v31 }
 0x17e   : > { %v4711_v63 = vpop.eup %4710  ;;  %4736 = vrcp.f32 %v2300_v57  ;;  %v2630_v57 = vld [vmem:[%s5520_s26 + $0x18] sm:$0xff]  ;;  %v1280_v27 = vadd.f32 %v4266_v42, %v448_v7 }
 0x17f   : > { %v4713_v4 = vpop.eup %4712  ;;  %4738 = vrcp.f32 %v2299_v61  ;;  %v2230_v5 = vadd.f32 1.0, %v4711_v63  ;;  %3278 = vperm.xlu1 %4445, %v4691_v32   ;;  %3273 = vperm.xlu0 %4444, %v4693_v36   ;;  %v5539_v32 = vadd.f32 %v4368_v3, %v516_v16  ;;  %v5564_v63 = vadd.f32 %v1264_v39, %v445_v50  ;;  %v2629_v39 = vld [vmem:[%s5520_s26 + $0x10] sm:$0xff] }
 0x180   : > { %v4715_v8 = vpop.eup %4714  ;;  %v2229_v9 = vadd.f32 1.0, %v4713_v4  ;;  %4740 = vpow2.f32 %v2127_v58  ;;  %v2131_v3 = vmul.f32 1.442695, %v1875_v37  ;;  %v1991_v10 = vmul.f32 1.442695, %v1805_v44  ;;  %v519_v50 = vld [vmem:[%s5400_s23 + $0x3b0] sm:$0xff] }
 0x181   : > { %v4717_v12 = vpop.eup %4716  ;;  %4742 = vrcp.f32 %v2230_v5  ;;  %v2302_v13 = vadd.f32 1.0, %v4715_v8  ;;  %v1878_v58 = vsub.f32 0.0, %v5539_v32  ;;  %v1807_v26 = vsub.f32 0.0, %v5564_v63 }
 0x182   : > { %v4719_v18 = vpop.eup %4718  ;;  %4744 = vrcp.f32 %v2229_v9  ;;  %v2301_v19 = vadd.f32 1.0, %v4717_v12  ;;  %v1630_v12 = vadd.f32 %v4371_v33, %v518_v59  ;;  %v2632_v59 = vld [vmem:[%s5520_s26 + $0x28] sm:$0xff] }
 0x183   : > { %v4721_v22 = vpop.eup %4720  ;;  %4746 = vrcp.f32 %v2302_v13  ;;  %v2232_v23 = vadd.f32 1.0, %v4719_v18  ;;  %2928 = vperm.xlu1 %4445, %v5503_v38   ;;  %2923 = vperm.xlu0 %4444, %v5505_v40   ;;  %v1806_v38 = vsub.f32 0.0, %v5525_v15  ;;  %v1274_v13 = vpop.f32.mrf.mxu0  ;;  %v2137_v16 = vmul.f32 1.442695, %v1878_v58 }
 0x184   : > { %v4723_v28 = vpop.eup %4722  ;;  %4748 = vrcp.f32 %v2301_v19  ;;  %v2231_v29 = vadd.f32 1.0, %v4721_v22  ;;  %v1877_v18 = vsub.f32 0.0, %v5549_v48  ;;  %v1625_v19 = vadd.f32 %v1624_v0, %v517_v1 }
 0x185   : > { %v4725_v34 = vpop.eup %4724  ;;  %4750 = vrcp.f32 %v2232_v23  ;;  %v2304_v35 = vadd.f32 1.0, %v4723_v28  ;;  %v2779_v36 = vpop.permute.xlu0 %2778  ;;  %v1993_v5 = vmul.f32 1.442695, %v1806_v38  ;;  %v1275_v32 = vadd.f32 %v1274_v13, %v447_v14  ;;  %v449_v14 = vld [vmem:[%s5400_s23 + $0x180] sm:$0xff] }
 0x186   : > { %v4727_v40 = vpop.eup %4726  ;;  %4752 = vrcp.f32 %v2231_v29  ;;  %v2303_v41 = vadd.f32 1.0, %v4725_v34  ;;  %v3139_v45 = vpop.permute.xlu1 %3138  ;;  %v3492_v47 = vmul.f32 %v2779_v36, %v2628_v25  ;;  %v1808_v25 = vsub.f32 0.0, %v1270_v62  ;;  %v2701_v34 = vld [vmem:[%s5520_s26 + $0x250] sm:$0xff] }
 0x187   : > { %v4729_v51 = vpop.eup %4728  ;;  %4754 = vrcp.f32 %v2304_v35  ;;  %v2234_v52 = vadd.f32 1.0, %v4727_v40  ;;  %v3564_v53 = vmul.f32 %v3139_v45, %v2700_v30  ;;  %3288 = vperm.xlu1 %4445, %v5508_v46   ;;  %3283 = vperm.xlu0 %4444, %v5511_v60   ;;  %v1880_v35 = vsub.f32 0.0, %v1630_v12 }
 0x188   : > { %v4731_v54 = vpop.eup %4730  ;;  %4756 = vrcp.f32 %v2303_v41  ;;  %v2233_v55 = vadd.f32 1.0, %v4729_v51  ;;  %3637 = vst.msk [vmem:[%s5545_s29 + $0x8] sm:$0xff] %vm3635_vm1, %v3492_v47  ;;  %v2135_v38 = vmul.f32 1.442695, %v1877_v18  ;;  %v1879_v40 = vsub.f32 0.0, %v1625_v19  ;;  %v522_v18 = vld [vmem:[%s5400_s23 + $0x3c8] sm:$0xff] }
 0x189   : > { %v4733_v46 = vpop.eup %4732  ;;  %4758 = vrcp.f32 %v2234_v52  ;;  %v2306_v61 = vadd.f32 1.0, %v4731_v54  ;;  %3709 = vst.msk [vmem:[%s5545_s29 + $0x248] sm:$0xff] %vm3635_vm1, %v3564_v53  ;;  %v2774_v60 = vpop.permute.xlu0 %2773  ;;  %v1997_v45 = vmul.f32 1.442695, %v1808_v25  ;;  %v1810_v48 = vsub.f32 0.0, %v1280_v27 }
 0x18a   : > { %v4735_v2 = vpop.eup %4734  ;;  %4760 = vrcp.f32 %v2233_v55  ;;  %v2789_v4 = vpop.permute.xlu1 %2788  ;;  %v3491_v6 = vmul.f32 %v2774_v60, %v2627_v43  ;;  %v1995_v43 = vmul.f32 1.442695, %v1807_v26  ;;  %v1809_v44 = vsub.f32 0.0, %v1275_v32 }
 0x18b   : > { %v4737_v8 = vpop.eup %4736  ;;  %4762 = vrcp.f32 %v2306_v61  ;;  %v3494_v9 = vmul.f32 %v2789_v4, %v2630_v57  ;;  %2938 = vperm.xlu1 %4445, %v4733_v46   ;;  %2933 = vperm.xlu0 %4444, %v4735_v2   ;;  %v2141_v55 = vmul.f32 1.442695, %v1880_v35  ;;  %v2139_v46 = vmul.f32 1.442695, %v1879_v40  ;;  %v4269_v60 = vpop.f32.mrf.mxu0 }
 0x18c   : > { %v4739_v15 = vpop.eup %4738  ;;  %4764 = vpow2.f32 %v5528_v20  ;;  %3636 = vst.msk [vmem:[%s5545_s29] sm:$0xff] %vm3635_vm1, %v3491_v6  ;;  %v4374_v20 = vpop.f32.mrf.mxu1  ;;  %v2001_v0 = vmul.f32 1.442695, %v1810_v48  ;;  %v1999_v4 = vmul.f32 1.442695, %v1809_v44 }
 0x18d   : > { %v4741_v22 = vpop.eup %4740  ;;  %4766 = vpow2.f32 %v5532_v24  ;;  %3639 = vst.msk [vmem:[%s5545_s29 + $0x18] sm:$0xff] %vm3635_vm1, %v3494_v9  ;;  %v3134_v23 = vpop.permute.xlu0 %3133  ;;  %v1640_v36 = vadd.f32 %v4374_v20, %v520_v21 }
 0x18e   : > { %v4743_v28 = vpop.eup %4742  ;;  %v2305_v29 = vadd.f32 1.0, %v4741_v22  ;;  %4768 = vpow2.f32 %v2133_v56  ;;  %v3149_v30 = vpop.permute.xlu1 %3148  ;;  %v3563_v31 = vmul.f32 %v3134_v23, %v2699_v11  ;;  %v2631_v56 = vld [vmem:[%s5520_s26 + $0x20] sm:$0xff]  ;;  %v2704_v11 = vld [vmem:[%s5520_s26 + $0x268] sm:$0xff] }
 0x18f   : > { %v4745_v33 = vpop.eup %4744  ;;  %4770 = vpow2.f32 %v2131_v3  ;;  %v3566_v24 = vmul.f32 %v3149_v30, %v2702_v17  ;;  %3298 = vperm.xlu1 %4445, %v4737_v8   ;;  %3293 = vperm.xlu0 %4444, %v4739_v15   ;;  %v1634_v49 = vpop.f32.mrf.mxu1  ;;  %v1882_v57 = vsub.f32 0.0, %v1640_v36  ;;  %v2703_v8 = vld [vmem:[%s5520_s26 + $0x260] sm:$0xff] }
 0x190   : > { %v4747_v37 = vpop.eup %4746  ;;  %4772 = vrcp.f32 %v2305_v29  ;;  %3708 = vst.msk [vmem:[%s5545_s29 + $0x240] sm:$0xff] %vm3635_vm1, %v3563_v31  ;;  %v1635_v61 = vadd.f32 %v1634_v49, %v519_v50  ;;  %v1284_v13 = vpop.f32.mrf.mxu0 }
 0x191   : > { %v4749_v41 = vpop.eup %4748  ;;  %4774 = vpow2.f32 %v1993_v5  ;;  %3711 = vst.msk [vmem:[%s5545_s29 + $0x258] sm:$0xff] %vm3635_vm1, %v3566_v24  ;;  %v3144_v47 = vpop.permute.xlu0 %3143  ;;  %v450_v5 = vld [vmem:[%s5400_s23 + $0x188] sm:$0xff]  ;;  %v2145_v9 = vmul.f32 1.442695, %v1882_v57  ;;  %v1285_v29 = vadd.f32 %v1284_v13, %v449_v14  ;;  %v523_v13 = vld [vmem:[%s5400_s23 + $0x3d0] sm:$0xff] }
 0x192   : > { %v4751_v51 = vpop.eup %4750  ;;  %4776 = vpow2.f32 %v1991_v10  ;;  %v2784_v52 = vpop.permute.xlu1 %2783  ;;  %v3565_v53 = vmul.f32 %v3144_v47, %v2701_v34  ;;  %v1881_v12 = vsub.f32 0.0, %v1635_v61  ;;  %v1290_v17 = vadd.f32 %v4269_v60, %v450_v5  ;;  %v521_v47 = vld [vmem:[%s5400_s23 + $0x3c0] sm:$0xff]  ;;  %v451_v60 = vld [vmem:[%s5400_s23 + $0x190] sm:$0xff] }
 0x193   : > { %v4753_v42 = vpop.eup %4752  ;;  %4778 = vpow2.f32 %v2137_v16  ;;  %v3493_v54 = vmul.f32 %v2784_v52, %v2629_v39  ;;  %2948 = vperm.xlu1 %4445, %v4743_v28   ;;  %2943 = vperm.xlu0 %4444, %v4745_v33   ;;  %v4377_v19 = vpop.f32.mrf.mxu1  ;;  %v2633_v28 = vld [vmem:[%s5520_s26 + $0x30] sm:$0xff]  ;;  %v2634_v33 = vld [vmem:[%s5520_s26 + $0x38] sm:$0xff]  ;;  %v1811_v52 = vsub.f32 0.0, %v1285_v29 }
 0x194   : > { %v5588_v58 = vpop.eup %4754  ;;  %4780 = vpow2.f32 %v2135_v38  ;;  %3710 = vst.msk [vmem:[%s5545_s29 + $0x250] sm:$0xff] %vm3635_vm1, %v3565_v53  ;;  %v4272_v30 = vpop.f32.mrf.mxu0  ;;  %v2143_v24 = vmul.f32 1.442695, %v1881_v12  ;;  %v5616_v34 = vadd.f32 %v4377_v19, %v522_v18  ;;  %v1812_v38 = vsub.f32 0.0, %v1290_v17  ;;  %v452_v53 = vld [vmem:[%s5400_s23 + $0x198] sm:$0xff]  ;;  %v2635_v17 = vld [vmem:[%s5520_s26 + $0x40] sm:$0xff] }
 0x195   : > { %v5593_v62 = vpop.eup %4756  ;;  %4782 = vpow2.f32 %v1997_v45  ;;  %3638 = vst.msk [vmem:[%s5545_s29 + $0x10] sm:$0xff] %vm3635_vm1, %v3493_v54  ;;  %v2794_v63 = vpop.permute.xlu0 %2793  ;;  %v5639_v5 = vadd.f32 %v4272_v30, %v452_v53 }
 0x196   : > { %v5597_v1 = vpop.eup %4758  ;;  %4784 = vpow2.f32 %v1995_v43  ;;  %v2799_v2 = vpop.permute.xlu1 %2798  ;;  %v3495_v3 = vmul.f32 %v2794_v63, %v2631_v56  ;;  %v1884_v56 = vsub.f32 0.0, %v5616_v34 }
 0x197   : > { %v5600_v6 = vpop.eup %4760  ;;  %4786 = vpow2.f32 %v2141_v55  ;;  %v3496_v7 = vmul.f32 %v2799_v2, %v2632_v59  ;;  %3308 = vperm.xlu1 %4445, %v4747_v37   ;;  %3303 = vperm.xlu0 %4444, %v4749_v41   ;;  %v1644_v39 = vpop.f32.mrf.mxu1  ;;  %v2706_v55 = vld [vmem:[%s5520_s26 + $0x278] sm:$0xff]  ;;  %v5633_v59 = vmul.f32 1.442695, %v1812_v38  ;;  %v1814_v29 = vsub.f32 0.0, %v5639_v5 }
 0x198   : > { %v5603_v10 = vpop.eup %4762  ;;  %3640 = vst.msk [vmem:[%s5545_s29 + $0x20] sm:$0xff] %vm3635_vm1, %v3495_v3  ;;  %4788 = vpow2.f32 %v2139_v46  ;;  %v1294_v43 = vpop.f32.mrf.mxu0  ;;  %v5635_v61 = vadd.f32 %v1644_v39, %v521_v47 }
 0x199   : > { %v4765_v15 = vpop.eup %4764  ;;  %3641 = vst.msk [vmem:[%s5545_s29 + $0x28] sm:$0xff] %vm3635_vm1, %v3496_v7  ;;  %4790 = vpow2.f32 %v2001_v0  ;;  %v3154_v16 = vpop.permute.xlu0 %3153  ;;  %v5650_v18 = vadd.f32 %v1294_v43, %v451_v60  ;;  %v2638_v60 = vld [vmem:[%s5520_s26 + $0x58] sm:$0xff] }
 0x19a   : > { %v4767_v21 = vpop.eup %4766  ;;  %v2236_v22 = vadd.f32 1.0, %v4765_v15  ;;  %v3159_v23 = vpop.permute.xlu1 %3158  ;;  %v3567_v25 = vmul.f32 %v3154_v16, %v2703_v8  ;;  %4792 = vpow2.f32 %v1999_v4  ;;  %v2636_v16 = vld [vmem:[%s5520_s26 + $0x48] sm:$0xff] }
 0x19b   : > { %v4769_v26 = vpop.eup %4768  ;;  %v2235_v27 = vadd.f32 1.0, %v4767_v21  ;;  %v3568_v20 = vmul.f32 %v3159_v23, %v2704_v11  ;;  %2958 = vperm.xlu1 %4445, %v4751_v51   ;;  %2953 = vperm.xlu0 %4444, %v4753_v42   ;;  %4794 = vpow2.f32 %v2145_v9  ;;  %v2705_v51 = vld [vmem:[%s5520_s26 + $0x270] sm:$0xff]  ;;  %v4380_v44 = vpop.f32.mrf.mxu1  ;;  %v5643_v11 = vmul.f32 1.442695, %v1811_v52  ;;  %v525_v52 = vld [vmem:[%s5400_s23 + $0x3e0] sm:$0xff] }
 0x19c   : > { %v4771_v31 = vpop.eup %4770  ;;  %4796 = vrcp.f32 %v2236_v22  ;;  %v2308_v32 = vadd.f32 1.0, %v4769_v26  ;;  %3712 = vst.msk [vmem:[%s5545_s29 + $0x260] sm:$0xff] %vm3635_vm1, %v3567_v25  ;;  %v4275_v63 = vpop.f32.mrf.mxu0  ;;  %v5656_v21 = vmul.f32 1.442695, %v1884_v56  ;;  %v1883_v22 = vsub.f32 0.0, %v5635_v61  ;;  %v456_v56 = vld [vmem:[%s5400_s23 + $0x1b8] sm:$0xff] }
 0x19d   : > { %v5618_v35 = vpop.eup %4772  ;;  %4798 = vrcp.f32 %v2235_v27  ;;  %v2307_v36 = vadd.f32 1.0, %v4771_v31  ;;  %3713 = vst.msk [vmem:[%s5545_s29 + $0x268] sm:$0xff] %vm3635_vm1, %v3568_v20  ;;  %v2804_v37 = vpop.permute.xlu0 %2803  ;;  %v454_v31 = vld [vmem:[%s5400_s23 + $0x1a8] sm:$0xff]  ;;  %v1813_v47 = vsub.f32 0.0, %v5650_v18 }
 0x19e   : > { %v4775_v40 = vpop.eup %4774  ;;  %4800 = vrcp.f32 %v2308_v32  ;;  %v2809_v41 = vpop.permute.xlu1 %2808  ;;  %v3497_v45 = vmul.f32 %v2804_v37, %v2633_v28  ;;  %v453_v32 = vld [vmem:[%s5400_s23 + $0x1a0] sm:$0xff]  ;;  %v526_v37 = vld [vmem:[%s5400_s23 + $0x3e8] sm:$0xff]  ;;  %v2147_v43 = vmul.f32 1.442695, %v1883_v22 }
 0x19f   : > { %v4777_v48 = vpop.eup %4776  ;;  %4802 = vrcp.f32 %v2307_v36  ;;  %v2238_v49 = vadd.f32 1.0, %v4775_v40  ;;  %v3498_v50 = vmul.f32 %v2809_v41, %v2634_v33  ;;  %3318 = vperm.xlu1 %4445, %v5588_v58   ;;  %3313 = vperm.xlu0 %4444, %v5593_v62   ;;  %v524_v62 = vld [vmem:[%s5400_s23 + $0x3d8] sm:$0xff]  ;;  %v1654_v12 = vpop.f32.mrf.mxu1  ;;  %v2708_v41 = vld [vmem:[%s5520_s26 + $0x288] sm:$0xff] }
 0x1a0   : > { %v4779_v42 = vpop.eup %4778  ;;  %v2237_v54 = vadd.f32 1.0, %v4777_v48  ;;  %3642 = vst.msk [vmem:[%s5545_s29 + $0x30] sm:$0xff] %vm3635_vm1, %v3497_v45  ;;  %4804 = vpow2.f32 %v2143_v24  ;;  %v5652_v19 = vadd.f32 %v4380_v44, %v524_v62  ;;  %v1304_v23 = vpop.f32.mrf.mxu0  ;;  %v5660_v30 = vadd.f32 %v1654_v12, %v523_v13  ;;  %v2707_v45 = vld [vmem:[%s5520_s26 + $0x280] sm:$0xff] }
 0x1a1   : > { %v4781_v57 = vpop.eup %4780  ;;  %4806 = vrcp.f32 %v2238_v49  ;;  %v2310_v58 = vadd.f32 1.0, %v4779_v42  ;;  %3643 = vst.msk [vmem:[%s5545_s29 + $0x38] sm:$0xff] %vm3635_vm1, %v3498_v50  ;;  %v3164_v46 = vpop.permute.xlu0 %3163 }
 0x1a2   : > { %v4783_v0 = vpop.eup %4782  ;;  %4808 = vrcp.f32 %v2237_v54  ;;  %v2309_v2 = vadd.f32 1.0, %v4781_v57  ;;  %v3169_v3 = vpop.permute.xlu1 %3168  ;;  %v3569_v4 = vmul.f32 %v3164_v46, %v2705_v51  ;;  %v1886_v48 = vsub.f32 0.0, %v5652_v19 }
 0x1a3   : > { %v4785_v7 = vpop.eup %4784  ;;  %4810 = vrcp.f32 %v2310_v58  ;;  %v2240_v8 = vadd.f32 1.0, %v4783_v0  ;;  %v3570_v9 = vmul.f32 %v3169_v3, %v2706_v55  ;;  %2968 = vperm.xlu1 %4445, %v5597_v1   ;;  %2963 = vperm.xlu0 %4444, %v5600_v6   ;;  %v4383_v25 = vpop.f32.mrf.mxu1  ;;  %v1885_v54 = vsub.f32 0.0, %v5660_v30 }
 0x1a4   : > { %v4787_v14 = vpop.eup %4786  ;;  %4812 = vrcp.f32 %v2309_v2  ;;  %v2239_v15 = vadd.f32 1.0, %v4785_v7  ;;  %3714 = vst.msk [vmem:[%s5545_s29 + $0x270] sm:$0xff] %vm3635_vm1, %v3569_v4  ;;  %v4278_v38 = vpop.f32.mrf.mxu0  ;;  %v1670_v55 = vadd.f32 %v4383_v25, %v526_v37  ;;  %v2009_v58 = vmul.f32 1.442695, %v1814_v29  ;;  %v2637_v4 = vld [vmem:[%s5520_s26 + $0x50] sm:$0xff]  ;;  %v528_v7 = vld [vmem:[%s5400_s23 + $0x3f8] sm:$0xff] }
 0x1a5   : > { %v4789_v1 = vpop.eup %4788  ;;  %4814 = vrcp.f32 %v2240_v8  ;;  %v2312_v6 = vadd.f32 1.0, %v4787_v14  ;;  %3715 = vst.msk [vmem:[%s5545_s29 + $0x278] sm:$0xff] %vm3635_vm1, %v3570_v9  ;;  %v1664_v51 = vpop.f32.mrf.mxu1  ;;  %v2007_v2 = vmul.f32 1.442695, %v1813_v47  ;;  %v2153_v3 = vmul.f32 1.442695, %v1886_v48 }
 0x1a6   : > { %v4791_v26 = vpop.eup %4790  ;;  %4816 = vrcp.f32 %v2239_v15  ;;  %v2311_v27 = vadd.f32 1.0, %v4789_v1  ;;  %v2819_v20 = vpop.permute.xlu1 %2818  ;;  %v1665_v5 = vadd.f32 %v1664_v51, %v525_v52  ;;  %v1320_v13 = vadd.f32 %v4278_v38, %v456_v56  ;;  %v527_v37 = vld [vmem:[%s5400_s23 + $0x3f0] sm:$0xff]  ;;  %v2640_v47 = vld [vmem:[%s5520_s26 + $0x68] sm:$0xff]  ;;  %v2639_v48 = vld [vmem:[%s5520_s26 + $0x60] sm:$0xff] }
 0x1a7   : > { %v2814_v28 = vpop.permute.xlu0 %2813  ;;  %v4793_v33 = vpop.eup %4792  ;;  %4818 = vrcp.f32 %v2312_v6  ;;  %v2242_v24 = vadd.f32 1.0, %v4791_v26  ;;  %v3500_v34 = vmul.f32 %v2819_v20, %v2636_v16  ;;  %3328 = vperm.xlu1 %4445, %v5603_v10   ;;  %3323 = vperm.xlu0 %4444, %v5618_v35   ;;  %v1310_v10 = vadd.f32 %v4275_v63, %v454_v31  ;;  %v455_v63 = vld [vmem:[%s5400_s23 + $0x1b0] sm:$0xff]  ;;  %v2710_v26 = vld [vmem:[%s5520_s26 + $0x298] sm:$0xff] }
 0x1a8   : > { %v3499_v36 = vmul.f32 %v2814_v28, %v2635_v17  ;;  %v4795_v39 = vpop.eup %4794  ;;  %4820 = vrcp.f32 %v2311_v27  ;;  %v2241_v40 = vadd.f32 1.0, %v4793_v33  ;;  %v5675_v35 = vadd.f32 %v1304_v23, %v453_v32  ;;  %v1314_v62 = vpop.f32.mrf.mxu0  ;;  %v2709_v27 = vld [vmem:[%s5520_s26 + $0x290] sm:$0xff] }
 0x1a9   : > { %v4797_v49 = vpop.eup %4796  ;;  %4822 = vrcp.f32 %v2242_v24  ;;  %v2314_v50 = vadd.f32 1.0, %v4795_v39  ;;  %3645 = vst.msk [vmem:[%s5545_s29 + $0x48] sm:$0xff] %vm3635_vm1, %v3500_v34  ;;  %v1816_v9 = vsub.f32 0.0, %v1310_v10  ;;  %v4386_v14 = vpop.f32.mrf.mxu1  ;;  %v1888_v18 = vsub.f32 0.0, %v1670_v55 }
 0x1aa   : > { %3644 = vst.msk [vmem:[%s5545_s29 + $0x40] sm:$0xff] %vm3635_vm1, %v3499_v36  ;;  %v4799_v53 = vpop.eup %4798  ;;  %4824 = vrcp.f32 %v2241_v40  ;;  %v3179_v44 = vpop.permute.xlu1 %3178  ;;  %v1815_v12 = vsub.f32 0.0, %v5675_v35  ;;  %v1315_v19 = vadd.f32 %v1314_v62, %v455_v63  ;;  %v1680_v22 = vadd.f32 %v4386_v14, %v528_v7 }
 0x1ab   : > { %v3174_v42 = vpop.permute.xlu0 %3173  ;;  %v4801_v57 = vpop.eup %4800  ;;  %4826 = vrcp.f32 %v2314_v50  ;;  %v3572_v46 = vmul.f32 %v3179_v44, %v2708_v41  ;;  %2978 = vperm.xlu1 %4445, %v4797_v49   ;;  %2973 = vperm.xlu0 %4444, %v4799_v53   ;;  %v2151_v25 = vmul.f32 1.442695, %v1885_v54  ;;  %v2013_v28 = vmul.f32 1.442695, %v1816_v9 }
 0x1ac   : > { %v3571_v61 = vmul.f32 %v3174_v42, %v2707_v45  ;;  %v4803_v0 = vpop.eup %4802  ;;  %4828 = vpow2.f32 %v5633_v59  ;;  %v1818_v29 = vsub.f32 0.0, %v1320_v13  ;;  %v1674_v30 = vpop.f32.mrf.mxu1  ;;  %v2011_v24 = vmul.f32 1.442695, %v1815_v12 }
 0x1ad   : > { %v4805_v8 = vpop.eup %4804  ;;  %4830 = vpow2.f32 %v5643_v11  ;;  %3717 = vst.msk [vmem:[%s5545_s29 + $0x288] sm:$0xff] %vm3635_vm1, %v3572_v46  ;;  %v2157_v34 = vmul.f32 1.442695, %v1888_v18  ;;  %v1817_v36 = vsub.f32 0.0, %v1315_v19  ;;  %v1890_v41 = vsub.f32 0.0, %v1680_v22  ;;  %v4281_v51 = vpop.f32.mrf.mxu0  ;;  %v2712_v46 = vld [vmem:[%s5520_s26 + $0x2a8] sm:$0xff] }
 0x1ae   : > { %3716 = vst.msk [vmem:[%s5545_s29 + $0x280] sm:$0xff] %vm3635_vm1, %v3571_v61  ;;  %v4807_v15 = vpop.eup %4806  ;;  %v2313_v16 = vadd.f32 1.0, %v4805_v8  ;;  %4832 = vpow2.f32 %v5656_v21  ;;  %v2829_v59 = vpop.permute.xlu1 %2828  ;;  %v1887_v21 = vsub.f32 0.0, %v1665_v5  ;;  %v2017_v10 = vmul.f32 1.442695, %v1818_v29  ;;  %v2711_v61 = vld [vmem:[%s5520_s26 + $0x2a0] sm:$0xff] }
 0x1af   : > { %v2824_v17 = vpop.permute.xlu0 %2823  ;;  %v4809_v11 = vpop.eup %4808  ;;  %4834 = vpow2.f32 %v2147_v43  ;;  %v3502_v1 = vmul.f32 %v2829_v59, %v2638_v60  ;;  %3338 = vperm.xlu1 %4445, %v4801_v57   ;;  %3333 = vperm.xlu0 %4444, %v4803_v0   ;;  %v1675_v35 = vadd.f32 %v1674_v30, %v527_v37  ;;  %v2015_v44 = vmul.f32 1.442695, %v1817_v36  ;;  %v458_v57 = vld [vmem:[%s5400_s23 + $0x1c8] sm:$0xff]  ;;  %v457_v0 = vld [vmem:[%s5400_s23 + $0x1c0] sm:$0xff]  ;;  %v2642_v59 = vld [vmem:[%s5520_s26 + $0x78] sm:$0xff] }
 0x1b0   : > { %v3501_v6 = vmul.f32 %v2824_v17, %v2637_v4  ;;  %v4811_v23 = vpop.eup %4810  ;;  %4836 = vrcp.f32 %v2313_v16  ;;  %v2155_v49 = vmul.f32 1.442695, %v1887_v21  ;;  %v2161_v56 = vmul.f32 1.442695, %v1890_v41  ;;  %v1324_v63 = vpop.f32.mrf.mxu0  ;;  %v2641_v17 = vld [vmem:[%s5520_s26 + $0x70] sm:$0xff]  ;;  %v530_v21 = vld [vmem:[%s5400_s23 + $0x408] sm:$0xff] }
 0x1b1   : > { %v4813_v20 = vpop.eup %4812  ;;  %4838 = vpow2.f32 %v2009_v58  ;;  %3647 = vst.msk [vmem:[%s5545_s29 + $0x58] sm:$0xff] %vm3635_vm1, %v3502_v1  ;;  %v1889_v62 = vsub.f32 0.0, %v1675_v35  ;;  %v1330_v8 = vadd.f32 %v4281_v51, %v458_v57  ;;  %v1325_v18 = vadd.f32 %v1324_v63, %v457_v0  ;;  %v2713_v36 = vld [vmem:[%s5520_s26 + $0x2b0] sm:$0xff]  ;;  %v460_v41 = vld [vmem:[%s5400_s23 + $0x1d8] sm:$0xff]  ;;  %v2643_v63 = vld [vmem:[%s5520_s26 + $0x80] sm:$0xff] }
 0x1b2   : > { %3646 = vst.msk [vmem:[%s5545_s29 + $0x50] sm:$0xff] %vm3635_vm1, %v3501_v6  ;;  %v4815_v31 = vpop.eup %4814  ;;  %4840 = vpow2.f32 %v2007_v2  ;;  %v3189_v32 = vpop.permute.xlu1 %3188  ;;  %v459_v51 = vld [vmem:[%s5400_s23 + $0x1d0] sm:$0xff] }
 0x1b3   : > { %v3184_v33 = vpop.permute.xlu0 %3183  ;;  %v4817_v38 = vpop.eup %4816  ;;  %4842 = vpow2.f32 %v2153_v3  ;;  %v3574_v39 = vmul.f32 %v3189_v32, %v2710_v26  ;;  %2988 = vperm.xlu1 %4445, %v4807_v15   ;;  %2983 = vperm.xlu0 %4444, %v4809_v11   ;;  %v2159_v1 = vmul.f32 1.442695, %v1889_v62  ;;  %v1819_v37 = vsub.f32 0.0, %v1325_v18  ;;  %v2644_v62 = vld [vmem:[%s5520_s26 + $0x88] sm:$0xff] }
 0x1b4   : > { %v3573_v40 = vmul.f32 %v3184_v33, %v2709_v27  ;;  %v5699_v45 = vpop.eup %4818  ;;  %4844 = vpow2.f32 %v2151_v25  ;;  %v4389_v2 = vpop.f32.mrf.mxu1  ;;  %v1820_v27 = vsub.f32 0.0, %v1330_v8 }
 0x1b5   : > { %v5703_v50 = vpop.eup %4820  ;;  %4846 = vpow2.f32 %v2013_v28  ;;  %3719 = vst.msk [vmem:[%s5545_s29 + $0x298] sm:$0xff] %vm3635_vm1, %v3574_v39  ;;  %v4284_v22 = vpop.f32.mrf.mxu0 }
 0x1b6   : > { %3718 = vst.msk [vmem:[%s5545_s29 + $0x290] sm:$0xff] %vm3635_vm1, %v3573_v40  ;;  %v5709_v52 = vpop.eup %4822  ;;  %4848 = vpow2.f32 %v2011_v24  ;;  %v2839_v53 = vpop.permute.xlu1 %2838  ;;  %v5741_v40 = vadd.f32 %v4389_v2, %v530_v21  ;;  %v5756_v0 = vadd.f32 %v4284_v22, %v460_v41  ;;  %v534_v21 = vld [vmem:[%s5400_s23 + $0x428] sm:$0xff] }
 0x1b7   : > { %v2834_v43 = vpop.permute.xlu0 %2833  ;;  %v5711_v42 = vpop.eup %4824  ;;  %4850 = vpow2.f32 %v2157_v34  ;;  %v3504_v54 = vmul.f32 %v2839_v53, %v2640_v47  ;;  %3348 = vperm.xlu1 %4445, %v4811_v23   ;;  %3343 = vperm.xlu0 %4444, %v4813_v20   ;;  %v2714_v34 = vld [vmem:[%s5520_s26 + $0x2b8] sm:$0xff] }
 0x1b8   : > { %v3503_v55 = vmul.f32 %v2834_v43, %v2639_v48  ;;  %v5714_v58 = vpop.eup %4826  ;;  %4852 = vpow2.f32 %v2155_v49  ;;  %v1684_v6 = vpop.f32.mrf.mxu1  ;;  %v5744_v49 = vmul.f32 1.442695, %v1820_v27 }
 0x1b9   : > { %v4829_v60 = vpop.eup %4828  ;;  %3649 = vst.msk [vmem:[%s5545_s29 + $0x68] sm:$0xff] %vm3635_vm1, %v3504_v54  ;;  %4854 = vpow2.f32 %v2017_v10 }
 0x1ba   : > { %3648 = vst.msk [vmem:[%s5545_s29 + $0x60] sm:$0xff] %vm3635_vm1, %v3503_v55  ;;  %v4831_v3 = vpop.eup %4830  ;;  %v2244_v4 = vadd.f32 1.0, %v4829_v60  ;;  %v3199_v5 = vpop.permute.xlu1 %3198  ;;  %4856 = vpow2.f32 %v2015_v44  ;;  %v532_v55 = vld [vmem:[%s5400_s23 + $0x418] sm:$0xff]  ;;  %v5752_v60 = vmul.f32 1.442695, %v1819_v37 }
 0x1bb   : > { %v3194_v7 = vpop.permute.xlu0 %3193  ;;  %v4833_v9 = vpop.eup %4832  ;;  %v2243_v12 = vadd.f32 1.0, %v4831_v3  ;;  %v3576_v13 = vmul.f32 %v3199_v5, %v2712_v46  ;;  %2998 = vperm.xlu1 %4445, %v4815_v31   ;;  %2993 = vperm.xlu0 %4444, %v4817_v38   ;;  %4858 = vpow2.f32 %v2161_v56  ;;  %v529_v31 = vld [vmem:[%s5400_s23 + $0x400] sm:$0xff] }
 0x1bc   : > { %v3575_v14 = vmul.f32 %v3194_v7, %v2711_v61  ;;  %v4835_v15 = vpop.eup %4834  ;;  %4860 = vrcp.f32 %v2244_v4  ;;  %v2316_v16 = vadd.f32 1.0, %v4833_v9  ;;  %v4392_v32 = vpop.f32.mrf.mxu1  ;;  %v5746_v35 = vadd.f32 %v1684_v6, %v529_v31  ;;  %v531_v4 = vld [vmem:[%s5400_s23 + $0x410] sm:$0xff] }
 0x1bd   : > { %v5725_v19 = vpop.eup %4836  ;;  %4862 = vrcp.f32 %v2243_v12  ;;  %v2315_v11 = vadd.f32 1.0, %v4835_v15  ;;  %3721 = vst.msk [vmem:[%s5545_s29 + $0x2a8] sm:$0xff] %vm3635_vm1, %v3576_v13  ;;  %v462_v15 = vld [vmem:[%s5400_s23 + $0x1e8] sm:$0xff] }
 0x1be   : > { %3720 = vst.msk [vmem:[%s5545_s29 + $0x2a0] sm:$0xff] %vm3635_vm1, %v3575_v14  ;;  %v4839_v23 = vpop.eup %4838  ;;  %v2849_v25 = vpop.permute.xlu1 %2848  ;;  %4864 = vrcp.f32 %v2316_v16  ;;  %v1891_v13 = vsub.f32 0.0, %v5746_v35  ;;  %v1700_v14 = vadd.f32 %v4392_v32, %v532_v55 }
 0x1bf   : > { %v2844_v26 = vpop.permute.xlu0 %2843  ;;  %v4841_v20 = vpop.eup %4840  ;;  %v2246_v28 = vadd.f32 1.0, %v4839_v23  ;;  %v3506_v29 = vmul.f32 %v2849_v25, %v2642_v59  ;;  %3358 = vperm.xlu1 %4445, %v5699_v45   ;;  %3353 = vperm.xlu0 %4444, %v5703_v50   ;;  %4866 = vrcp.f32 %v2315_v11  ;;  %v1822_v23 = vsub.f32 0.0, %v5756_v0  ;;  %v2716_v25 = vld [vmem:[%s5520_s26 + $0x2c8] sm:$0xff] }
 0x1c0   : > { %v3505_v30 = vmul.f32 %v2844_v26, %v2641_v17  ;;  %v4843_v33 = vpop.eup %4842  ;;  %v2245_v24 = vadd.f32 1.0, %v4841_v20  ;;  %4868 = vpow2.f32 %v2159_v1  ;;  %v1334_v45 = vpop.f32.mrf.mxu0  ;;  %v461_v1 = vld [vmem:[%s5400_s23 + $0x1e0] sm:$0xff]  ;;  %v2163_v32 = vmul.f32 1.442695, %v1891_v13 }
 0x1c1   : > { %v4845_v38 = vpop.eup %4844  ;;  %v2318_v39 = vadd.f32 1.0, %v4843_v33  ;;  %3651 = vst.msk [vmem:[%s5545_s29 + $0x78] sm:$0xff] %vm3635_vm1, %v3506_v29  ;;  %4870 = vrcp.f32 %v2246_v28  ;;  %v1694_v56 = vpop.f32.mrf.mxu1  ;;  %v5763_v3 = vadd.f32 %v1334_v45, %v459_v51  ;;  %v2715_v26 = vld [vmem:[%s5520_s26 + $0x2c0] sm:$0xff] }
 0x1c2   : > { %3650 = vst.msk [vmem:[%s5545_s29 + $0x70] sm:$0xff] %vm3635_vm1, %v3505_v30  ;;  %v4847_v47 = vpop.eup %4846  ;;  %v2317_v48 = vadd.f32 1.0, %v4845_v38  ;;  %v3209_v50 = vpop.permute.xlu1 %3208  ;;  %4872 = vrcp.f32 %v2245_v24  ;;  %v1695_v27 = vadd.f32 %v1694_v56, %v531_v4  ;;  %v533_v30 = vld [vmem:[%s5400_s23 + $0x420] sm:$0xff]  ;;  %v2718_v4 = vld [vmem:[%s5520_s26 + $0x2d8] sm:$0xff] }
 0x1c3   : > { %v3204_v10 = vpop.permute.xlu0 %3203  ;;  %v4849_v53 = vpop.eup %4848  ;;  %v2248_v43 = vadd.f32 1.0, %v4847_v47  ;;  %v3578_v44 = vmul.f32 %v3209_v50, %v2714_v34  ;;  %3008 = vperm.xlu1 %4445, %v5709_v52   ;;  %3003 = vperm.xlu0 %4444, %v5711_v42   ;;  %4874 = vrcp.f32 %v2318_v39  ;;  %v1892_v42 = vsub.f32 0.0, %v5741_v40  ;;  %v464_v40 = vld [vmem:[%s5400_s23 + $0x1f8] sm:$0xff]  ;;  %v2645_v50 = vld [vmem:[%s5520_s26 + $0x90] sm:$0xff] }
 0x1c4   : > { %v3577_v54 = vmul.f32 %v3204_v10, %v2713_v36  ;;  %v4287_v57 = vpop.f32.mrf.mxu0  ;;  %v4851_v46 = vpop.eup %4850  ;;  %v2247_v61 = vadd.f32 1.0, %v4849_v53  ;;  %4876 = vrcp.f32 %v2317_v48  ;;  %v1894_v34 = vsub.f32 0.0, %v1700_v14  ;;  %v2646_v48 = vld [vmem:[%s5520_s26 + $0x98] sm:$0xff] }
 0x1c5   : > { %v4853_v2 = vpop.eup %4852  ;;  %v2320_v52 = vadd.f32 1.0, %v4851_v46  ;;  %3723 = vst.msk [vmem:[%s5545_s29 + $0x2b8] sm:$0xff] %vm3635_vm1, %v3578_v44  ;;  %v4395_v5 = vpop.f32.mrf.mxu1  ;;  %4878 = vrcp.f32 %v2248_v43  ;;  %v2165_v28 = vmul.f32 1.442695, %v1892_v42  ;;  %v1893_v10 = vsub.f32 0.0, %v1695_v27  ;;  %v2647_v27 = vld [vmem:[%s5520_s26 + $0xa0] sm:$0xff] }
 0x1c6   : > { %3722 = vst.msk [vmem:[%s5545_s29 + $0x2b0] sm:$0xff] %vm3635_vm1, %v3577_v54  ;;  %v4855_v7 = vpop.eup %4854  ;;  %v2319_v8 = vadd.f32 1.0, %v4853_v2  ;;  %v2859_v9 = vpop.permute.xlu1 %2858  ;;  %4880 = vrcp.f32 %v2247_v61  ;;  %v1710_v39 = vadd.f32 %v4395_v5, %v534_v21  ;;  %v2025_v53 = vmul.f32 1.442695, %v1822_v23  ;;  %v463_v2 = vld [vmem:[%s5400_s23 + $0x1f0] sm:$0xff] }
 0x1c7   : > { %v2854_v12 = vpop.permute.xlu0 %2853  ;;  %v4857_v16 = vpop.eup %4856  ;;  %v2250_v59 = vadd.f32 1.0, %v4855_v7  ;;  %v3508_v17 = vmul.f32 %v2859_v9, %v2644_v62  ;;  %3368 = vperm.xlu1 %4445, %v5714_v58   ;;  %3363 = vperm.xlu0 %4444, %v5725_v19   ;;  %4882 = vrcp.f32 %v2320_v52  ;;  %v1821_v58 = vsub.f32 0.0, %v5763_v3  ;;  %v2717_v5 = vld [vmem:[%s5520_s26 + $0x2d0] sm:$0xff] }
 0x1c8   : > { %v3507_v18 = vmul.f32 %v2854_v12, %v2643_v63  ;;  %v1344_v11 = vpop.f32.mrf.mxu0  ;;  %v4859_v6 = vpop.eup %4858  ;;  %v2249_v22 = vadd.f32 1.0, %v4857_v16  ;;  %4884 = vrcp.f32 %v2319_v8  ;;  %v1350_v19 = vadd.f32 %v4287_v57, %v462_v15  ;;  %v535_v23 = vld [vmem:[%s5400_s23 + $0x430] sm:$0xff] }
 0x1c9   : > { %v4861_v20 = vpop.eup %4860  ;;  %3653 = vst.msk [vmem:[%s5545_s29 + $0x88] sm:$0xff] %vm3635_vm1, %v3508_v17  ;;  %v1704_v29 = vpop.f32.mrf.mxu1  ;;  %4886 = vrcp.f32 %v2250_v59  ;;  %v1345_v36 = vadd.f32 %v1344_v11, %v461_v1  ;;  %v2322_v47 = vadd.f32 1.0, %v4859_v6  ;;  %v2023_v43 = vmul.f32 1.442695, %v1821_v58  ;;  %v536_v6 = vld [vmem:[%s5400_s23 + $0x438] sm:$0xff] }
 0x1ca   : > { %3652 = vst.msk [vmem:[%s5545_s29 + $0x80] sm:$0xff] %vm3635_vm1, %v3507_v18  ;;  %v4863_v31 = vpop.eup %4862  ;;  %v3219_v33 = vpop.permute.xlu1 %3218  ;;  %4888 = vrcp.f32 %v2249_v22  ;;  %v1705_v35 = vadd.f32 %v1704_v29, %v533_v30  ;;  %v1824_v44 = vsub.f32 0.0, %v1350_v19  ;;  %v2169_v55 = vmul.f32 1.442695, %v1894_v34 }
 0x1cb   : > { %v3214_v24 = vpop.permute.xlu0 %3213  ;;  %v3580_v37 = vmul.f32 %v3219_v33, %v2716_v25  ;;  %3018 = vperm.xlu1 %4445, %v4861_v20   ;;  %3013 = vperm.xlu0 %4444, %v4863_v31   ;;  %v4290_v41 = vpop.f32.mrf.mxu0  ;;  %4890 = vpow2.f32 %v5744_v49  ;;  %v1823_v57 = vsub.f32 0.0, %v1345_v36  ;;  %v1896_v63 = vsub.f32 0.0, %v1710_v39  ;;  %v2719_v39 = vld [vmem:[%s5520_s26 + $0x2e0] sm:$0xff] }
 0x1cc   : > { %v3579_v38 = vmul.f32 %v3214_v24, %v2715_v26  ;;  %v4865_v45 = vpop.eup %4864  ;;  %4892 = vpow2.f32 %v5752_v60  ;;  %v1360_v46 = vadd.f32 %v4290_v41, %v464_v40  ;;  %v4398_v52 = vpop.f32.mrf.mxu1  ;;  %v2167_v3 = vmul.f32 1.442695, %v1893_v10  ;;  %v2648_v26 = vld [vmem:[%s5520_s26 + $0xa8] sm:$0xff] }
 0x1cd   : > { %v4867_v51 = vpop.eup %4866  ;;  %3725 = vst.msk [vmem:[%s5545_s29 + $0x2c8] sm:$0xff] %vm3635_vm1, %v3580_v37  ;;  %4894 = vpow2.f32 %v2165_v28  ;;  %v1354_v0 = vpop.f32.mrf.mxu0  ;;  %v1895_v7 = vsub.f32 0.0, %v1705_v35  ;;  %v2029_v9 = vmul.f32 1.442695, %v1824_v44  ;;  %v2027_v15 = vmul.f32 1.442695, %v1823_v57 }
 0x1ce   : > { %3724 = vst.msk [vmem:[%s5545_s29 + $0x2c0] sm:$0xff] %vm3635_vm1, %v3579_v38  ;;  %v4869_v54 = vpop.eup %4868  ;;  %v2869_v56 = vpop.permute.xlu1 %2868  ;;  %4896 = vpow2.f32 %v2163_v32  ;;  %v1826_v16 = vsub.f32 0.0, %v1360_v46  ;;  %v1355_v59 = vadd.f32 %v1354_v0, %v463_v2  ;;  %v2173_v1 = vmul.f32 1.442695, %v1896_v63  ;;  %v2720_v38 = vld [vmem:[%s5520_s26 + $0x2e8] sm:$0xff]  ;;  %v2650_v57 = vld [vmem:[%s5520_s26 + $0xb8] sm:$0xff] }
 0x1cf   : > { %v2864_v49 = vpop.permute.xlu0 %2863  ;;  %v4871_v61 = vpop.eup %4870  ;;  %v3510_v60 = vmul.f32 %v2869_v56, %v2646_v48  ;;  %3378 = vperm.xlu1 %4445, %v4865_v45   ;;  %3373 = vperm.xlu0 %4444, %v4867_v51   ;;  %4898 = vrcp.f32 %v2322_v47  ;;  %v2171_v21 = vmul.f32 1.442695, %v1895_v7  ;;  %v2321_v28 = vadd.f32 1.0, %v4869_v54  ;;  %v2649_v46 = vld [vmem:[%s5520_s26 + $0xb0] sm:$0xff]  ;;  %v465_v0 = vld [vmem:[%s5400_s23 + $0x200] sm:$0xff] }
 0x1d0   : > { %v3509_v62 = vmul.f32 %v2864_v49, %v2645_v50  ;;  %v4873_v42 = vpop.eup %4872  ;;  %4900 = vpow2.f32 %v2025_v53  ;;  %v1714_v22 = vpop.f32.mrf.mxu1  ;;  %v1825_v30 = vsub.f32 0.0, %v1355_v59  ;;  %v1720_v31 = vadd.f32 %v4398_v52, %v536_v6 }
 0x1d1   : > { %v4875_v8 = vpop.eup %4874  ;;  %3655 = vst.msk [vmem:[%s5545_s29 + $0x98] sm:$0xff] %vm3635_vm1, %v3510_v60  ;;  %4902 = vpow2.f32 %v2023_v43  ;;  %v1715_v32 = vadd.f32 %v1714_v22, %v535_v23  ;;  %v2033_v36 = vmul.f32 1.442695, %v1826_v16  ;;  %v4293_v41 = vpop.f32.mrf.mxu0 }
 0x1d2   : > { %3654 = vst.msk [vmem:[%s5545_s29 + $0x90] sm:$0xff] %vm3635_vm1, %v3509_v62  ;;  %v4877_v12 = vpop.eup %4876  ;;  %v3229_v13 = vpop.permute.xlu1 %3228  ;;  %4904 = vpow2.f32 %v2169_v55  ;;  %v2031_v10 = vmul.f32 1.442695, %v1825_v30  ;;  %v1898_v35 = vsub.f32 0.0, %v1720_v31  ;;  %v466_v62 = vld [vmem:[%s5400_s23 + $0x208] sm:$0xff] }
 0x1d3   : > { %v3224_v14 = vpop.permute.xlu0 %3223  ;;  %v4879_v17 = vpop.eup %4878  ;;  %v3582_v18 = vmul.f32 %v3229_v13, %v2718_v4  ;;  %3028 = vperm.xlu1 %4445, %v4871_v61   ;;  %3023 = vperm.xlu0 %4444, %v4873_v42   ;;  %4906 = vpow2.f32 %v2167_v3  ;;  %v1897_v51 = vsub.f32 0.0, %v1715_v32  ;;  %v538_v4 = vld [vmem:[%s5400_s23 + $0x448] sm:$0xff]  ;;  %v537_v13 = vld [vmem:[%s5400_s23 + $0x440] sm:$0xff]  ;;  %v1370_v59 = vadd.f32 %v4293_v41, %v466_v62  ;;  %v467_v32 = vld [vmem:[%s5400_s23 + $0x210] sm:$0xff] }
 0x1d4   : > { %v3581_v11 = vmul.f32 %v3224_v14, %v2717_v5  ;;  %v4881_v25 = vpop.eup %4880  ;;  %4908 = vpow2.f32 %v2029_v9  ;;  %v4401_v55 = vpop.f32.mrf.mxu1  ;;  %v2177_v52 = vmul.f32 1.442695, %v1898_v35  ;;  %v2724_v62 = vld [vmem:[%s5520_s26 + $0x308] sm:$0xff] }
 0x1d5   : > { %v5801_v20 = vpop.eup %4882  ;;  %3727 = vst.msk [vmem:[%s5545_s29 + $0x2d8] sm:$0xff] %vm3635_vm1, %v3582_v18  ;;  %4910 = vpow2.f32 %v2027_v15  ;;  %v1364_v63 = vpop.f32.mrf.mxu0  ;;  %v2175_v9 = vmul.f32 1.442695, %v1897_v51  ;;  %v2721_v18 = vld [vmem:[%s5520_s26 + $0x2f0] sm:$0xff]  ;;  %v5838_v22 = vadd.f32 %v4401_v55, %v538_v4 }
 0x1d6   : > { %3726 = vst.msk [vmem:[%s5545_s29 + $0x2d0] sm:$0xff] %vm3635_vm1, %v3581_v11  ;;  %v4885_v58 = vpop.eup %4884  ;;  %v2879_v19 = vpop.permute.xlu1 %2878  ;;  %4912 = vpow2.f32 %v2173_v1  ;;  %v5832_v11 = vadd.f32 %v1364_v63, %v465_v0  ;;  %v2723_v63 = vld [vmem:[%s5520_s26 + $0x300] sm:$0xff] }
 0x1d7   : > { %v2874_v29 = vpop.permute.xlu0 %2873  ;;  %v5807_v33 = vpop.eup %4886  ;;  %v3512_v24 = vmul.f32 %v2879_v19, %v2648_v26  ;;  %3388 = vperm.xlu1 %4445, %v4875_v8   ;;  %3383 = vperm.xlu0 %4444, %v4877_v12   ;;  %4914 = vpow2.f32 %v2171_v21 }
 0x1d8   : > { %v3511_v34 = vmul.f32 %v2874_v29, %v2647_v27  ;;  %v5809_v37 = vpop.eup %4888  ;;  %4916 = vrcp.f32 %v2321_v28  ;;  %v1724_v12 = vpop.f32.mrf.mxu1  ;;  %v468_v28 = vld [vmem:[%s5400_s23 + $0x218] sm:$0xff] }
 0x1d9   : > { %v4891_v40 = vpop.eup %4890  ;;  %3657 = vst.msk [vmem:[%s5545_s29 + $0xa8] sm:$0xff] %vm3635_vm1, %v3512_v24  ;;  %4918 = vpow2.f32 %v2033_v36  ;;  %v4296_v14 = vpop.f32.mrf.mxu0  ;;  %v1828_v36 = vsub.f32 0.0, %v1370_v59 }
 0x1da   : > { %3656 = vst.msk [vmem:[%s5545_s29 + $0xa0] sm:$0xff] %vm3635_vm1, %v3511_v34  ;;  %v4893_v45 = vpop.eup %4892  ;;  %v2252_v47 = vadd.f32 1.0, %v4891_v40  ;;  %v3239_v48 = vpop.permute.xlu1 %3238  ;;  %v2651_v40 = vld [vmem:[%s5520_s26 + $0xc0] sm:$0xff] }
 0x1db   : > { %v3234_v50 = vpop.permute.xlu0 %3233  ;;  %v4895_v53 = vpop.eup %4894  ;;  %v2251_v43 = vadd.f32 1.0, %v4893_v45  ;;  %v3584_v44 = vmul.f32 %v3239_v48, %v2720_v38  ;;  %3038 = vperm.xlu1 %4445, %v4879_v17   ;;  %3033 = vperm.xlu0 %4444, %v4881_v25   ;;  %v2722_v17 = vld [vmem:[%s5520_s26 + $0x2f8] sm:$0xff]  ;;  %v1827_v38 = vsub.f32 0.0, %v5832_v11  ;;  %v541_v11 = vld [vmem:[%s5400_s23 + $0x460] sm:$0xff] }
 0x1dc   : > { %v3583_v54 = vmul.f32 %v3234_v50, %v2719_v39  ;;  %v4897_v56 = vpop.eup %4896  ;;  %4920 = vrcp.f32 %v2252_v47  ;;  %v2324_v49 = vadd.f32 1.0, %v4895_v53  ;;  %v4404_v23 = vpop.f32.mrf.mxu1  ;;  %v2652_v39 = vld [vmem:[%s5520_s26 + $0xc8] sm:$0xff]  ;;  %v540_v47 = vld [vmem:[%s5400_s23 + $0x458] sm:$0xff] }
 0x1dd   : > { %v5819_v61 = vpop.eup %4898  ;;  %4922 = vrcp.f32 %v2251_v43  ;;  %v2323_v60 = vadd.f32 1.0, %v4897_v56  ;;  %3729 = vst.msk [vmem:[%s5545_s29 + $0x2e8] sm:$0xff] %vm3635_vm1, %v3584_v44  ;;  %v1374_v31 = vpop.f32.mrf.mxu0  ;;  %v1740_v0 = vadd.f32 %v4404_v23, %v540_v47 }
 0x1de   : > { %3728 = vst.msk [vmem:[%s5545_s29 + $0x2e0] sm:$0xff] %vm3635_vm1, %v3583_v54  ;;  %v4901_v2 = vpop.eup %4900  ;;  %v2889_v42 = vpop.permute.xlu1 %2888  ;;  %4924 = vpow2.f32 %v2031_v10  ;;  %v1375_v44 = vadd.f32 %v1374_v31, %v467_v32  ;;  %v539_v54 = vld [vmem:[%s5400_s23 + $0x450] sm:$0xff] }
 0x1df   : > { %v2884_v3 = vpop.permute.xlu0 %2883  ;;  %v4903_v5 = vpop.eup %4902  ;;  %v3514_v7 = vmul.f32 %v2889_v42, %v2650_v57  ;;  %3398 = vperm.xlu1 %4445, %v5801_v20   ;;  %3393 = vperm.xlu0 %4444, %v4885_v58   ;;  %4926 = vrcp.f32 %v2324_v49  ;;  %v2254_v16 = vadd.f32 1.0, %v4901_v2  ;;  %v1725_v20 = vadd.f32 %v1724_v12, %v537_v13  ;;  %v470_v2 = vld [vmem:[%s5400_s23 + $0x228] sm:$0xff] }
 0x1e0   : > { %v3513_v8 = vmul.f32 %v2884_v3, %v2649_v46  ;;  %v4905_v15 = vpop.eup %4904  ;;  %4928 = vrcp.f32 %v2323_v60  ;;  %v2253_v6 = vadd.f32 1.0, %v4903_v5  ;;  %v1734_v48 = vpop.f32.mrf.mxu1  ;;  %v2037_v60 = vmul.f32 1.442695, %v1828_v36  ;;  %v469_v5 = vld [vmem:[%s5400_s23 + $0x220] sm:$0xff] }
 0x1e1   : > { %v4907_v1 = vpop.eup %4906  ;;  %3659 = vst.msk [vmem:[%s5545_s29 + $0xb8] sm:$0xff] %vm3635_vm1, %v3514_v7  ;;  %v2326_v26 = vadd.f32 1.0, %v4905_v15  ;;  %4930 = vpow2.f32 %v2177_v52  ;;  %v4299_v50 = vpop.f32.mrf.mxu0  ;;  %v1899_v43 = vsub.f32 0.0, %v1725_v20  ;;  %v2035_v42 = vmul.f32 1.442695, %v1827_v38  ;;  %v542_v15 = vld [vmem:[%s5400_s23 + $0x468] sm:$0xff] }
 0x1e2   : > { %3658 = vst.msk [vmem:[%s5545_s29 + $0xb0] sm:$0xff] %vm3635_vm1, %v3513_v8  ;;  %v4909_v25 = vpop.eup %4908  ;;  %v3249_v27 = vpop.permute.xlu1 %3248  ;;  %v2325_v19 = vadd.f32 1.0, %v4907_v1  ;;  %4932 = vpow2.f32 %v2175_v9  ;;  %v1902_v23 = vsub.f32 0.0, %v1740_v0 }
 0x1e3   : > { %v3244_v21 = vpop.permute.xlu0 %3243  ;;  %v4911_v58 = vpop.eup %4910  ;;  %v3586_v29 = vmul.f32 %v3249_v27, %v2722_v17  ;;  %3048 = vperm.xlu1 %4445, %v5807_v33   ;;  %3043 = vperm.xlu0 %4444, %v5809_v37   ;;  %4934 = vrcp.f32 %v2254_v16  ;;  %v2256_v34 = vadd.f32 1.0, %v4909_v25  ;;  %v1900_v33 = vsub.f32 0.0, %v5838_v22  ;;  %v2654_v25 = vld [vmem:[%s5520_s26 + $0xd8] sm:$0xff] }
 0x1e4   : > { %v3585_v30 = vmul.f32 %v3244_v21, %v2721_v18  ;;  %v4913_v24 = vpop.eup %4912  ;;  %4936 = vrcp.f32 %v2253_v6  ;;  %v2255_v45 = vadd.f32 1.0, %v4911_v58  ;;  %v1380_v37 = vadd.f32 %v4296_v14, %v468_v28  ;;  %v4407_v57 = vpop.f32.mrf.mxu1 }
 0x1e5   : > { %v4915_v41 = vpop.eup %4914  ;;  %3731 = vst.msk [vmem:[%s5545_s29 + $0x2f8] sm:$0xff] %vm3635_vm1, %v3586_v29  ;;  %4938 = vrcp.f32 %v2326_v26  ;;  %v2328_v35 = vadd.f32 1.0, %v4913_v24  ;;  %v1384_v4 = vpop.f32.mrf.mxu0  ;;  %v2181_v8 = vmul.f32 1.442695, %v1900_v33  ;;  %v2179_v9 = vmul.f32 1.442695, %v1899_v43 }
 0x1e6   : > { %3730 = vst.msk [vmem:[%s5545_s29 + $0x2f0] sm:$0xff] %vm3635_vm1, %v3585_v30  ;;  %v4917_v10 = vpop.eup %4916  ;;  %v2899_v51 = vpop.permute.xlu1 %2898  ;;  %4940 = vrcp.f32 %v2325_v19  ;;  %v2327_v55 = vadd.f32 1.0, %v4915_v41  ;;  %v1830_v3 = vsub.f32 0.0, %v1380_v37  ;;  %v1829_v14 = vsub.f32 0.0, %v1375_v44  ;;  %v2653_v26 = vld [vmem:[%s5520_s26 + $0xd0] sm:$0xff]  ;;  %v472_v24 = vld [vmem:[%s5400_s23 + $0x238] sm:$0xff] }
 0x1e7   : > { %v2894_v53 = vpop.permute.xlu0 %2893  ;;  %v3516_v56 = vmul.f32 %v2899_v51, %v2652_v39  ;;  %3408 = vperm.xlu1 %4445, %v5819_v61   ;;  %3403 = vperm.xlu0 %4444, %v4917_v10   ;;  %v4919_v46 = vpop.eup %4918  ;;  %4942 = vrcp.f32 %v2256_v34  ;;  %v1735_v61 = vadd.f32 %v1734_v48, %v539_v54  ;;  %v5864_v17 = vadd.f32 %v4299_v50, %v470_v2  ;;  %v471_v41 = vld [vmem:[%s5400_s23 + $0x230] sm:$0xff]  ;;  %v2726_v48 = vld [vmem:[%s5520_s26 + $0x318] sm:$0xff] }
 0x1e8   : > { %v3515_v49 = vmul.f32 %v2894_v53, %v2651_v40  ;;  %4944 = vrcp.f32 %v2255_v45  ;;  %v1744_v18 = vpop.f32.mrf.mxu1  ;;  %v4302_v1 = vpop.f32.mrf.mxu0  ;;  %v2258_v22 = vadd.f32 1.0, %v4919_v46  ;;  %v5869_v27 = vadd.f32 %v1384_v4, %v469_v5  ;;  %v2725_v50 = vld [vmem:[%s5520_s26 + $0x310] sm:$0xff]  ;;  %v544_v46 = vld [vmem:[%s5400_s23 + $0x478] sm:$0xff]  ;;  %v2655_v4 = vld [vmem:[%s5520_s26 + $0xe0] sm:$0xff] }
 0x1e9   : > { %v4921_v52 = vpop.eup %4920  ;;  %3661 = vst.msk [vmem:[%s5545_s29 + $0xc8] sm:$0xff] %vm3635_vm1, %v3516_v56  ;;  %4946 = vrcp.f32 %v2328_v35  ;;  %v2041_v20 = vmul.f32 1.442695, %v1830_v3  ;;  %v1901_v28 = vsub.f32 0.0, %v1735_v61  ;;  %v5875_v58 = vadd.f32 %v4407_v57, %v542_v15  ;;  %v2656_v61 = vld [vmem:[%s5520_s26 + $0xe8] sm:$0xff] }
 0x1ea   : > { %3660 = vst.msk [vmem:[%s5545_s29 + $0xc0] sm:$0xff] %vm3635_vm1, %v3515_v49  ;;  %v4923_v7 = vpop.eup %4922  ;;  %v3259_v12 = vpop.permute.xlu1 %3258  ;;  %4948 = vrcp.f32 %v2327_v55  ;;  %v2039_v29 = vmul.f32 1.442695, %v1829_v14  ;;  %v5877_v32 = vadd.f32 %v1744_v18, %v541_v11  ;;  %v2185_v37 = vmul.f32 1.442695, %v1902_v23  ;;  %v2727_v23 = vld [vmem:[%s5520_s26 + $0x320] sm:$0xff] }
 0x1eb   : > { %v3254_v13 = vpop.permute.xlu0 %3253  ;;  %v3588_v16 = vmul.f32 %v3259_v12, %v2724_v62  ;;  %3058 = vperm.xlu1 %4445, %v4921_v52   ;;  %3053 = vperm.xlu0 %4444, %v4923_v7   ;;  %v4925_v6 = vpop.eup %4924  ;;  %4950 = vpow2.f32 %v2037_v60  ;;  %v1832_v47 = vsub.f32 0.0, %v5864_v17  ;;  %v1831_v10 = vsub.f32 0.0, %v5869_v27  ;;  %v543_v52 = vld [vmem:[%s5400_s23 + $0x470] sm:$0xff] }
 0x1ec   : > { %v3587_v59 = vmul.f32 %v3254_v13, %v2723_v63  ;;  %v4927_v21 = vpop.eup %4926  ;;  %4952 = vpow2.f32 %v2035_v42  ;;  %v2257_v36 = vadd.f32 1.0, %v4925_v6  ;;  %v1394_v40 = vpop.f32.mrf.mxu0  ;;  %v2183_v51 = vmul.f32 1.442695, %v1901_v28 }
 0x1ed   : > { %3733 = vst.msk [vmem:[%s5545_s29 + $0x308] sm:$0xff] %vm3635_vm1, %v3588_v16  ;;  %v4929_v19 = vpop.eup %4928  ;;  %4954 = vpow2.f32 %v2181_v8  ;;  %v4410_v45 = vpop.f32.mrf.mxu1  ;;  %v1904_v53 = vsub.f32 0.0, %v5875_v58  ;;  %v1400_v43 = vadd.f32 %v4302_v1, %v472_v24  ;;  %v1903_v49 = vsub.f32 0.0, %v5877_v32 }
 0x1ee   : > { %3732 = vst.msk [vmem:[%s5545_s29 + $0x300] sm:$0xff] %vm3635_vm1, %v3587_v59  ;;  %v2909_v30 = vpop.permute.xlu1 %2908  ;;  %v4931_v34 = vpop.eup %4930  ;;  %4956 = vpow2.f32 %v2179_v9  ;;  %v1395_v57 = vadd.f32 %v1394_v40, %v471_v41  ;;  %v2045_v3 = vmul.f32 1.442695, %v1832_v47  ;;  %v2043_v7 = vmul.f32 1.442695, %v1831_v10 }
 0x1ef   : > { %v2904_v31 = vpop.permute.xlu0 %2903  ;;  %v3518_v38 = vmul.f32 %v2909_v30, %v2654_v25  ;;  %3418 = vperm.xlu1 %4445, %v4927_v21   ;;  %3413 = vperm.xlu0 %4444, %v4929_v19   ;;  %v4933_v33 = vpop.eup %4932  ;;  %4958 = vrcp.f32 %v2258_v22  ;;  %v2330_v54 = vadd.f32 1.0, %v4931_v34  ;;  %v1834_v8 = vsub.f32 0.0, %v1400_v43  ;;  %v2728_v22 = vld [vmem:[%s5520_s26 + $0x328] sm:$0xff]  ;;  %v2730_v43 = vld [vmem:[%s5520_s26 + $0x338] sm:$0xff] }
 0x1f0   : > { %v3517_v39 = vmul.f32 %v2904_v31, %v2653_v26  ;;  %v4935_v35 = vpop.eup %4934  ;;  %4960 = vpow2.f32 %v2041_v20  ;;  %v2329_v62 = vadd.f32 1.0, %v4933_v33  ;;  %v1754_v2 = vpop.f32.mrf.mxu1  ;;  %v1760_v9 = vadd.f32 %v4410_v45, %v544_v46 }
 0x1f1   : > { %3663 = vst.msk [vmem:[%s5545_s29 + $0xd8] sm:$0xff] %vm3635_vm1, %v3518_v38  ;;  %v4937_v44 = vpop.eup %4936  ;;  %4962 = vpow2.f32 %v2039_v29  ;;  %v2189_v13 = vmul.f32 1.442695, %v1904_v53  ;;  %v1833_v16 = vsub.f32 0.0, %v1395_v57  ;;  %v1755_v59 = vadd.f32 %v1754_v2, %v543_v52  ;;  %v2658_v38 = vld [vmem:[%s5520_s26 + $0xf8] sm:$0xff]  ;;  %v2660_v2 = vld [vmem:[%s5520_s26 + $0x108] sm:$0xff] }
 0x1f2   : > { %3662 = vst.msk [vmem:[%s5545_s29 + $0xd0] sm:$0xff] %vm3635_vm1, %v3517_v39  ;;  %v3269_v55 = vpop.permute.xlu1 %3268  ;;  %v4939_v60 = vpop.eup %4938  ;;  %4964 = vrcp.f32 %v2257_v36  ;;  %v2187_v1 = vmul.f32 1.442695, %v1903_v49  ;;  %v2049_v26 = vmul.f32 1.442695, %v1834_v8  ;;  %v1906_v27 = vsub.f32 0.0, %v1760_v9 }
 0x1f3   : > { %v3264_v56 = vpop.permute.xlu0 %3263  ;;  %v3590_v63 = vmul.f32 %v3269_v55, %v2726_v48  ;;  %3068 = vperm.xlu1 %4445, %v4935_v35   ;;  %3063 = vperm.xlu0 %4444, %v4937_v44   ;;  %v4941_v42 = vpop.eup %4940  ;;  %4966 = vpow2.f32 %v2185_v37  ;;  %v2047_v19 = vmul.f32 1.442695, %v1833_v16  ;;  %v1905_v29 = vsub.f32 0.0, %v1755_v59  ;;  %v2657_v39 = vld [vmem:[%s5520_s26 + $0xf0] sm:$0xff]  ;;  %v2659_v52 = vld [vmem:[%s5520_s26 + $0x100] sm:$0xff] }
 0x1f4   : > { %v3589_v0 = vmul.f32 %v3264_v56, %v2725_v50  ;;  %v4943_v5 = vpop.eup %4942  ;;  %4968 = vpow2.f32 %v2183_v51  ;;  %v2193_v33 = vmul.f32 1.442695, %v1906_v27  ;;  %v2729_v44 = vld [vmem:[%s5520_s26 + $0x330] sm:$0xff] }
 0x1f5   : > { %3735 = vst.msk [vmem:[%s5545_s29 + $0x318] sm:$0xff] %vm3635_vm1, %v3590_v63  ;;  %v4945_v12 = vpop.eup %4944  ;;  %4970 = vrcp.f32 %v2330_v54  ;;  %v2191_v35 = vmul.f32 1.442695, %v1905_v29  ;;  %v2661_v27 = vld [vmem:[%s5520_s26 + $0x110] sm:$0xff] }
 0x1f6   : > { %3734 = vst.msk [vmem:[%s5545_s29 + $0x310] sm:$0xff] %vm3635_vm1, %v3589_v0  ;;  %v2919_v14 = vpop.permute.xlu1 %2918  ;;  %v4947_v17 = vpop.eup %4946  ;;  %4972 = vrcp.f32 %v2329_v62 }
 0x1f7   : > { %v2914_v15 = vpop.permute.xlu0 %2913  ;;  %v3520_v18 = vmul.f32 %v2919_v14, %v2656_v61  ;;  %3428 = vperm.xlu1 %4445, %v4939_v60   ;;  %3423 = vperm.xlu0 %4444, %v4941_v42   ;;  %v4949_v6 = vpop.eup %4948  ;;  %4974 = vpow2.f32 %v2045_v3  ;;  %v2732_v14 = vld [vmem:[%s5520_s26 + $0x348] sm:$0xff] }
 0x1f8   : > { %v3519_v11 = vmul.f32 %v2914_v15, %v2655_v4  ;;  %v4951_v25 = vpop.eup %4950  ;;  %4976 = vpow2.f32 %v2043_v7  ;;  %v2731_v15 = vld [vmem:[%s5520_s26 + $0x340] sm:$0xff] }
 0x1f9   : > { %3665 = vst.msk [vmem:[%s5545_s29 + $0xe8] sm:$0xff] %vm3635_vm1, %v3520_v18  ;;  %v4953_v21 = vpop.eup %4952  ;;  %v2260_v20 = vadd.f32 1.0, %v4951_v25  ;;  %4978 = vpow2.f32 %v2189_v13 }
 0x1fa   : > { %3664 = vst.msk [vmem:[%s5545_s29 + $0xe0] sm:$0xff] %vm3635_vm1, %v3519_v11  ;;  %v3279_v28 = vpop.permute.xlu1 %3278  ;;  %v4955_v30 = vpop.eup %4954  ;;  %v2259_v31 = vadd.f32 1.0, %v4953_v21  ;;  %4980 = vpow2.f32 %v2187_v1 }
 0x1fb   : > { %v3274_v58 = vpop.permute.xlu0 %3273  ;;  %v3592_v32 = vmul.f32 %v3279_v28, %v2728_v22  ;;  %3078 = vperm.xlu1 %4445, %v4943_v5   ;;  %3073 = vperm.xlu0 %4444, %v4945_v12   ;;  %v4957_v34 = vpop.eup %4956  ;;  %4982 = vrcp.f32 %v2260_v20  ;;  %v2332_v36 = vadd.f32 1.0, %v4955_v30 }
 0x1fc   : > { %v3591_v24 = vmul.f32 %v3274_v58, %v2727_v23  ;;  %v4959_v40 = vpop.eup %4958  ;;  %4984 = vrcp.f32 %v2259_v31  ;;  %v2331_v41 = vadd.f32 1.0, %v4957_v34  ;;  %v2734_v34 = vld [vmem:[%s5520_s26 + $0x358] sm:$0xff] }
 0x1fd   : > { %3737 = vst.msk [vmem:[%s5545_s29 + $0x328] sm:$0xff] %vm3635_vm1, %v3592_v32  ;;  %v4961_v45 = vpop.eup %4960  ;;  %4986 = vpow2.f32 %v2049_v26  ;;  %v2662_v26 = vld [vmem:[%s5520_s26 + $0x118] sm:$0xff] }
 0x1fe   : > { %3736 = vst.msk [vmem:[%s5545_s29 + $0x320] sm:$0xff] %vm3635_vm1, %v3591_v24  ;;  %v2929_v37 = vpop.permute.xlu1 %2928  ;;  %v4963_v48 = vpop.eup %4962  ;;  %4988 = vpow2.f32 %v2047_v19  ;;  %v2262_v53 = vadd.f32 1.0, %v4961_v45 }
 0x1ff   : > { %v2924_v47 = vpop.permute.xlu0 %2923  ;;  %v3522_v50 = vmul.f32 %v2929_v37, %v2658_v38  ;;  %3438 = vperm.xlu1 %4445, %v4947_v17   ;;  %3433 = vperm.xlu0 %4444, %v4949_v6   ;;  %v4965_v51 = vpop.eup %4964  ;;  %4990 = vrcp.f32 %v2332_v36  ;;  %v2261_v55 = vadd.f32 1.0, %v4963_v48  ;;  %v2733_v36 = vld [vmem:[%s5520_s26 + $0x350] sm:$0xff]  ;;  %v2664_v48 = vld [vmem:[%s5520_s26 + $0x128] sm:$0xff] }
 0x200   : > { %v3521_v10 = vmul.f32 %v2924_v47, %v2657_v39  ;;  %v4967_v54 = vpop.eup %4966  ;;  %4992 = vrcp.f32 %v2331_v41 }
 0x201   : > { %3667 = vst.msk [vmem:[%s5545_s29 + $0xf8] sm:$0xff] %vm3635_vm1, %v3522_v50  ;;  %v4969_v56 = vpop.eup %4968  ;;  %4994 = vpow2.f32 %v2193_v33  ;;  %v2334_v0 = vadd.f32 1.0, %v4967_v54  ;;  %v2663_v50 = vld [vmem:[%s5520_s26 + $0x120] sm:$0xff] }
 0x202   : > { %3666 = vst.msk [vmem:[%s5545_s29 + $0xf0] sm:$0xff] %vm3635_vm1, %v3521_v10  ;;  %v3289_v49 = vpop.permute.xlu1 %3288  ;;  %v4971_v46 = vpop.eup %4970  ;;  %4996 = vpow2.f32 %v2191_v35  ;;  %v2333_v3 = vadd.f32 1.0, %v4969_v56  ;;  %v2735_v56 = vld [vmem:[%s5520_s26 + $0x360] sm:$0xff] }
 0x203   : > { %v3284_v57 = vpop.permute.xlu0 %3283  ;;  %v3594_v60 = vmul.f32 %v3289_v49, %v2730_v43  ;;  %3088 = vperm.xlu1 %4445, %v4959_v40   ;;  %3083 = vperm.xlu0 %4444, %v4965_v51   ;;  %v4973_v63 = vpop.eup %4972  ;;  %4998 = vrcp.f32 %v2262_v53 }
 0x204   : > { %v3593_v62 = vmul.f32 %v3284_v57, %v2729_v44  ;;  %v4975_v42 = vpop.eup %4974  ;;  %5000 = vrcp.f32 %v2261_v55  ;;  %v2736_v55 = vld [vmem:[%s5520_s26 + $0x368] sm:$0xff] }
 0x205   : > { %3739 = vst.msk [vmem:[%s5545_s29 + $0x338] sm:$0xff] %vm3635_vm1, %v3594_v60  ;;  %v4977_v61 = vpop.eup %4976  ;;  %5002 = vrcp.f32 %v2334_v0  ;;  %v2264_v13 = vadd.f32 1.0, %v4975_v42  ;;  %v2666_v0 = vld [vmem:[%s5520_s26 + $0x138] sm:$0xff] }
 0x206   : > { %3738 = vst.msk [vmem:[%s5545_s29 + $0x330] sm:$0xff] %vm3635_vm1, %v3593_v62  ;;  %v2939_v4 = vpop.permute.xlu1 %2938  ;;  %v4979_v7 = vpop.eup %4978  ;;  %5004 = vrcp.f32 %v2333_v3  ;;  %v2263_v59 = vadd.f32 1.0, %v4977_v61 }
 0x207   : > { %v2934_v5 = vpop.permute.xlu0 %2933  ;;  %v3524_v8 = vmul.f32 %v2939_v4, %v2660_v2  ;;  %3448 = vperm.xlu1 %4445, %v4971_v46   ;;  %3443 = vperm.xlu0 %4444, %v4973_v63   ;;  %v4981_v12 = vpop.eup %4980  ;;  %5006 = vrcp.f32 %v2264_v13  ;;  %v2336_v25 = vadd.f32 1.0, %v4979_v7  ;;  %v2665_v2 = vld [vmem:[%s5520_s26 + $0x130] sm:$0xff]  ;;  %v2738_v7 = vld [vmem:[%s5520_s26 + $0x378] sm:$0xff] }
 0x208   : > { %v3523_v9 = vmul.f32 %v2934_v5, %v2659_v52  ;;  %v4983_v16 = vpop.eup %4982  ;;  %5008 = vrcp.f32 %v2263_v59  ;;  %v2335_v20 = vadd.f32 1.0, %v4981_v12  ;;  %v2668_v59 = vld [vmem:[%s5520_s26 + $0x148] sm:$0xff] }
 0x209   : > { %3669 = vst.msk [vmem:[%s5545_s29 + $0x108] sm:$0xff] %vm3635_vm1, %v3524_v8  ;;  %v4985_v17 = vpop.eup %4984  ;;  %5010 = vrcp.f32 %v2336_v25  ;;  %v2737_v8 = vld [vmem:[%s5520_s26 + $0x370] sm:$0xff]  ;;  %v2740_v25 = vld [vmem:[%s5520_s26 + $0x388] sm:$0xff] }
 0x20a   : > { %3668 = vst.msk [vmem:[%s5545_s29 + $0x100] sm:$0xff] %vm3635_vm1, %v3523_v9  ;;  %v3299_v18 = vpop.permute.xlu1 %3298  ;;  %v4987_v1 = vpop.eup %4986  ;;  %5012 = vrcp.f32 %v2335_v20 }
 0x20b   : > { %v3294_v11 = vpop.permute.xlu0 %3293  ;;  %v3596_v6 = vmul.f32 %v3299_v18, %v2732_v14  ;;  %3098 = vperm.xlu1 %4445, %v4983_v16   ;;  %3093 = vperm.xlu0 %4444, %v4985_v17   ;;  %v4989_v23 = vpop.eup %4988  ;;  %v2266_v24 = vadd.f32 1.0, %v4987_v1  ;;  %v2667_v17 = vld [vmem:[%s5520_s26 + $0x140] sm:$0xff] }
 0x20c   : > { %v3595_v22 = vmul.f32 %v3294_v11, %v2731_v15  ;;  %v4991_v21 = vpop.eup %4990  ;;  %v2265_v39 = vadd.f32 1.0, %v4989_v23 }
 0x20d   : > { %3741 = vst.msk [vmem:[%s5545_s29 + $0x348] sm:$0xff] %vm3635_vm1, %v3596_v6  ;;  %v4993_v28 = vpop.eup %4992  ;;  %5014 = vrcp.f32 %v2266_v24  ;;  %v2742_v24 = vld [vmem:[%s5520_s26 + $0x398] sm:$0xff] }
 0x20e   : > { %3740 = vst.msk [vmem:[%s5545_s29 + $0x340] sm:$0xff] %vm3635_vm1, %v3595_v22  ;;  %v2949_v58 = vpop.permute.xlu1 %2948  ;;  %v4995_v29 = vpop.eup %4994  ;;  %5016 = vrcp.f32 %v2265_v39 }
 0x20f   : > { %v2944_v19 = vpop.permute.xlu0 %2943  ;;  %v3526_v30 = vmul.f32 %v2949_v58, %v2662_v26  ;;  %3458 = vperm.xlu1 %4445, %v4991_v21   ;;  %3453 = vperm.xlu0 %4444, %v4993_v28   ;;  %v4997_v32 = vpop.eup %4996  ;;  %v2338_v47 = vadd.f32 1.0, %v4995_v29  ;;  %v2739_v26 = vld [vmem:[%s5520_s26 + $0x380] sm:$0xff]  ;;  %v2670_v58 = vld [vmem:[%s5520_s26 + $0x158] sm:$0xff] }
 0x210   : > { %v3525_v31 = vmul.f32 %v2944_v19, %v2661_v27  ;;  %v4999_v38 = vpop.eup %4998  ;;  %v2337_v35 = vadd.f32 1.0, %v4997_v32  ;;  %v2669_v19 = vld [vmem:[%s5520_s26 + $0x150] sm:$0xff] }
 0x211   : > { %3671 = vst.msk [vmem:[%s5545_s29 + $0x118] sm:$0xff] %vm3635_vm1, %v3526_v30  ;;  %v5001_v40 = vpop.eup %5000  ;;  %5018 = vrcp.f32 %v2338_v47 }
 0x212   : > { %3670 = vst.msk [vmem:[%s5545_s29 + $0x110] sm:$0xff] %vm3635_vm1, %v3525_v31  ;;  %v3309_v41 = vpop.permute.xlu1 %3308  ;;  %v5003_v10 = vpop.eup %5002  ;;  %5020 = vrcp.f32 %v2337_v35 }
 0x213   : > { %v3304_v45 = vpop.permute.xlu0 %3303  ;;  %v3598_v33 = vmul.f32 %v3309_v41, %v2734_v34  ;;  %3108 = vperm.xlu1 %4445, %v4999_v38   ;;  %3103 = vperm.xlu0 %4444, %v5001_v40   ;;  %v5005_v51 = vpop.eup %5004  ;;  %v2741_v34 = vld [vmem:[%s5520_s26 + $0x390] sm:$0xff]  ;;  %v2672_v41 = vld [vmem:[%s5520_s26 + $0x168] sm:$0xff] }
 0x214   : > { %v3597_v37 = vmul.f32 %v3304_v45, %v2733_v36  ;;  %v5007_v49 = vpop.eup %5006  ;;  %v2671_v45 = vld [vmem:[%s5520_s26 + $0x160] sm:$0xff] }
 0x215   : > { %3743 = vst.msk [vmem:[%s5545_s29 + $0x358] sm:$0xff] %vm3635_vm1, %v3598_v33  ;;  %v5009_v57 = vpop.eup %5008 }
 0x216   : > { %3742 = vst.msk [vmem:[%s5545_s29 + $0x350] sm:$0xff] %vm3635_vm1, %v3597_v37  ;;  %v2959_v53 = vpop.permute.xlu1 %2958  ;;  %v5011_v52 = vpop.eup %5010 }
 0x217   : > { %v2954_v43 = vpop.permute.xlu0 %2953  ;;  %v3528_v44 = vmul.f32 %v2959_v53, %v2664_v48  ;;  %3468 = vperm.xlu1 %4445, %v5003_v10   ;;  %3463 = vperm.xlu0 %4444, %v5005_v51   ;;  %v5013_v42 = vpop.eup %5012  ;;  %v2743_v10 = vld [vmem:[%s5520_s26 + $0x3a0] sm:$0xff] }
 0x218   : > { %v3527_v54 = vmul.f32 %v2954_v43, %v2663_v50  ;;  %v2744_v50 = vld [vmem:[%s5520_s26 + $0x3a8] sm:$0xff] }
 0x219   : > { %3673 = vst.msk [vmem:[%s5545_s29 + $0x128] sm:$0xff] %vm3635_vm1, %v3528_v44  ;;  %v2674_v44 = vld [vmem:[%s5520_s26 + $0x178] sm:$0xff] }
 0x21a   : > { %3672 = vst.msk [vmem:[%s5545_s29 + $0x120] sm:$0xff] %vm3635_vm1, %v3527_v54  ;;  %v3319_v46 = vpop.permute.xlu1 %3318  ;;  %v5015_v9 = vpop.eup %5014  ;;  %v2673_v54 = vld [vmem:[%s5520_s26 + $0x170] sm:$0xff] }
 0x21b   : > { %v3314_v60 = vpop.permute.xlu0 %3313  ;;  %v3600_v62 = vmul.f32 %v3319_v46, %v2736_v55  ;;  %3118 = vperm.xlu1 %4445, %v5007_v49   ;;  %3113 = vperm.xlu0 %4444, %v5009_v57   ;;  %v5017_v12 = vpop.eup %5016  ;;  %v2746_v46 = vld [vmem:[%s5520_s26 + $0x3b8] sm:$0xff] }
 0x21c   : > { %v3599_v63 = vmul.f32 %v3314_v60, %v2735_v56  ;;  %v2745_v60 = vld [vmem:[%s5520_s26 + $0x3b0] sm:$0xff] }
 0x21d   : > { %3745 = vst.msk [vmem:[%s5545_s29 + $0x368] sm:$0xff] %vm3635_vm1, %v3600_v62 }
 0x21e   : > { %3744 = vst.msk [vmem:[%s5545_s29 + $0x360] sm:$0xff] %vm3635_vm1, %v3599_v63  ;;  %v2969_v3 = vpop.permute.xlu1 %2968  ;;  %v5019_v18 = vpop.eup %5018 }
 0x21f   : > { %v2964_v61 = vpop.permute.xlu0 %2963  ;;  %v3530_v4 = vmul.f32 %v2969_v3, %v2666_v0  ;;  %3478 = vperm.xlu1 %4445, %v5011_v52   ;;  %3473 = vperm.xlu0 %4444, %v5013_v42   ;;  %v5021_v11 = vpop.eup %5020  ;;  %v2676_v52 = vld [vmem:[%s5520_s26 + $0x188] sm:$0xff]  ;;  %v2675_v42 = vld [vmem:[%s5520_s26 + $0x180] sm:$0xff] }
 0x220   : > { %v3529_v5 = vmul.f32 %v2964_v61, %v2665_v2 }
 0x221   : > { %3675 = vst.msk [vmem:[%s5545_s29 + $0x138] sm:$0xff] %vm3635_vm1, %v3530_v4 }
 0x222   : > { %3674 = vst.msk [vmem:[%s5545_s29 + $0x130] sm:$0xff] %vm3635_vm1, %v3529_v5  ;;  %v3329_v13 = vpop.permute.xlu1 %3328 }
 0x223   : > { %v3324_v14 = vpop.permute.xlu0 %3323  ;;  %v3602_v15 = vmul.f32 %v3329_v13, %v2738_v7  ;;  %3128 = vperm.xlu1 %4445, %v5015_v9   ;;  %3123 = vperm.xlu0 %4444, %v5017_v12   ;;  %v2748_v7 = vld [vmem:[%s5520_s26 + $0x3c8] sm:$0xff] }
 0x224   : > { %v3601_v16 = vmul.f32 %v3324_v14, %v2737_v8  ;;  %v2747_v8 = vld [vmem:[%s5520_s26 + $0x3c0] sm:$0xff] }
 0x225   : > { %3747 = vst.msk [vmem:[%s5545_s29 + $0x378] sm:$0xff] %vm3635_vm1, %v3602_v15  ;;  %v2678_v15 = vld [vmem:[%s5520_s26 + $0x198] sm:$0xff] }
 0x226   : > { %3746 = vst.msk [vmem:[%s5545_s29 + $0x370] sm:$0xff] %vm3635_vm1, %v3601_v16  ;;  %v2979_v1 = vpop.permute.xlu1 %2978  ;;  %v2677_v16 = vld [vmem:[%s5520_s26 + $0x190] sm:$0xff] }
 0x227   : > { %v2974_v6 = vpop.permute.xlu0 %2973  ;;  %v3532_v22 = vmul.f32 %v2979_v1, %v2668_v59  ;;  %3488 = vperm.xlu1 %4445, %v5019_v18   ;;  %3483 = vperm.xlu0 %4444, %v5021_v11   ;;  %v2750_v1 = vld [vmem:[%s5520_s26 + $0x3d8] sm:$0xff] }
 0x228   : > { %v3531_v23 = vmul.f32 %v2974_v6, %v2667_v17  ;;  %v2749_v6 = vld [vmem:[%s5520_s26 + $0x3d0] sm:$0xff] }
 0x229   : > { %3677 = vst.msk [vmem:[%s5545_s29 + $0x148] sm:$0xff] %vm3635_vm1, %v3532_v22 }
 0x22a   : > { %3676 = vst.msk [vmem:[%s5545_s29 + $0x140] sm:$0xff] %vm3635_vm1, %v3531_v23  ;;  %v3339_v27 = vpop.permute.xlu1 %3338 }
 0x22b   : > { %v3334_v21 = vpop.permute.xlu0 %3333  ;;  %v3604_v20 = vmul.f32 %v3339_v27, %v2740_v25  ;;  %v2680_v27 = vld [vmem:[%s5520_s26 + $0x1a8] sm:$0xff] }
 0x22c   : > { %v3603_v28 = vmul.f32 %v3334_v21, %v2739_v26  ;;  %v2679_v21 = vld [vmem:[%s5520_s26 + $0x1a0] sm:$0xff] }
 0x22d   : > { %3749 = vst.msk [vmem:[%s5545_s29 + $0x388] sm:$0xff] %vm3635_vm1, %v3604_v20 }
 0x22e   : > { %3748 = vst.msk [vmem:[%s5545_s29 + $0x380] sm:$0xff] %vm3635_vm1, %v3603_v28  ;;  %v2989_v29 = vpop.permute.xlu1 %2988 }
 0x22f   : > { %v2984_v30 = vpop.permute.xlu0 %2983  ;;  %v3534_v31 = vmul.f32 %v2989_v29, %v2670_v58  ;;  %v2752_v29 = vld [vmem:[%s5520_s26 + $0x3e8] sm:$0xff] }
 0x230   : > { %v3533_v32 = vmul.f32 %v2984_v30, %v2669_v19  ;;  %v2751_v30 = vld [vmem:[%s5520_s26 + $0x3e0] sm:$0xff] }
 0x231   : > { %3679 = vst.msk [vmem:[%s5545_s29 + $0x158] sm:$0xff] %vm3635_vm1, %v3534_v31 }
 0x232   : > { %3678 = vst.msk [vmem:[%s5545_s29 + $0x150] sm:$0xff] %vm3635_vm1, %v3533_v32  ;;  %v3349_v36 = vpop.permute.xlu1 %3348 }
 0x233   : > { %v3344_v38 = vpop.permute.xlu0 %3343  ;;  %v3606_v39 = vmul.f32 %v3349_v36, %v2742_v24  ;;  %v2682_v36 = vld [vmem:[%s5520_s26 + $0x1b8] sm:$0xff] }
 0x234   : > { %v3605_v40 = vmul.f32 %v3344_v38, %v2741_v34  ;;  %v2681_v38 = vld [vmem:[%s5520_s26 + $0x1b0] sm:$0xff] }
 0x235   : > { %3751 = vst.msk [vmem:[%s5545_s29 + $0x398] sm:$0xff] %vm3635_vm1, %v3606_v39 }
 0x236   : > { %3750 = vst.msk [vmem:[%s5545_s29 + $0x390] sm:$0xff] %vm3635_vm1, %v3605_v40  ;;  %v2999_v33 = vpop.permute.xlu1 %2998 }
 0x237   : > { %v2994_v37 = vpop.permute.xlu0 %2993  ;;  %v3536_v47 = vmul.f32 %v2999_v33, %v2672_v41  ;;  %v2754_v33 = vld [vmem:[%s5520_s26 + $0x3f8] sm:$0xff] }
 0x238   : > { %v3535_v48 = vmul.f32 %v2994_v37, %v2671_v45  ;;  %v2753_v37 = vld [vmem:[%s5520_s26 + $0x3f0] sm:$0xff] }
 0x239   : > { %3681 = vst.msk [vmem:[%s5545_s29 + $0x168] sm:$0xff] %vm3635_vm1, %v3536_v47 }
 0x23a   : > { %3680 = vst.msk [vmem:[%s5545_s29 + $0x160] sm:$0xff] %vm3635_vm1, %v3535_v48  ;;  %v3359_v35 = vpop.permute.xlu1 %3358 }
 0x23b   : > { %v3354_v51 = vpop.permute.xlu0 %3353  ;;  %v3608_v53 = vmul.f32 %v3359_v35, %v2744_v50  ;;  %v2684_v35 = vld [vmem:[%s5520_s26 + $0x1c8] sm:$0xff] }
 0x23c   : > { %v3607_v43 = vmul.f32 %v3354_v51, %v2743_v10  ;;  %v2683_v51 = vld [vmem:[%s5520_s26 + $0x1c0] sm:$0xff] }
 0x23d   : > { %3753 = vst.msk [vmem:[%s5545_s29 + $0x3a8] sm:$0xff] %vm3635_vm1, %v3608_v53 }
 0x23e   : > { %3752 = vst.msk [vmem:[%s5545_s29 + $0x3a0] sm:$0xff] %vm3635_vm1, %v3607_v43  ;;  %v3009_v55 = vpop.permute.xlu1 %3008 }
 0x23f   : > { %v3004_v56 = vpop.permute.xlu0 %3003  ;;  %v3538_v49 = vmul.f32 %v3009_v55, %v2674_v44  ;;  %v2756_v55 = vld [vmem:[%s5520_s26 + $0x408] sm:$0xff] }
 0x240   : > { %v3537_v57 = vmul.f32 %v3004_v56, %v2673_v54  ;;  %v2755_v56 = vld [vmem:[%s5520_s26 + $0x400] sm:$0xff] }
 0x241   : > { %3683 = vst.msk [vmem:[%s5545_s29 + $0x178] sm:$0xff] %vm3635_vm1, %v3538_v49 }
 0x242   : > { %3682 = vst.msk [vmem:[%s5545_s29 + $0x170] sm:$0xff] %vm3635_vm1, %v3537_v57  ;;  %v3369_v62 = vpop.permute.xlu1 %3368 }
 0x243   : > { %v3364_v63 = vpop.permute.xlu0 %3363  ;;  %v3610_v0 = vmul.f32 %v3369_v62, %v2746_v46  ;;  %v2686_v62 = vld [vmem:[%s5520_s26 + $0x1d8] sm:$0xff] }
 0x244   : > { %v3609_v2 = vmul.f32 %v3364_v63, %v2745_v60  ;;  %v2685_v63 = vld [vmem:[%s5520_s26 + $0x1d0] sm:$0xff] }
 0x245   : > { %3755 = vst.msk [vmem:[%s5545_s29 + $0x3b8] sm:$0xff] %vm3635_vm1, %v3610_v0 }
 0x246   : > { %3754 = vst.msk [vmem:[%s5545_s29 + $0x3b0] sm:$0xff] %vm3635_vm1, %v3609_v2  ;;  %v3019_v3 = vpop.permute.xlu1 %3018 }
 0x247   : > { %v3014_v61 = vpop.permute.xlu0 %3013  ;;  %v3540_v4 = vmul.f32 %v3019_v3, %v2676_v52  ;;  %v2758_v3 = vld [vmem:[%s5520_s26 + $0x418] sm:$0xff] }
 0x248   : > { %v3539_v5 = vmul.f32 %v3014_v61, %v2675_v42  ;;  %v2757_v61 = vld [vmem:[%s5520_s26 + $0x410] sm:$0xff] }
 0x249   : > { %3685 = vst.msk [vmem:[%s5545_s29 + $0x188] sm:$0xff] %vm3635_vm1, %v3540_v4 }
 0x24a   : > { %3684 = vst.msk [vmem:[%s5545_s29 + $0x180] sm:$0xff] %vm3635_vm1, %v3539_v5  ;;  %v3379_v9 = vpop.permute.xlu1 %3378 }
 0x24b   : > { %v3374_v12 = vpop.permute.xlu0 %3373  ;;  %v3612_v13 = vmul.f32 %v3379_v9, %v2748_v7  ;;  %v2688_v9 = vld [vmem:[%s5520_s26 + $0x1e8] sm:$0xff] }
 0x24c   : > { %v3611_v14 = vmul.f32 %v3374_v12, %v2747_v8  ;;  %v2687_v12 = vld [vmem:[%s5520_s26 + $0x1e0] sm:$0xff] }
 0x24d   : > { %3757 = vst.msk [vmem:[%s5545_s29 + $0x3c8] sm:$0xff] %vm3635_vm1, %v3612_v13 }
 0x24e   : > { %3756 = vst.msk [vmem:[%s5545_s29 + $0x3c0] sm:$0xff] %vm3635_vm1, %v3611_v14  ;;  %v3029_v59 = vpop.permute.xlu1 %3028 }
 0x24f   : > { %v3024_v17 = vpop.permute.xlu0 %3023  ;;  %v3542_v18 = vmul.f32 %v3029_v59, %v2678_v15  ;;  %v2760_v59 = vld [vmem:[%s5520_s26 + $0x428] sm:$0xff] }
 0x250   : > { %v3541_v11 = vmul.f32 %v3024_v17, %v2677_v16  ;;  %v2759_v17 = vld [vmem:[%s5520_s26 + $0x420] sm:$0xff] }
 0x251   : > { %3687 = vst.msk [vmem:[%s5545_s29 + $0x198] sm:$0xff] %vm3635_vm1, %v3542_v18 }
 0x252   : > { %3686 = vst.msk [vmem:[%s5545_s29 + $0x190] sm:$0xff] %vm3635_vm1, %v3541_v11  ;;  %v3389_v22 = vpop.permute.xlu1 %3388 }
 0x253   : > { %v3384_v23 = vpop.permute.xlu0 %3383  ;;  %v3614_v25 = vmul.f32 %v3389_v22, %v2750_v1  ;;  %v2690_v22 = vld [vmem:[%s5520_s26 + $0x1f8] sm:$0xff] }
 0x254   : > { %v3613_v26 = vmul.f32 %v3384_v23, %v2749_v6  ;;  %v2689_v23 = vld [vmem:[%s5520_s26 + $0x1f0] sm:$0xff] }
 0x255   : > { %3759 = vst.msk [vmem:[%s5545_s29 + $0x3d8] sm:$0xff] %vm3635_vm1, %v3614_v25 }
 0x256   : > { %3758 = vst.msk [vmem:[%s5545_s29 + $0x3d0] sm:$0xff] %vm3635_vm1, %v3613_v26  ;;  %v3039_v20 = vpop.permute.xlu1 %3038 }
 0x257   : > { %v3034_v28 = vpop.permute.xlu0 %3033  ;;  %v3544_v58 = vmul.f32 %v3039_v20, %v2680_v27  ;;  %v2762_v20 = vld [vmem:[%s5520_s26 + $0x438] sm:$0xff] }
 0x258   : > { %v3543_v19 = vmul.f32 %v3034_v28, %v2679_v21  ;;  %v2761_v28 = vld [vmem:[%s5520_s26 + $0x430] sm:$0xff] }
 0x259   : > { %3689 = vst.msk [vmem:[%s5545_s29 + $0x1a8] sm:$0xff] %vm3635_vm1, %v3544_v58 }
 0x25a   : > { %3688 = vst.msk [vmem:[%s5545_s29 + $0x1a0] sm:$0xff] %vm3635_vm1, %v3543_v19  ;;  %v3399_v31 = vpop.permute.xlu1 %3398 }
 0x25b   : > { %v3394_v32 = vpop.permute.xlu0 %3393  ;;  %v3616_v24 = vmul.f32 %v3399_v31, %v2752_v29  ;;  %v2692_v31 = vld [vmem:[%s5520_s26 + $0x208] sm:$0xff] }
 0x25c   : > { %v3615_v34 = vmul.f32 %v3394_v32, %v2751_v30  ;;  %v2691_v32 = vld [vmem:[%s5520_s26 + $0x200] sm:$0xff] }
 0x25d   : > { %3761 = vst.msk [vmem:[%s5545_s29 + $0x3e8] sm:$0xff] %vm3635_vm1, %v3616_v24 }
 0x25e   : > { %3760 = vst.msk [vmem:[%s5545_s29 + $0x3e0] sm:$0xff] %vm3635_vm1, %v3615_v34  ;;  %v3049_v39 = vpop.permute.xlu1 %3048 }
 0x25f   : > { %v3044_v40 = vpop.permute.xlu0 %3043  ;;  %v3546_v41 = vmul.f32 %v3049_v39, %v2682_v36  ;;  %v2764_v39 = vld [vmem:[%s5520_s26 + $0x448] sm:$0xff] }
 0x260   : > { %v3545_v45 = vmul.f32 %v3044_v40, %v2681_v38  ;;  %v2763_v40 = vld [vmem:[%s5520_s26 + $0x440] sm:$0xff] }
 0x261   : > { %3691 = vst.msk [vmem:[%s5545_s29 + $0x1b8] sm:$0xff] %vm3635_vm1, %v3546_v41 }
 0x262   : > { %3690 = vst.msk [vmem:[%s5545_s29 + $0x1b0] sm:$0xff] %vm3635_vm1, %v3545_v45  ;;  %v3409_v47 = vpop.permute.xlu1 %3408 }
 0x263   : > { %v3404_v48 = vpop.permute.xlu0 %3403  ;;  %v3618_v50 = vmul.f32 %v3409_v47, %v2754_v33  ;;  %v2694_v47 = vld [vmem:[%s5520_s26 + $0x218] sm:$0xff] }
 0x264   : > { %v3617_v10 = vmul.f32 %v3404_v48, %v2753_v37  ;;  %v2693_v48 = vld [vmem:[%s5520_s26 + $0x210] sm:$0xff] }
 0x265   : > { %3763 = vst.msk [vmem:[%s5545_s29 + $0x3f8] sm:$0xff] %vm3635_vm1, %v3618_v50 }
 0x266   : > { %3762 = vst.msk [vmem:[%s5545_s29 + $0x3f0] sm:$0xff] %vm3635_vm1, %v3617_v10  ;;  %v3059_v53 = vpop.permute.xlu1 %3058 }
 0x267   : > { %v3054_v43 = vpop.permute.xlu0 %3053  ;;  %v3548_v44 = vmul.f32 %v3059_v53, %v2684_v35  ;;  %v2766_v53 = vld [vmem:[%s5520_s26 + $0x458] sm:$0xff] }
 0x268   : > { %v3547_v54 = vmul.f32 %v3054_v43, %v2683_v51  ;;  %v2765_v43 = vld [vmem:[%s5520_s26 + $0x450] sm:$0xff] }
 0x269   : > { %3693 = vst.msk [vmem:[%s5545_s29 + $0x1c8] sm:$0xff] %vm3635_vm1, %v3548_v44 }
 0x26a   : > { %3692 = vst.msk [vmem:[%s5545_s29 + $0x1c0] sm:$0xff] %vm3635_vm1, %v3547_v54  ;;  %v3419_v49 = vpop.permute.xlu1 %3418 }
 0x26b   : > { %v3414_v57 = vpop.permute.xlu0 %3413  ;;  %v3620_v46 = vmul.f32 %v3419_v49, %v2756_v55  ;;  %v2696_v49 = vld [vmem:[%s5520_s26 + $0x228] sm:$0xff] }
 0x26c   : > { %v3619_v60 = vmul.f32 %v3414_v57, %v2755_v56  ;;  %v2695_v57 = vld [vmem:[%s5520_s26 + $0x220] sm:$0xff] }
 0x26d   : > { %3765 = vst.msk [vmem:[%s5545_s29 + $0x408] sm:$0xff] %vm3635_vm1, %v3620_v46 }
 0x26e   : > { %3764 = vst.msk [vmem:[%s5545_s29 + $0x400] sm:$0xff] %vm3635_vm1, %v3619_v60  ;;  %v3069_v0 = vpop.permute.xlu1 %3068 }
 0x26f   : > { %v3064_v2 = vpop.permute.xlu0 %3063  ;;  %v3550_v52 = vmul.f32 %v3069_v0, %v2686_v62  ;;  %v2768_v0 = vld [vmem:[%s5520_s26 + $0x468] sm:$0xff] }
 0x270   : > { %v3549_v42 = vmul.f32 %v3064_v2, %v2685_v63  ;;  %v2767_v2 = vld [vmem:[%s5520_s26 + $0x460] sm:$0xff] }
 0x271   : > { %3695 = vst.msk [vmem:[%s5545_s29 + $0x1d8] sm:$0xff] %vm3635_vm1, %v3550_v52 }
 0x272   : > { %3694 = vst.msk [vmem:[%s5545_s29 + $0x1d0] sm:$0xff] %vm3635_vm1, %v3549_v42  ;;  %v3429_v4 = vpop.permute.xlu1 %3428 }
 0x273   : > { %v3424_v5 = vpop.permute.xlu0 %3423  ;;  %v3622_v7 = vmul.f32 %v3429_v4, %v2758_v3  ;;  %v2698_v4 = vld [vmem:[%s5520_s26 + $0x238] sm:$0xff] }
 0x274   : > { %v3621_v8 = vmul.f32 %v3424_v5, %v2757_v61  ;;  %v2697_v5 = vld [vmem:[%s5520_s26 + $0x230] sm:$0xff] }
 0x275   : > { %3767 = vst.msk [vmem:[%s5545_s29 + $0x418] sm:$0xff] %vm3635_vm1, %v3622_v7 }
 0x276   : > { %3766 = vst.msk [vmem:[%s5545_s29 + $0x410] sm:$0xff] %vm3635_vm1, %v3621_v8  ;;  %v3079_v13 = vpop.permute.xlu1 %3078 }
 0x277   : > { %v3074_v14 = vpop.permute.xlu0 %3073  ;;  %v3552_v15 = vmul.f32 %v3079_v13, %v2688_v9  ;;  %v2770_v13 = vld [vmem:[%s5520_s26 + $0x478] sm:$0xff] }
 0x278   : > { %v3551_v16 = vmul.f32 %v3074_v14, %v2687_v12  ;;  %v2769_v14 = vld [vmem:[%s5520_s26 + $0x470] sm:$0xff] }
 0x279   : > { %3697 = vst.msk [vmem:[%s5545_s29 + $0x1e8] sm:$0xff] %vm3635_vm1, %v3552_v15 }
 0x27a   : > { %3696 = vst.msk [vmem:[%s5545_s29 + $0x1e0] sm:$0xff] %vm3635_vm1, %v3551_v16  ;;  %v3439_v18 = vpop.permute.xlu1 %3438 }
 0x27b   : > { %v3434_v11 = vpop.permute.xlu0 %3433  ;;  %v3624_v1 = vmul.f32 %v3439_v18, %v2760_v59 }
 0x27c   : > { %v3623_v6 = vmul.f32 %v3434_v11, %v2759_v17 }
 0x27d   : > { %3769 = vst.msk [vmem:[%s5545_s29 + $0x428] sm:$0xff] %vm3635_vm1, %v3624_v1 }
 0x27e   : > { %3768 = vst.msk [vmem:[%s5545_s29 + $0x420] sm:$0xff] %vm3635_vm1, %v3623_v6  ;;  %v3089_v25 = vpop.permute.xlu1 %3088 }
 0x27f   : > { %v3084_v26 = vpop.permute.xlu0 %3083  ;;  %v3554_v27 = vmul.f32 %v3089_v25, %v2690_v22 }
 0x280   : > { %v3553_v21 = vmul.f32 %v3084_v26, %v2689_v23 }
 0x281   : > { %3699 = vst.msk [vmem:[%s5545_s29 + $0x1f8] sm:$0xff] %vm3635_vm1, %v3554_v27 }
 0x282   : > { %3698 = vst.msk [vmem:[%s5545_s29 + $0x1f0] sm:$0xff] %vm3635_vm1, %v3553_v21  ;;  %v3449_v58 = vpop.permute.xlu1 %3448 }
 0x283   : > { %v3444_v19 = vpop.permute.xlu0 %3443  ;;  %v3626_v29 = vmul.f32 %v3449_v58, %v2762_v20 }
 0x284   : > { %v3625_v30 = vmul.f32 %v3444_v19, %v2761_v28 }
 0x285   : > { %3771 = vst.msk [vmem:[%s5545_s29 + $0x438] sm:$0xff] %vm3635_vm1, %v3626_v29 }
 0x286   : > { %3770 = vst.msk [vmem:[%s5545_s29 + $0x430] sm:$0xff] %vm3635_vm1, %v3625_v30  ;;  %v3099_v24 = vpop.permute.xlu1 %3098 }
 0x287   : > { %v3094_v34 = vpop.permute.xlu0 %3093  ;;  %v3556_v36 = vmul.f32 %v3099_v24, %v2692_v31 }
 0x288   : > { %v3555_v38 = vmul.f32 %v3094_v34, %v2691_v32 }
 0x289   : > { %3701 = vst.msk [vmem:[%s5545_s29 + $0x208] sm:$0xff] %vm3635_vm1, %v3556_v36 }
 0x28a   : > { %3700 = vst.msk [vmem:[%s5545_s29 + $0x200] sm:$0xff] %vm3635_vm1, %v3555_v38  ;;  %v3459_v41 = vpop.permute.xlu1 %3458 }
 0x28b   : > { %v3454_v45 = vpop.permute.xlu0 %3453  ;;  %v3628_v33 = vmul.f32 %v3459_v41, %v2764_v39 }
 0x28c   : > { %v3627_v37 = vmul.f32 %v3454_v45, %v2763_v40 }
 0x28d   : > { %3773 = vst.msk [vmem:[%s5545_s29 + $0x448] sm:$0xff] %vm3635_vm1, %v3628_v33 }
 0x28e   : > { %3772 = vst.msk [vmem:[%s5545_s29 + $0x440] sm:$0xff] %vm3635_vm1, %v3627_v37  ;;  %v3109_v50 = vpop.permute.xlu1 %3108 }
 0x28f   : > { %v3104_v10 = vpop.permute.xlu0 %3103  ;;  %v3558_v35 = vmul.f32 %v3109_v50, %v2694_v47 }
 0x290   : > { %v3557_v51 = vmul.f32 %v3104_v10, %v2693_v48 }
 0x291   : > { %3703 = vst.msk [vmem:[%s5545_s29 + $0x218] sm:$0xff] %vm3635_vm1, %v3558_v35 }
 0x292   : > { %3702 = vst.msk [vmem:[%s5545_s29 + $0x210] sm:$0xff] %vm3635_vm1, %v3557_v51  ;;  %v3469_v44 = vpop.permute.xlu1 %3468 }
 0x293   : > { %v3464_v54 = vpop.permute.xlu0 %3463  ;;  %v3630_v55 = vmul.f32 %v3469_v44, %v2766_v53 }
 0x294   : > { %v3629_v56 = vmul.f32 %v3464_v54, %v2765_v43 }
 0x295   : > { %3775 = vst.msk [vmem:[%s5545_s29 + $0x458] sm:$0xff] %vm3635_vm1, %v3630_v55 }
 0x296   : > { %3774 = vst.msk [vmem:[%s5545_s29 + $0x450] sm:$0xff] %vm3635_vm1, %v3629_v56  ;;  %v3119_v46 = vpop.permute.xlu1 %3118 }
 0x297   : > { %v3114_v60 = vpop.permute.xlu0 %3113  ;;  %v3560_v62 = vmul.f32 %v3119_v46, %v2696_v49 }
 0x298   : > { %v3559_v63 = vmul.f32 %v3114_v60, %v2695_v57 }
 0x299   : > { %3705 = vst.msk [vmem:[%s5545_s29 + $0x228] sm:$0xff] %vm3635_vm1, %v3560_v62 }
 0x29a   : > { %3704 = vst.msk [vmem:[%s5545_s29 + $0x220] sm:$0xff] %vm3635_vm1, %v3559_v63  ;;  %v3479_v52 = vpop.permute.xlu1 %3478 }
 0x29b   : > { %v3474_v42 = vpop.permute.xlu0 %3473  ;;  %v3632_v3 = vmul.f32 %v3479_v52, %v2768_v0 }
 0x29c   : > { %v3631_v61 = vmul.f32 %v3474_v42, %v2767_v2 }
 0x29d   : > { %3777 = vst.msk [vmem:[%s5545_s29 + $0x468] sm:$0xff] %vm3635_vm1, %v3632_v3 }
 0x29e   : > { %3776 = vst.msk [vmem:[%s5545_s29 + $0x460] sm:$0xff] %vm3635_vm1, %v3631_v61  ;;  %v3129_v7 = vpop.permute.xlu1 %3128 }
 0x29f   : > { %v3124_v8 = vpop.permute.xlu0 %3123  ;;  %v3562_v9 = vmul.f32 %v3129_v7, %v2698_v4 }
 0x2a0   : > { %v3561_v12 = vmul.f32 %v3124_v8, %v2697_v5 }
 0x2a1   : > { %3707 = vst.msk [vmem:[%s5545_s29 + $0x238] sm:$0xff] %vm3635_vm1, %v3562_v9 }
 0x2a2   : > { %3706 = vst.msk [vmem:[%s5545_s29 + $0x230] sm:$0xff] %vm3635_vm1, %v3561_v12  ;;  %v3489_v15 = vpop.permute.xlu1 %3488 }
 0x2a3   : > { %v3484_v16 = vpop.permute.xlu0 %3483  ;;  %v3634_v59 = vmul.f32 %v3489_v15, %v2770_v13 }
 0x2a4   : > { %v3633_v17 = vmul.f32 %v3484_v16, %v2769_v14 }
 0x2a5   : > { %3779 = vst.msk [vmem:[%s5545_s29 + $0x478] sm:$0xff] %vm3635_vm1, %v3634_v59 }
 0x2a6   : > { %3778 = vst.msk [vmem:[%s5545_s29 + $0x470] sm:$0xff] %vm3635_vm1, %v3633_v17 }
 0x2a7 PF: > { %s14_s15 = sadd.s32 1, %s5028_s15  }
 0x2a8   : > { %p11_p4 = scmp.ge.s32.totalorder %s14_s15, 4  }
 0x2aa   :  { %13 = sbr.rel (!%p11_p4) target bundleno = 1 (0x1), region = 72 }

</bundles_post_ra>
